<compile_context>
chip_gen: v6e
topology: v6e:2x2x1
jax: 0.10.0
libtpu: 0.0.40
codegen_flags: <defaults>
</compile_context>

<pallas_src>
import numpy as np
import jax
import jax.numpy as jnp
from jax.experimental import pallas as pl
from jax.experimental.pallas import tpu as pltpu  # noqa: F401  (TPU backend)

# ---- small, module-consistent config ----------------------------------------
B = 2            # batch
C_IN = 3         # image channels (NCHW)
H = W = 16       # spatial
PATCH = 4        # patchify stride of the encoder stand-in
N_PIX = (H // PATCH) * (W // PATCH)   # num_pixels = 16
ENC = 32         # encoder_dim
DEC = 32         # decoder_dim
ATT = 32         # attention_dim
EMB = 16         # embed_size
VOCAB = 32       # vocab_size
L_CAP = 8        # padded caption length
T_MAX = L_CAP - 1  # fixed (static) decode length; wrapper slices to dynamic T


# ---- single fused kernel: encoder + attention-LSTM decoder -------------------
def encoder_decoder_kernel(
        x_ref, emb_ref,
        w_conv_ref, b_conv_ref,
        w_enc_ref, b_enc_ref, w_dec_ref, b_dec_ref,
        w_att_ref, b_att_ref,
        w_init_ref, b_init_ref,
        w_ih_emb_ref, w_ih_ctx_ref, b_ih_ref,
        w_hh_ref, b_hh_ref,
        w_out_ref, b_out_ref,
        out_ref, alpha_ref):
    t_max, bsz, n_pix = alpha_ref.shape
    d_dim = w_hh_ref.shape[0]

    # ---- encoder: patch-embed "conv" as one matmul (frozen trunk stand-in) ---
    feats2d = (jnp.dot(x_ref[...], w_conv_ref[...],
                       preferred_element_type=jnp.float32) + b_conv_ref[...])  # (B*N, ENC)
    feats = feats2d.reshape(bsz, n_pix, -1)                                    # (B, N, ENC)

    # ---- hoisted, time-invariant attention encoder projection ----------------
    enc_proj = (jnp.dot(feats2d, w_enc_ref[...],
                        preferred_element_type=jnp.float32) + b_enc_ref[...])
    enc_proj = enc_proj.reshape(bsz, n_pix, -1)                                # (B, N, ATT)

    # ---- init_hidden_state: fused init_h/init_c projection (one matmul) ------
    mean_f = jnp.mean(feats, axis=1)                                           # (B, ENC)
    hc0 = (jnp.dot(mean_f, w_init_ref[...],
                   preferred_element_type=jnp.float32) + b_init_ref[...])      # (B, 2*DEC)
    h = hc0[:, :d_dim]
    c = hc0[:, d_dim:]

    w_att = w_att_ref[...]        # (1, ATT)
    bias_gates = b_ih_ref[...] + b_hh_ref[...]

    # ---- unrolled time loop (T_MAX is small & static) ------------------------
    for t in range(t_max):
        # --- Attention(features, h) ---
        dec_proj = (jnp.dot(h, w_dec_ref[...],
                            preferred_element_type=jnp.float32) + b_dec_ref[...])   # (B, ATT)
        combined = jnp.maximum(enc_proj + dec_proj[:, None, :], 0.0)                # ReLU
        scores = jnp.sum(combined * w_att[None], axis=-1) + b_att_ref[...]          # (B, N)
        scores = scores - jnp.max(scores, axis=1, keepdims=True)
        exps = jnp.exp(scores)
        inv_den = pl.reciprocal(jnp.sum(exps, axis=1, keepdims=True), approx=True)
        alphas = exps * inv_den                                                     # softmax over pixels
        context = jnp.sum(feats * alphas[:, :, None], axis=1)                       # (B, ENC)

        # --- LSTMCell([embed_t, context], (h, c)) -- concat-free ---
        emb_t = emb_ref[t]                                                          # (B, EMB)
        gates = (jnp.dot(emb_t, w_ih_emb_ref[...], preferred_element_type=jnp.float32)
                 + jnp.dot(context, w_ih_ctx_ref[...], preferred_element_type=jnp.float32)
                 + jnp.dot(h, w_hh_ref[...], preferred_element_type=jnp.float32)
                 + bias_gates)
        i_g = jax.nn.sigmoid(gates[:, 0:d_dim])
        f_g = jax.nn.sigmoid(gates[:, d_dim:2 * d_dim])
        g_g = jnp.tanh(gates[:, 2 * d_dim:3 * d_dim])
        o_g = jax.nn.sigmoid(gates[:, 3 * d_dim:4 * d_dim])
        c = f_g * c + i_g * g_g
        h = o_g * jnp.tanh(c)

        # --- decoder_out (dropout == identity in deterministic forward) ---
        logits = (jnp.dot(h, w_out_ref[...],
                          preferred_element_type=jnp.float32) + b_out_ref[...])     # (B, V)

        out_ref[t] = logits
        alpha_ref[t] = alphas


def run_fused(params, x_patches2d, embeds_seq):
    b = embeds_seq.shape[1]
    weight_list = [
        params["w_conv"], params["b_conv"],
        params["w_enc"], params["b_enc"], params["w_dec"], params["b_dec"],
        params["w_att_t"], params["b_att"],
        params["w_init"], params["b_init"],
        params["w_ih_emb"], params["w_ih_ctx"], params["b_ih"],
        params["w_hh_t"], params["b_hh"],
        params["w_out"], params["b_out"],
    ]
    outputs_tbv, alphas_tbn = pl.pallas_call(
        encoder_decoder_kernel,
        out_shape=(jax.ShapeDtypeStruct((T_MAX, b, VOCAB), jnp.float32),
                   jax.ShapeDtypeStruct((T_MAX, b, N_PIX), jnp.float32)),
    )(x_patches2d, embeds_seq, *weight_list)
    return outputs_tbv, alphas_tbn


# ---- parameter init (deterministic, shapes per module __init__) --------------
def init_params(key):
    def lin(k, fan_in, shape):
        bound = 1.0 / np.sqrt(fan_in)
        return jax.random.uniform(k, shape, jnp.float32, -bound, bound)

    ks = jax.random.split(key, 24)
    in_patch = PATCH * PATCH * C_IN

    # init_h / init_c (packed into one (ENC, 2*DEC) projection)
    w_inith = lin(ks[9], ENC, (ENC, DEC));  b_inith = lin(ks[10], ENC, (1, DEC))
    w_initc = lin(ks[11], ENC, (ENC, DEC)); b_initc = lin(ks[12], ENC, (1, DEC))
    # LSTMCell(embed+enc -> dec); stored transposed (in, 4*dec), gate order i,f,g,o,
    # split into embedding / context halves (concat-free gates)
    w_ih_t = lin(ks[13], DEC, (EMB + ENC, 4 * DEC)); b_ih = lin(ks[14], DEC, (1, 4 * DEC))

    return {
        # encoder stand-in (conv-as-matmul)
        "w_conv": lin(ks[0], in_patch, (in_patch, ENC)),
        "b_conv": lin(ks[1], in_patch, (1, ENC)),
        # embedding table: uniform(-0.1, 0.1) as in the module
        "emb_table": jax.random.uniform(ks[2], (VOCAB, EMB), jnp.float32, -0.1, 0.1),
        # Attention
        "w_enc": lin(ks[3], ENC, (ENC, ATT)),   "b_enc": lin(ks[4], ENC, (1, ATT)),
        "w_dec": lin(ks[5], DEC, (DEC, ATT)),   "b_dec": lin(ks[6], DEC, (1, ATT)),
        "w_att_t": lin(ks[7], ATT, (1, ATT)),   "b_att": lin(ks[8], ATT, (1, 1)),
        # fused init_h / init_c
        "w_init": jnp.concatenate([w_inith, w_initc], axis=1),   # (ENC, 2*DEC)
        "b_init": jnp.concatenate([b_inith, b_initc], axis=1),   # (1, 2*DEC)
        # LSTMCell
        "w_ih_emb": w_ih_t[:EMB], "w_ih_ctx": w_ih_t[EMB:], "b_ih": b_ih,
        "w_hh_t": lin(ks[15], DEC, (DEC, 4 * DEC)), "b_hh": lin(ks[16], DEC, (1, 4 * DEC)),
        # decoder_out
        "w_out": lin(ks[17], DEC, (DEC, VOCAB)), "b_out": lin(ks[18], DEC, (1, VOCAB)),
    }


# ---- full forward: Encoder_Decoder.forward(images, captions, caption_len) ----
def encoder_decoder_forward(params, images, captions, caption_len_np):
    # torch: caption_len.sort(descending=True); lengths are concrete (host).
    order = np.argsort(-caption_len_np, kind="stable")
    caption_lengths = caption_len_np[order]
    seq_length = caption_lengths - 1
    T = int(seq_length[0])                      # dynamic length; kernel shape is fixed at T_MAX

    # Patchify NCHW -> (B, N_PIX, P*P*C) in NHWC order (pure layout plumbing;
    # the conv-as-matmul itself runs inside the fused kernel).
    b, c, h, w = images.shape
    p = PATCH
    x = jnp.transpose(images, (0, 2, 3, 1))
    x = x.reshape(b, h // p, p, w // p, p, c)
    x = jnp.transpose(x, (0, 1, 3, 2, 4, 5)).reshape(b, N_PIX, p * p * c)
    x = x[np.asarray(order)]                    # sort by caption length (like features[sorted_indices])
    x2d = x.reshape(b * N_PIX, p * p * c)

    captions_sorted = captions[np.asarray(order)]
    embeds = params["emb_table"][captions_sorted]                    # (B, L, EMB)
    embeds_seq = jnp.transpose(embeds[:, :T_MAX, :], (1, 0, 2))      # (T_MAX, B, EMB)

    outputs_tbv, alphas_tbn = run_fused(params, x2d, embeds_seq)

    # slice the fixed-length slabs to the dynamic decode length T
    outputs = jnp.transpose(outputs_tbv[:T], (1, 0, 2))              # (B, T, VOCAB)
    alphas = jnp.transpose(alphas_tbn[:T], (1, 0, 2))                # (B, T, N_PIX)
    return outputs, alphas, captions_sorted, jnp.asarray(seq_length)


if __name__ == "__main__":
    root = jax.random.PRNGKey(0)
    k_img, k_cap, k_par = jax.random.split(root, 3)

    images = jax.random.normal(k_img, (B, C_IN, H, W), jnp.float32)        # NCHW
    captions = jax.random.randint(k_cap, (B, L_CAP), 0, VOCAB, dtype=jnp.int32)
    caption_len = np.array([6, 8], dtype=np.int32)

    params = init_params(k_par)

    outputs, alphas, caps_sorted, seq_len = encoder_decoder_forward(
        params, images, captions, caption_len)
    jax.block_until_ready((outputs, alphas, caps_sorted))

    T = int(seq_len[0])
    assert outputs.shape == (B, T, VOCAB), outputs.shape
    assert alphas.shape == (B, T, N_PIX), alphas.shape
    assert caps_sorted.shape == (B, L_CAP), caps_sorted.shape
    # alphas are softmax outputs -> rows sum to ~1 (approx reciprocal on EUP)
    assert np.allclose(np.asarray(jnp.sum(alphas, axis=-1)), 1.0, atol=5e-3)

    print("KERNEL_OK")
</pallas_src>

<mosaic_0001>
module attributes {stable_mosaic.version = 11 : i64} {
  func.func @encoder_decoder_kernel(%arg0: memref<32x48xf32, #tpu.memory_space<vmem>>, %arg1: memref<7x2x16xf32, #tpu.memory_space<vmem>>, %arg2: memref<48x32xf32, #tpu.memory_space<vmem>>, %arg3: memref<1x32xf32, #tpu.memory_space<vmem>>, %arg4: memref<32x32xf32, #tpu.memory_space<vmem>>, %arg5: memref<1x32xf32, #tpu.memory_space<vmem>>, %arg6: memref<32x32xf32, #tpu.memory_space<vmem>>, %arg7: memref<1x32xf32, #tpu.memory_space<vmem>>, %arg8: memref<1x32xf32, #tpu.memory_space<vmem>>, %arg9: memref<1x1xf32, #tpu.memory_space<vmem>>, %arg10: memref<32x64xf32, #tpu.memory_space<vmem>>, %arg11: memref<1x64xf32, #tpu.memory_space<vmem>>, %arg12: memref<16x128xf32, #tpu.memory_space<vmem>>, %arg13: memref<32x128xf32, #tpu.memory_space<vmem>>, %arg14: memref<1x128xf32, #tpu.memory_space<vmem>>, %arg15: memref<32x128xf32, #tpu.memory_space<vmem>>, %arg16: memref<1x128xf32, #tpu.memory_space<vmem>>, %arg17: memref<32x32xf32, #tpu.memory_space<vmem>>, %arg18: memref<1x32xf32, #tpu.memory_space<vmem>>, %arg19: memref<7x2x32xf32, #tpu.memory_space<vmem>>, %arg20: memref<7x2x16xf32, #tpu.memory_space<vmem>>) attributes {dimension_semantics = [], scalar_prefetch = 0 : i64, scratch_operands = 0 : i64, tpu.core_type = #tpu.core_type<tc>} {
    %c0 = arith.constant 0 : index
    %c0_0 = arith.constant 0 : index
    %0 = vector.load %arg0[%c0, %c0_0] : memref<32x48xf32, #tpu.memory_space<vmem>>, vector<32x48xf32>
    %c0_1 = arith.constant 0 : index
    %c0_2 = arith.constant 0 : index
    %1 = vector.load %arg2[%c0_1, %c0_2] : memref<48x32xf32, #tpu.memory_space<vmem>>, vector<48x32xf32>
    %cst = arith.constant dense<0.000000e+00> : vector<32x32xf32>
    %2 = tpu.matmul %0, %1, %cst {dimension_numbers = #tpu.dot_dimension_numbers<[1], [0], [0], [1], [0, 0, 1, 1], [], []>} : vector<32x48xf32>, vector<48x32xf32>, vector<32x32xf32> -> vector<32x32xf32>
    %c0_3 = arith.constant 0 : index
    %c0_4 = arith.constant 0 : index
    %3 = vector.load %arg3[%c0_3, %c0_4] : memref<1x32xf32, #tpu.memory_space<vmem>>, vector<1x32xf32>
    %4 = vector.broadcast %3 : vector<1x32xf32> to vector<32x32xf32>
    %5 = arith.addf %2, %4 : vector<32x32xf32>
    %6 = vector.shape_cast %5 : vector<32x32xf32> to vector<2x16x32xf32>
    %c0_5 = arith.constant 0 : index
    %c0_6 = arith.constant 0 : index
    %7 = vector.load %arg4[%c0_5, %c0_6] : memref<32x32xf32, #tpu.memory_space<vmem>>, vector<32x32xf32>
    %cst_7 = arith.constant dense<0.000000e+00> : vector<32x32xf32>
    %8 = tpu.matmul %5, %7, %cst_7 {dimension_numbers = #tpu.dot_dimension_numbers<[1], [0], [0], [1], [0, 0, 1, 1], [], []>} : vector<32x32xf32>, vector<32x32xf32>, vector<32x32xf32> -> vector<32x32xf32>
    %c0_8 = arith.constant 0 : index
    %c0_9 = arith.constant 0 : index
    %9 = vector.load %arg5[%c0_8, %c0_9] : memref<1x32xf32, #tpu.memory_space<vmem>>, vector<1x32xf32>
    %10 = vector.broadcast %9 : vector<1x32xf32> to vector<32x32xf32>
    %11 = arith.addf %8, %10 : vector<32x32xf32>
    %12 = vector.shape_cast %11 : vector<32x32xf32> to vector<2x16x32xf32>
    %cst_10 = arith.constant dense<0.000000e+00> : vector<2x32xf32>
    %13 = vector.multi_reduction <add>, %6, %cst_10 [1] : vector<2x16x32xf32> to vector<2x32xf32>
    %cst_11 = arith.constant 1.600000e+01 : f32
    %14 = vector.broadcast %cst_11 : f32 to vector<2x32xf32>
    %15 = arith.divf %13, %14 : vector<2x32xf32>
    %c0_12 = arith.constant 0 : index
    %c0_13 = arith.constant 0 : index
    %16 = vector.load %arg10[%c0_12, %c0_13] : memref<32x64xf32, #tpu.memory_space<vmem>>, vector<32x64xf32>
    %cst_14 = arith.constant dense<0.000000e+00> : vector<2x64xf32>
    %17 = tpu.matmul %15, %16, %cst_14 {dimension_numbers = #tpu.dot_dimension_numbers<[1], [0], [0], [1], [0, 0, 1, 1], [], []>} : vector<2x32xf32>, vector<32x64xf32>, vector<2x64xf32> -> vector<2x64xf32>
    %c0_15 = arith.constant 0 : index
    %c0_16 = arith.constant 0 : index
    %18 = vector.load %arg11[%c0_15, %c0_16] : memref<1x64xf32, #tpu.memory_space<vmem>>, vector<1x64xf32>
    %19 = vector.broadcast %18 : vector<1x64xf32> to vector<2x64xf32>
    %20 = arith.addf %17, %19 : vector<2x64xf32>
    %21 = vector.extract_strided_slice %20 {offsets = [0, 0], sizes = [2, 32], strides = [1, 1]} : vector<2x64xf32> to vector<2x32xf32>
    %22 = vector.extract_strided_slice %20 {offsets = [0, 32], sizes = [2, 32], strides = [1, 1]} : vector<2x64xf32> to vector<2x32xf32>
    %c0_17 = arith.constant 0 : index
    %c0_18 = arith.constant 0 : index
    %23 = vector.load %arg8[%c0_17, %c0_18] : memref<1x32xf32, #tpu.memory_space<vmem>>, vector<1x32xf32>
    %c0_19 = arith.constant 0 : index
    %c0_20 = arith.constant 0 : index
    %24 = vector.load %arg14[%c0_19, %c0_20] : memref<1x128xf32, #tpu.memory_space<vmem>>, vector<1x128xf32>
    %c0_21 = arith.constant 0 : index
    %c0_22 = arith.constant 0 : index
    %25 = vector.load %arg16[%c0_21, %c0_22] : memref<1x128xf32, #tpu.memory_space<vmem>>, vector<1x128xf32>
    %26 = arith.addf %24, %25 : vector<1x128xf32>
    %c0_23 = arith.constant 0 : index
    %c0_24 = arith.constant 0 : index
    %27 = vector.load %arg6[%c0_23, %c0_24] : memref<32x32xf32, #tpu.memory_space<vmem>>, vector<32x32xf32>
    %cst_25 = arith.constant dense<0.000000e+00> : vector<2x32xf32>
    %28 = tpu.matmul %21, %27, %cst_25 {dimension_numbers = #tpu.dot_dimension_numbers<[1], [0], [0], [1], [0, 0, 1, 1], [], []>} : vector<2x32xf32>, vector<32x32xf32>, vector<2x32xf32> -> vector<2x32xf32>
    %c0_26 = arith.constant 0 : index
    %c0_27 = arith.constant 0 : index
    %29 = vector.load %arg7[%c0_26, %c0_27] : memref<1x32xf32, #tpu.memory_space<vmem>>, vector<1x32xf32>
    %30 = vector.broadcast %29 : vector<1x32xf32> to vector<2x32xf32>
    %31 = arith.addf %28, %30 : vector<2x32xf32>
    %32 = vector.shape_cast %31 : vector<2x32xf32> to vector<2x1x32xf32>
    %33 = vector.broadcast %32 : vector<2x1x32xf32> to vector<2x16x32xf32>
    %34 = arith.addf %12, %33 : vector<2x16x32xf32>
    %cst_28 = arith.constant 0.000000e+00 : f32
    %35 = vector.broadcast %cst_28 : f32 to vector<2x16x32xf32>
    %36 = arith.maximumf %34, %35 : vector<2x16x32xf32>
    %37 = vector.shape_cast %23 : vector<1x32xf32> to vector<1x1x32xf32>
    %38 = vector.broadcast %37 : vector<1x1x32xf32> to vector<2x16x32xf32>
    %39 = arith.mulf %36, %38 : vector<2x16x32xf32>
    %cst_29 = arith.constant dense<0.000000e+00> : vector<2x16xf32>
    %40 = vector.multi_reduction <add>, %39, %cst_29 [2] : vector<2x16x32xf32> to vector<2x16xf32>
    %c0_30 = arith.constant 0 : index
    %c0_31 = arith.constant 0 : index
    %41 = vector.load %arg9[%c0_30, %c0_31] : memref<1x1xf32, #tpu.memory_space<vmem>>, vector<1x1xf32>
    %42 = vector.broadcast %41 : vector<1x1xf32> to vector<2x16xf32>
    %43 = arith.addf %40, %42 : vector<2x16xf32>
    %cst_32 = arith.constant dense<0xFF800000> : vector<2xf32>
    %44 = vector.multi_reduction <maximumf>, %43, %cst_32 [1] : vector<2x16xf32> to vector<2xf32>
    %45 = vector.shape_cast %44 : vector<2xf32> to vector<2x1xf32>
    %46 = vector.broadcast %45 : vector<2x1xf32> to vector<2x16xf32>
    %47 = arith.subf %43, %46 : vector<2x16xf32>
    %48 = math.exp %47 : vector<2x16xf32>
    %cst_33 = arith.constant dense<0.000000e+00> : vector<2xf32>
    %49 = vector.multi_reduction <add>, %48, %cst_33 [1] : vector<2x16xf32> to vector<2xf32>
    %50 = vector.shape_cast %49 : vector<2xf32> to vector<2x1xf32>
    %51 = tpu.reciprocal %50 {approx = true} : vector<2x1xf32> -> vector<2x1xf32>
    %52 = vector.broadcast %51 : vector<2x1xf32> to vector<2x16xf32>
    %53 = arith.mulf %48, %52 : vector<2x16xf32>
    %54 = vector.shape_cast %53 : vector<2x16xf32> to vector<2x16x1xf32>
    %55 = vector.broadcast %54 : vector<2x16x1xf32> to vector<2x16x32xf32>
    %56 = arith.mulf %6, %55 : vector<2x16x32xf32>
    %cst_34 = arith.constant dense<0.000000e+00> : vector<2x32xf32>
    %57 = vector.multi_reduction <add>, %56, %cst_34 [1] : vector<2x16x32xf32> to vector<2x32xf32>
    %c0_35 = arith.constant 0 : index
    %c0_36 = arith.constant 0 : index
    %c0_37 = arith.constant 0 : index
    %58 = vector.load %arg1[%c0_35, %c0_36, %c0_37] : memref<7x2x16xf32, #tpu.memory_space<vmem>>, vector<1x2x16xf32>
    %59 = vector.shape_cast %58 : vector<1x2x16xf32> to vector<2x16xf32>
    %c0_38 = arith.constant 0 : index
    %c0_39 = arith.constant 0 : index
    %60 = vector.load %arg12[%c0_38, %c0_39] : memref<16x128xf32, #tpu.memory_space<vmem>>, vector<16x128xf32>
    %cst_40 = arith.constant dense<0.000000e+00> : vector<2x128xf32>
    %61 = tpu.matmul %59, %60, %cst_40 {dimension_numbers = #tpu.dot_dimension_numbers<[1], [0], [0], [1], [0, 0, 1, 1], [], []>} : vector<2x16xf32>, vector<16x128xf32>, vector<2x128xf32> -> vector<2x128xf32>
    %c0_41 = arith.constant 0 : index
    %c0_42 = arith.constant 0 : index
    %62 = vector.load %arg13[%c0_41, %c0_42] : memref<32x128xf32, #tpu.memory_space<vmem>>, vector<32x128xf32>
    %cst_43 = arith.constant dense<0.000000e+00> : vector<2x128xf32>
    %63 = tpu.matmul %57, %62, %cst_43 {dimension_numbers = #tpu.dot_dimension_numbers<[1], [0], [0], [1], [0, 0, 1, 1], [], []>} : vector<2x32xf32>, vector<32x128xf32>, vector<2x128xf32> -> vector<2x128xf32>
    %64 = arith.addf %61, %63 : vector<2x128xf32>
    %c0_44 = arith.constant 0 : index
    %c0_45 = arith.constant 0 : index
    %65 = vector.load %arg15[%c0_44, %c0_45] : memref<32x128xf32, #tpu.memory_space<vmem>>, vector<32x128xf32>
    %cst_46 = arith.constant dense<0.000000e+00> : vector<2x128xf32>
    %66 = tpu.matmul %21, %65, %cst_46 {dimension_numbers = #tpu.dot_dimension_numbers<[1], [0], [0], [1], [0, 0, 1, 1], [], []>} : vector<2x32xf32>, vector<32x128xf32>, vector<2x128xf32> -> vector<2x128xf32>
    %67 = arith.addf %64, %66 : vector<2x128xf32>
    %68 = vector.broadcast %26 : vector<1x128xf32> to vector<2x128xf32>
    %69 = arith.addf %67, %68 : vector<2x128xf32>
    %70 = vector.extract_strided_slice %69 {offsets = [0, 0], sizes = [2, 32], strides = [1, 1]} : vector<2x128xf32> to vector<2x32xf32>
    %71 = arith.negf %70 : vector<2x32xf32>
    %72 = math.exp %71 : vector<2x32xf32>
    %cst_47 = arith.constant 1.000000e+00 : f32
    %73 = vector.broadcast %cst_47 : f32 to vector<2x32xf32>
    %74 = arith.addf %73, %72 : vector<2x32xf32>
    %75 = arith.divf %73, %74 : vector<2x32xf32>
    %76 = vector.extract_strided_slice %69 {offsets = [0, 32], sizes = [2, 32], strides = [1, 1]} : vector<2x128xf32> to vector<2x32xf32>
    %77 = arith.negf %76 : vector<2x32xf32>
    %78 = math.exp %77 : vector<2x32xf32>
    %cst_48 = arith.constant 1.000000e+00 : f32
    %79 = vector.broadcast %cst_48 : f32 to vector<2x32xf32>
    %80 = arith.addf %79, %78 : vector<2x32xf32>
    %81 = arith.divf %79, %80 : vector<2x32xf32>
    %82 = vector.extract_strided_slice %69 {offsets = [0, 64], sizes = [2, 32], strides = [1, 1]} : vector<2x128xf32> to vector<2x32xf32>
    %83 = math.tanh %82 : vector<2x32xf32>
    %84 = vector.extract_strided_slice %69 {offsets = [0, 96], sizes = [2, 32], strides = [1, 1]} : vector<2x128xf32> to vector<2x32xf32>
    %85 = arith.negf %84 : vector<2x32xf32>
    %86 = math.exp %85 : vector<2x32xf32>
    %cst_49 = arith.constant 1.000000e+00 : f32
    %87 = vector.broadcast %cst_49 : f32 to vector<2x32xf32>
    %88 = arith.addf %87, %86 : vector<2x32xf32>
    %89 = arith.divf %87, %88 : vector<2x32xf32>
    %90 = arith.mulf %81, %22 : vector<2x32xf32>
    %91 = arith.mulf %75, %83 : vector<2x32xf32>
    %92 = arith.addf %90, %91 : vector<2x32xf32>
    %93 = math.tanh %92 : vector<2x32xf32>
    %94 = arith.mulf %89, %93 : vector<2x32xf32>
    %c0_50 = arith.constant 0 : index
    %c0_51 = arith.constant 0 : index
    %95 = vector.load %arg17[%c0_50, %c0_51] : memref<32x32xf32, #tpu.memory_space<vmem>>, vector<32x32xf32>
    %cst_52 = arith.constant dense<0.000000e+00> : vector<2x32xf32>
    %96 = tpu.matmul %94, %95, %cst_52 {dimension_numbers = #tpu.dot_dimension_numbers<[1], [0], [0], [1], [0, 0, 1, 1], [], []>} : vector<2x32xf32>, vector<32x32xf32>, vector<2x32xf32> -> vector<2x32xf32>
    %c0_53 = arith.constant 0 : index
    %c0_54 = arith.constant 0 : index
    %97 = vector.load %arg18[%c0_53, %c0_54] : memref<1x32xf32, #tpu.memory_space<vmem>>, vector<1x32xf32>
    %98 = vector.broadcast %97 : vector<1x32xf32> to vector<2x32xf32>
    %99 = arith.addf %96, %98 : vector<2x32xf32>
    %c0_55 = arith.constant 0 : index
    %c0_56 = arith.constant 0 : index
    %c0_57 = arith.constant 0 : index
    %100 = vector.load %arg19[%c0_55, %c0_56, %c0_57] : memref<7x2x32xf32, #tpu.memory_space<vmem>>, vector<1x2x32xf32>
    %101 = vector.shape_cast %100 : vector<1x2x32xf32> to vector<2x32xf32>
    %102 = vector.shape_cast %99 : vector<2x32xf32> to vector<1x2x32xf32>
    tpu.vector_store %arg19[%c0_55, %c0_56, %c0_57], %102 {strides = array<i32>} : memref<7x2x32xf32, #tpu.memory_space<vmem>>, vector<1x2x32xf32>,
    %c0_58 = arith.constant 0 : index
    %c0_59 = arith.constant 0 : index
    %c0_60 = arith.constant 0 : index
    %103 = vector.load %arg20[%c0_58, %c0_59, %c0_60] : memref<7x2x16xf32, #tpu.memory_space<vmem>>, vector<1x2x16xf32>
    %104 = vector.shape_cast %103 : vector<1x2x16xf32> to vector<2x16xf32>
    %105 = vector.shape_cast %53 : vector<2x16xf32> to vector<1x2x16xf32>
    tpu.vector_store %arg20[%c0_58, %c0_59, %c0_60], %105 {strides = array<i32>} : memref<7x2x16xf32, #tpu.memory_space<vmem>>, vector<1x2x16xf32>,
    %c0_61 = arith.constant 0 : index
    %c0_62 = arith.constant 0 : index
    %106 = vector.load %arg6[%c0_61, %c0_62] : memref<32x32xf32, #tpu.memory_space<vmem>>, vector<32x32xf32>
    %cst_63 = arith.constant dense<0.000000e+00> : vector<2x32xf32>
    %107 = tpu.matmul %94, %106, %cst_63 {dimension_numbers = #tpu.dot_dimension_numbers<[1], [0], [0], [1], [0, 0, 1, 1], [], []>} : vector<2x32xf32>, vector<32x32xf32>, vector<2x32xf32> -> vector<2x32xf32>
    %c0_64 = arith.constant 0 : index
    %c0_65 = arith.constant 0 : index
    %108 = vector.load %arg7[%c0_64, %c0_65] : memref<1x32xf32, #tpu.memory_space<vmem>>, vector<1x32xf32>
    %109 = vector.broadcast %108 : vector<1x32xf32> to vector<2x32xf32>
    %110 = arith.addf %107, %109 : vector<2x32xf32>
    %111 = vector.shape_cast %110 : vector<2x32xf32> to vector<2x1x32xf32>
    %112 = vector.broadcast %111 : vector<2x1x32xf32> to vector<2x16x32xf32>
    %113 = arith.addf %12, %112 : vector<2x16x32xf32>
    %cst_66 = arith.constant 0.000000e+00 : f32
    %114 = vector.broadcast %cst_66 : f32 to vector<2x16x32xf32>
    %115 = arith.maximumf %113, %114 : vector<2x16x32xf32>
    %116 = vector.shape_cast %23 : vector<1x32xf32> to vector<1x1x32xf32>
    %117 = vector.broadcast %116 : vector<1x1x32xf32> to vector<2x16x32xf32>
    %118 = arith.mulf %115, %117 : vector<2x16x32xf32>
    %cst_67 = arith.constant dense<0.000000e+00> : vector<2x16xf32>
    %119 = vector.multi_reduction <add>, %118, %cst_67 [2] : vector<2x16x32xf32> to vector<2x16xf32>
    %c0_68 = arith.constant 0 : index
    %c0_69 = arith.constant 0 : index
    %120 = vector.load %arg9[%c0_68, %c0_69] : memref<1x1xf32, #tpu.memory_space<vmem>>, vector<1x1xf32>
    %121 = vector.broadcast %120 : vector<1x1xf32> to vector<2x16xf32>
    %122 = arith.addf %119, %121 : vector<2x16xf32>
    %cst_70 = arith.constant dense<0xFF800000> : vector<2xf32>
    %123 = vector.multi_reduction <maximumf>, %122, %cst_70 [1] : vector<2x16xf32> to vector<2xf32>
    %124 = vector.shape_cast %123 : vector<2xf32> to vector<2x1xf32>
    %125 = vector.broadcast %124 : vector<2x1xf32> to vector<2x16xf32>
    %126 = arith.subf %122, %125 : vector<2x16xf32>
    %127 = math.exp %126 : vector<2x16xf32>
    %cst_71 = arith.constant dense<0.000000e+00> : vector<2xf32>
    %128 = vector.multi_reduction <add>, %127, %cst_71 [1] : vector<2x16xf32> to vector<2xf32>
    %129 = vector.shape_cast %128 : vector<2xf32> to vector<2x1xf32>
    %130 = tpu.reciprocal %129 {approx = true} : vector<2x1xf32> -> vector<2x1xf32>
    %131 = vector.broadcast %130 : vector<2x1xf32> to vector<2x16xf32>
    %132 = arith.mulf %127, %131 : vector<2x16xf32>
    %133 = vector.shape_cast %132 : vector<2x16xf32> to vector<2x16x1xf32>
    %134 = vector.broadcast %133 : vector<2x16x1xf32> to vector<2x16x32xf32>
    %135 = arith.mulf %6, %134 : vector<2x16x32xf32>
    %cst_72 = arith.constant dense<0.000000e+00> : vector<2x32xf32>
    %136 = vector.multi_reduction <add>, %135, %cst_72 [1] : vector<2x16x32xf32> to vector<2x32xf32>
    %c1 = arith.constant 1 : index
    %c0_73 = arith.constant 0 : index
    %c0_74 = arith.constant 0 : index
    %137 = vector.load %arg1[%c1, %c0_73, %c0_74] : memref<7x2x16xf32, #tpu.memory_space<vmem>>, vector<1x2x16xf32>
    %138 = vector.shape_cast %137 : vector<1x2x16xf32> to vector<2x16xf32>
    %c0_75 = arith.constant 0 : index
    %c0_76 = arith.constant 0 : index
    %139 = vector.load %arg12[%c0_75, %c0_76] : memref<16x128xf32, #tpu.memory_space<vmem>>, vector<16x128xf32>
    %cst_77 = arith.constant dense<0.000000e+00> : vector<2x128xf32>
    %140 = tpu.matmul %138, %139, %cst_77 {dimension_numbers = #tpu.dot_dimension_numbers<[1], [0], [0], [1], [0, 0, 1, 1], [], []>} : vector<2x16xf32>, vector<16x128xf32>, vector<2x128xf32> -> vector<2x128xf32>
    %c0_78 = arith.constant 0 : index
    %c0_79 = arith.constant 0 : index
    %141 = vector.load %arg13[%c0_78, %c0_79] : memref<32x128xf32, #tpu.memory_space<vmem>>, vector<32x128xf32>
    %cst_80 = arith.constant dense<0.000000e+00> : vector<2x128xf32>
    %142 = tpu.matmul %136, %141, %cst_80 {dimension_numbers = #tpu.dot_dimension_numbers<[1], [0], [0], [1], [0, 0, 1, 1], [], []>} : vector<2x32xf32>, vector<32x128xf32>, vector<2x128xf32> -> vector<2x128xf32>
    %143 = arith.addf %140, %142 : vector<2x128xf32>
    %c0_81 = arith.constant 0 : index
    %c0_82 = arith.constant 0 : index
    %144 = vector.load %arg15[%c0_81, %c0_82] : memref<32x128xf32, #tpu.memory_space<vmem>>, vector<32x128xf32>
    %cst_83 = arith.constant dense<0.000000e+00> : vector<2x128xf32>
    %145 = tpu.matmul %94, %144, %cst_83 {dimension_numbers = #tpu.dot_dimension_numbers<[1], [0], [0], [1], [0, 0, 1, 1], [], []>} : vector<2x32xf32>, vector<32x128xf32>, vector<2x128xf32> -> vector<2x128xf32>
    %146 = arith.addf %143, %145 : vector<2x128xf32>
    %147 = vector.broadcast %26 : vector<1x128xf32> to vector<2x128xf32>
    %148 = arith.addf %146, %147 : vector<2x128xf32>
    %149 = vector.extract_strided_slice %148 {offsets = [0, 0], sizes = [2, 32], strides = [1, 1]} : vector<2x128xf32> to vector<2x32xf32>
    %150 = arith.negf %149 : vector<2x32xf32>
    %151 = math.exp %150 : vector<2x32xf32>
    %cst_84 = arith.constant 1.000000e+00 : f32
    %152 = vector.broadcast %cst_84 : f32 to vector<2x32xf32>
    %153 = arith.addf %152, %151 : vector<2x32xf32>
    %154 = arith.divf %152, %153 : vector<2x32xf32>
    %155 = vector.extract_strided_slice %148 {offsets = [0, 32], sizes = [2, 32], strides = [1, 1]} : vector<2x128xf32> to vector<2x32xf32>
    %156 = arith.negf %155 : vector<2x32xf32>
    %157 = math.exp %156 : vector<2x32xf32>
    %cst_85 = arith.constant 1.000000e+00 : f32
    %158 = vector.broadcast %cst_85 : f32 to vector<2x32xf32>
    %159 = arith.addf %158, %157 : vector<2x32xf32>
    %160 = arith.divf %158, %159 : vector<2x32xf32>
    %161 = vector.extract_strided_slice %148 {offsets = [0, 64], sizes = [2, 32], strides = [1, 1]} : vector<2x128xf32> to vector<2x32xf32>
    %162 = math.tanh %161 : vector<2x32xf32>
    %163 = vector.extract_strided_slice %148 {offsets = [0, 96], sizes = [2, 32], strides = [1, 1]} : vector<2x128xf32> to vector<2x32xf32>
    %164 = arith.negf %163 : vector<2x32xf32>
    %165 = math.exp %164 : vector<2x32xf32>
    %cst_86 = arith.constant 1.000000e+00 : f32
    %166 = vector.broadcast %cst_86 : f32 to vector<2x32xf32>
    %167 = arith.addf %166, %165 : vector<2x32xf32>
    %168 = arith.divf %166, %167 : vector<2x32xf32>
    %169 = arith.mulf %160, %92 : vector<2x32xf32>
    %170 = arith.mulf %154, %162 : vector<2x32xf32>
    %171 = arith.addf %169, %170 : vector<2x32xf32>
    %172 = math.tanh %171 : vector<2x32xf32>
    %173 = arith.mulf %168, %172 : vector<2x32xf32>
    %c0_87 = arith.constant 0 : index
    %c0_88 = arith.constant 0 : index
    %174 = vector.load %arg17[%c0_87, %c0_88] : memref<32x32xf32, #tpu.memory_space<vmem>>, vector<32x32xf32>
    %cst_89 = arith.constant dense<0.000000e+00> : vector<2x32xf32>
    %175 = tpu.matmul %173, %174, %cst_89 {dimension_numbers = #tpu.dot_dimension_numbers<[1], [0], [0], [1], [0, 0, 1, 1], [], []>} : vector<2x32xf32>, vector<32x32xf32>, vector<2x32xf32> -> vector<2x32xf32>
    %c0_90 = arith.constant 0 : index
    %c0_91 = arith.constant 0 : index
    %176 = vector.load %arg18[%c0_90, %c0_91] : memref<1x32xf32, #tpu.memory_space<vmem>>, vector<1x32xf32>
    %177 = vector.broadcast %176 : vector<1x32xf32> to vector<2x32xf32>
    %178 = arith.addf %175, %177 : vector<2x32xf32>
    %c1_92 = arith.constant 1 : index
    %c0_93 = arith.constant 0 : index
    %c0_94 = arith.constant 0 : index
    %179 = vector.load %arg19[%c1_92, %c0_93, %c0_94] : memref<7x2x32xf32, #tpu.memory_space<vmem>>, vector<1x2x32xf32>
    %180 = vector.shape_cast %179 : vector<1x2x32xf32> to vector<2x32xf32>
    %181 = vector.shape_cast %178 : vector<2x32xf32> to vector<1x2x32xf32>
    tpu.vector_store %arg19[%c1_92, %c0_93, %c0_94], %181 {strides = array<i32>} : memref<7x2x32xf32, #tpu.memory_space<vmem>>, vector<1x2x32xf32>,
    %c1_95 = arith.constant 1 : index
    %c0_96 = arith.constant 0 : index
    %c0_97 = arith.constant 0 : index
    %182 = vector.load %arg20[%c1_95, %c0_96, %c0_97] : memref<7x2x16xf32, #tpu.memory_space<vmem>>, vector<1x2x16xf32>
    %183 = vector.shape_cast %182 : vector<1x2x16xf32> to vector<2x16xf32>
    %184 = vector.shape_cast %132 : vector<2x16xf32> to vector<1x2x16xf32>
    tpu.vector_store %arg20[%c1_95, %c0_96, %c0_97], %184 {strides = array<i32>} : memref<7x2x16xf32, #tpu.memory_space<vmem>>, vector<1x2x16xf32>,
    %c0_98 = arith.constant 0 : index
    %c0_99 = arith.constant 0 : index
    %185 = vector.load %arg6[%c0_98, %c0_99] : memref<32x32xf32, #tpu.memory_space<vmem>>, vector<32x32xf32>
    %cst_100 = arith.constant dense<0.000000e+00> : vector<2x32xf32>
    %186 = tpu.matmul %173, %185, %cst_100 {dimension_numbers = #tpu.dot_dimension_numbers<[1], [0], [0], [1], [0, 0, 1, 1], [], []>} : vector<2x32xf32>, vector<32x32xf32>, vector<2x32xf32> -> vector<2x32xf32>
    %c0_101 = arith.constant 0 : index
    %c0_102 = arith.constant 0 : index
    %187 = vector.load %arg7[%c0_101, %c0_102] : memref<1x32xf32, #tpu.memory_space<vmem>>, vector<1x32xf32>
    %188 = vector.broadcast %187 : vector<1x32xf32> to vector<2x32xf32>
    %189 = arith.addf %186, %188 : vector<2x32xf32>
    %190 = vector.shape_cast %189 : vector<2x32xf32> to vector<2x1x32xf32>
    %191 = vector.broadcast %190 : vector<2x1x32xf32> to vector<2x16x32xf32>
    %192 = arith.addf %12, %191 : vector<2x16x32xf32>
    %cst_103 = arith.constant 0.000000e+00 : f32
    %193 = vector.broadcast %cst_103 : f32 to vector<2x16x32xf32>
    %194 = arith.maximumf %192, %193 : vector<2x16x32xf32>
    %195 = vector.shape_cast %23 : vector<1x32xf32> to vector<1x1x32xf32>
    %196 = vector.broadcast %195 : vector<1x1x32xf32> to vector<2x16x32xf32>
    %197 = arith.mulf %194, %196 : vector<2x16x32xf32>
    %cst_104 = arith.constant dense<0.000000e+00> : vector<2x16xf32>
    %198 = vector.multi_reduction <add>, %197, %cst_104 [2] : vector<2x16x32xf32> to vector<2x16xf32>
    %c0_105 = arith.constant 0 : index
    %c0_106 = arith.constant 0 : index
    %199 = vector.load %arg9[%c0_105, %c0_106] : memref<1x1xf32, #tpu.memory_space<vmem>>, vector<1x1xf32>
    %200 = vector.broadcast %199 : vector<1x1xf32> to vector<2x16xf32>
    %201 = arith.addf %198, %200 : vector<2x16xf32>
    %cst_107 = arith.constant dense<0xFF800000> : vector<2xf32>
    %202 = vector.multi_reduction <maximumf>, %201, %cst_107 [1] : vector<2x16xf32> to vector<2xf32>
    %203 = vector.shape_cast %202 : vector<2xf32> to vector<2x1xf32>
    %204 = vector.broadcast %203 : vector<2x1xf32> to vector<2x16xf32>
    %205 = arith.subf %201, %204 : vector<2x16xf32>
    %206 = math.exp %205 : vector<2x16xf32>
    %cst_108 = arith.constant dense<0.000000e+00> : vector<2xf32>
    %207 = vector.multi_reduction <add>, %206, %cst_108 [1] : vector<2x16xf32> to vector<2xf32>
    %208 = vector.shape_cast %207 : vector<2xf32> to vector<2x1xf32>
    %209 = tpu.reciprocal %208 {approx = true} : vector<2x1xf32> -> vector<2x1xf32>
    %210 = vector.broadcast %209 : vector<2x1xf32> to vector<2x16xf32>
    %211 = arith.mulf %206, %210 : vector<2x16xf32>
    %212 = vector.shape_cast %211 : vector<2x16xf32> to vector<2x16x1xf32>
    %213 = vector.broadcast %212 : vector<2x16x1xf32> to vector<2x16x32xf32>
    %214 = arith.mulf %6, %213 : vector<2x16x32xf32>
    %cst_109 = arith.constant dense<0.000000e+00> : vector<2x32xf32>
    %215 = vector.multi_reduction <add>, %214, %cst_109 [1] : vector<2x16x32xf32> to vector<2x32xf32>
    %c2 = arith.constant 2 : index
    %c0_110 = arith.constant 0 : index
    %c0_111 = arith.constant 0 : index
    %216 = vector.load %arg1[%c2, %c0_110, %c0_111] : memref<7x2x16xf32, #tpu.memory_space<vmem>>, vector<1x2x16xf32>
    %217 = vector.shape_cast %216 : vector<1x2x16xf32> to vector<2x16xf32>
    %c0_112 = arith.constant 0 : index
    %c0_113 = arith.constant 0 : index
    %218 = vector.load %arg12[%c0_112, %c0_113] : memref<16x128xf32, #tpu.memory_space<vmem>>, vector<16x128xf32>
    %cst_114 = arith.constant dense<0.000000e+00> : vector<2x128xf32>
    %219 = tpu.matmul %217, %218, %cst_114 {dimension_numbers = #tpu.dot_dimension_numbers<[1], [0], [0], [1], [0, 0, 1, 1], [], []>} : vector<2x16xf32>, vector<16x128xf32>, vector<2x128xf32> -> vector<2x128xf32>
    %c0_115 = arith.constant 0 : index
    %c0_116 = arith.constant 0 : index
    %220 = vector.load %arg13[%c0_115, %c0_116] : memref<32x128xf32, #tpu.memory_space<vmem>>, vector<32x128xf32>
    %cst_117 = arith.constant dense<0.000000e+00> : vector<2x128xf32>
    %221 = tpu.matmul %215, %220, %cst_117 {dimension_numbers = #tpu.dot_dimension_numbers<[1], [0], [0], [1], [0, 0, 1, 1], [], []>} : vector<2x32xf32>, vector<32x128xf32>, vector<2x128xf32> -> vector<2x128xf32>
    %222 = arith.addf %219, %221 : vector<2x128xf32>
    %c0_118 = arith.constant 0 : index
    %c0_119 = arith.constant 0 : index
    %223 = vector.load %arg15[%c0_118, %c0_119] : memref<32x128xf32, #tpu.memory_space<vmem>>, vector<32x128xf32>
    %cst_120 = arith.constant dense<0.000000e+00> : vector<2x128xf32>
    %224 = tpu.matmul %173, %223, %cst_120 {dimension_numbers = #tpu.dot_dimension_numbers<[1], [0], [0], [1], [0, 0, 1, 1], [], []>} : vector<2x32xf32>, vector<32x128xf32>, vector<2x128xf32> -> vector<2x128xf32>
    %225 = arith.addf %222, %224 : vector<2x128xf32>
    %226 = vector.broadcast %26 : vector<1x128xf32> to vector<2x128xf32>
    %227 = arith.addf %225, %226 : vector<2x128xf32>
    %228 = vector.extract_strided_slice %227 {offsets = [0, 0], sizes = [2, 32], strides = [1, 1]} : vector<2x128xf32> to vector<2x32xf32>
    %229 = arith.negf %228 : vector<2x32xf32>
    %230 = math.exp %229 : vector<2x32xf32>
    %cst_121 = arith.constant 1.000000e+00 : f32
    %231 = vector.broadcast %cst_121 : f32 to vector<2x32xf32>
    %232 = arith.addf %231, %230 : vector<2x32xf32>
    %233 = arith.divf %231, %232 : vector<2x32xf32>
    %234 = vector.extract_strided_slice %227 {offsets = [0, 32], sizes = [2, 32], strides = [1, 1]} : vector<2x128xf32> to vector<2x32xf32>
    %235 = arith.negf %234 : vector<2x32xf32>
    %236 = math.exp %235 : vector<2x32xf32>
    %cst_122 = arith.constant 1.000000e+00 : f32
    %237 = vector.broadcast %cst_122 : f32 to vector<2x32xf32>
    %238 = arith.addf %237, %236 : vector<2x32xf32>
    %239 = arith.divf %237, %238 : vector<2x32xf32>
    %240 = vector.extract_strided_slice %227 {offsets = [0, 64], sizes = [2, 32], strides = [1, 1]} : vector<2x128xf32> to vector<2x32xf32>
    %241 = math.tanh %240 : vector<2x32xf32>
    %242 = vector.extract_strided_slice %227 {offsets = [0, 96], sizes = [2, 32], strides = [1, 1]} : vector<2x128xf32> to vector<2x32xf32>
    %243 = arith.negf %242 : vector<2x32xf32>
    %244 = math.exp %243 : vector<2x32xf32>
    %cst_123 = arith.constant 1.000000e+00 : f32
    %245 = vector.broadcast %cst_123 : f32 to vector<2x32xf32>
    %246 = arith.addf %245, %244 : vector<2x32xf32>
    %247 = arith.divf %245, %246 : vector<2x32xf32>
    %248 = arith.mulf %239, %171 : vector<2x32xf32>
    %249 = arith.mulf %233, %241 : vector<2x32xf32>
    %250 = arith.addf %248, %249 : vector<2x32xf32>
    %251 = math.tanh %250 : vector<2x32xf32>
    %252 = arith.mulf %247, %251 : vector<2x32xf32>
    %c0_124 = arith.constant 0 : index
    %c0_125 = arith.constant 0 : index
    %253 = vector.load %arg17[%c0_124, %c0_125] : memref<32x32xf32, #tpu.memory_space<vmem>>, vector<32x32xf32>
    %cst_126 = arith.constant dense<0.000000e+00> : vector<2x32xf32>
    %254 = tpu.matmul %252, %253, %cst_126 {dimension_numbers = #tpu.dot_dimension_numbers<[1], [0], [0], [1], [0, 0, 1, 1], [], []>} : vector<2x32xf32>, vector<32x32xf32>, vector<2x32xf32> -> vector<2x32xf32>
    %c0_127 = arith.constant 0 : index
    %c0_128 = arith.constant 0 : index
    %255 = vector.load %arg18[%c0_127, %c0_128] : memref<1x32xf32, #tpu.memory_space<vmem>>, vector<1x32xf32>
    %256 = vector.broadcast %255 : vector<1x32xf32> to vector<2x32xf32>
    %257 = arith.addf %254, %256 : vector<2x32xf32>
    %c2_129 = arith.constant 2 : index
    %c0_130 = arith.constant 0 : index
    %c0_131 = arith.constant 0 : index
    %258 = vector.load %arg19[%c2_129, %c0_130, %c0_131] : memref<7x2x32xf32, #tpu.memory_space<vmem>>, vector<1x2x32xf32>
    %259 = vector.shape_cast %258 : vector<1x2x32xf32> to vector<2x32xf32>
    %260 = vector.shape_cast %257 : vector<2x32xf32> to vector<1x2x32xf32>
    tpu.vector_store %arg19[%c2_129, %c0_130, %c0_131], %260 {strides = array<i32>} : memref<7x2x32xf32, #tpu.memory_space<vmem>>, vector<1x2x32xf32>,
    %c2_132 = arith.constant 2 : index
    %c0_133 = arith.constant 0 : index
    %c0_134 = arith.constant 0 : index
    %261 = vector.load %arg20[%c2_132, %c0_133, %c0_134] : memref<7x2x16xf32, #tpu.memory_space<vmem>>, vector<1x2x16xf32>
    %262 = vector.shape_cast %261 : vector<1x2x16xf32> to vector<2x16xf32>
    %263 = vector.shape_cast %211 : vector<2x16xf32> to vector<1x2x16xf32>
    tpu.vector_store %arg20[%c2_132, %c0_133, %c0_134], %263 {strides = array<i32>} : memref<7x2x16xf32, #tpu.memory_space<vmem>>, vector<1x2x16xf32>,
    %c0_135 = arith.constant 0 : index
    %c0_136 = arith.constant 0 : index
    %264 = vector.load %arg6[%c0_135, %c0_136] : memref<32x32xf32, #tpu.memory_space<vmem>>, vector<32x32xf32>
    %cst_137 = arith.constant dense<0.000000e+00> : vector<2x32xf32>
    %265 = tpu.matmul %252, %264, %cst_137 {dimension_numbers = #tpu.dot_dimension_numbers<[1], [0], [0], [1], [0, 0, 1, 1], [], []>} : vector<2x32xf32>, vector<32x32xf32>, vector<2x32xf32> -> vector<2x32xf32>
    %c0_138 = arith.constant 0 : index
    %c0_139 = arith.constant 0 : index
    %266 = vector.load %arg7[%c0_138, %c0_139] : memref<1x32xf32, #tpu.memory_space<vmem>>, vector<1x32xf32>
    %267 = vector.broadcast %266 : vector<1x32xf32> to vector<2x32xf32>
    %268 = arith.addf %265, %267 : vector<2x32xf32>
    %269 = vector.shape_cast %268 : vector<2x32xf32> to vector<2x1x32xf32>
    %270 = vector.broadcast %269 : vector<2x1x32xf32> to vector<2x16x32xf32>
    %271 = arith.addf %12, %270 : vector<2x16x32xf32>
    %cst_140 = arith.constant 0.000000e+00 : f32
    %272 = vector.broadcast %cst_140 : f32 to vector<2x16x32xf32>
    %273 = arith.maximumf %271, %272 : vector<2x16x32xf32>
    %274 = vector.shape_cast %23 : vector<1x32xf32> to vector<1x1x32xf32>
    %275 = vector.broadcast %274 : vector<1x1x32xf32> to vector<2x16x32xf32>
    %276 = arith.mulf %273, %275 : vector<2x16x32xf32>
    %cst_141 = arith.constant dense<0.000000e+00> : vector<2x16xf32>
    %277 = vector.multi_reduction <add>, %276, %cst_141 [2] : vector<2x16x32xf32> to vector<2x16xf32>
    %c0_142 = arith.constant 0 : index
    %c0_143 = arith.constant 0 : index
    %278 = vector.load %arg9[%c0_142, %c0_143] : memref<1x1xf32, #tpu.memory_space<vmem>>, vector<1x1xf32>
    %279 = vector.broadcast %278 : vector<1x1xf32> to vector<2x16xf32>
    %280 = arith.addf %277, %279 : vector<2x16xf32>
    %cst_144 = arith.constant dense<0xFF800000> : vector<2xf32>
    %281 = vector.multi_reduction <maximumf>, %280, %cst_144 [1] : vector<2x16xf32> to vector<2xf32>
    %282 = vector.shape_cast %281 : vector<2xf32> to vector<2x1xf32>
    %283 = vector.broadcast %282 : vector<2x1xf32> to vector<2x16xf32>
    %284 = arith.subf %280, %283 : vector<2x16xf32>
    %285 = math.exp %284 : vector<2x16xf32>
    %cst_145 = arith.constant dense<0.000000e+00> : vector<2xf32>
    %286 = vector.multi_reduction <add>, %285, %cst_145 [1] : vector<2x16xf32> to vector<2xf32>
    %287 = vector.shape_cast %286 : vector<2xf32> to vector<2x1xf32>
    %288 = tpu.reciprocal %287 {approx = true} : vector<2x1xf32> -> vector<2x1xf32>
    %289 = vector.broadcast %288 : vector<2x1xf32> to vector<2x16xf32>
    %290 = arith.mulf %285, %289 : vector<2x16xf32>
    %291 = vector.shape_cast %290 : vector<2x16xf32> to vector<2x16x1xf32>
    %292 = vector.broadcast %291 : vector<2x16x1xf32> to vector<2x16x32xf32>
    %293 = arith.mulf %6, %292 : vector<2x16x32xf32>
    %cst_146 = arith.constant dense<0.000000e+00> : vector<2x32xf32>
    %294 = vector.multi_reduction <add>, %293, %cst_146 [1] : vector<2x16x32xf32> to vector<2x32xf32>
    %c3 = arith.constant 3 : index
    %c0_147 = arith.constant 0 : index
    %c0_148 = arith.constant 0 : index
    %295 = vector.load %arg1[%c3, %c0_147, %c0_148] : memref<7x2x16xf32, #tpu.memory_space<vmem>>, vector<1x2x16xf32>
    %296 = vector.shape_cast %295 : vector<1x2x16xf32> to vector<2x16xf32>
    %c0_149 = arith.constant 0 : index
    %c0_150 = arith.constant 0 : index
    %297 = vector.load %arg12[%c0_149, %c0_150] : memref<16x128xf32, #tpu.memory_space<vmem>>, vector<16x128xf32>
    %cst_151 = arith.constant dense<0.000000e+00> : vector<2x128xf32>
    %298 = tpu.matmul %296, %297, %cst_151 {dimension_numbers = #tpu.dot_dimension_numbers<[1], [0], [0], [1], [0, 0, 1, 1], [], []>} : vector<2x16xf32>, vector<16x128xf32>, vector<2x128xf32> -> vector<2x128xf32>
    %c0_152 = arith.constant 0 : index
    %c0_153 = arith.constant 0 : index
    %299 = vector.load %arg13[%c0_152, %c0_153] : memref<32x128xf32, #tpu.memory_space<vmem>>, vector<32x128xf32>
    %cst_154 = arith.constant dense<0.000000e+00> : vector<2x128xf32>
    %300 = tpu.matmul %294, %299, %cst_154 {dimension_numbers = #tpu.dot_dimension_numbers<[1], [0], [0], [1], [0, 0, 1, 1], [], []>} : vector<2x32xf32>, vector<32x128xf32>, vector<2x128xf32> -> vector<2x128xf32>
    %301 = arith.addf %298, %300 : vector<2x128xf32>
    %c0_155 = arith.constant 0 : index
    %c0_156 = arith.constant 0 : index
    %302 = vector.load %arg15[%c0_155, %c0_156] : memref<32x128xf32, #tpu.memory_space<vmem>>, vector<32x128xf32>
    %cst_157 = arith.constant dense<0.000000e+00> : vector<2x128xf32>
    %303 = tpu.matmul %252, %302, %cst_157 {dimension_numbers = #tpu.dot_dimension_numbers<[1], [0], [0], [1], [0, 0, 1, 1], [], []>} : vector<2x32xf32>, vector<32x128xf32>, vector<2x128xf32> -> vector<2x128xf32>
    %304 = arith.addf %301, %303 : vector<2x128xf32>
    %305 = vector.broadcast %26 : vector<1x128xf32> to vector<2x128xf32>
    %306 = arith.addf %304, %305 : vector<2x128xf32>
    %307 = vector.extract_strided_slice %306 {offsets = [0, 0], sizes = [2, 32], strides = [1, 1]} : vector<2x128xf32> to vector<2x32xf32>
    %308 = arith.negf %307 : vector<2x32xf32>
    %309 = math.exp %308 : vector<2x32xf32>
    %cst_158 = arith.constant 1.000000e+00 : f32
    %310 = vector.broadcast %cst_158 : f32 to vector<2x32xf32>
    %311 = arith.addf %310, %309 : vector<2x32xf32>
    %312 = arith.divf %310, %311 : vector<2x32xf32>
    %313 = vector.extract_strided_slice %306 {offsets = [0, 32], sizes = [2, 32], strides = [1, 1]} : vector<2x128xf32> to vector<2x32xf32>
    %314 = arith.negf %313 : vector<2x32xf32>
    %315 = math.exp %314 : vector<2x32xf32>
    %cst_159 = arith.constant 1.000000e+00 : f32
    %316 = vector.broadcast %cst_159 : f32 to vector<2x32xf32>
    %317 = arith.addf %316, %315 : vector<2x32xf32>
    %318 = arith.divf %316, %317 : vector<2x32xf32>
    %319 = vector.extract_strided_slice %306 {offsets = [0, 64], sizes = [2, 32], strides = [1, 1]} : vector<2x128xf32> to vector<2x32xf32>
    %320 = math.tanh %319 : vector<2x32xf32>
    %321 = vector.extract_strided_slice %306 {offsets = [0, 96], sizes = [2, 32], strides = [1, 1]} : vector<2x128xf32> to vector<2x32xf32>
    %322 = arith.negf %321 : vector<2x32xf32>
    %323 = math.exp %322 : vector<2x32xf32>
    %cst_160 = arith.constant 1.000000e+00 : f32
    %324 = vector.broadcast %cst_160 : f32 to vector<2x32xf32>
    %325 = arith.addf %324, %323 : vector<2x32xf32>
    %326 = arith.divf %324, %325 : vector<2x32xf32>
    %327 = arith.mulf %318, %250 : vector<2x32xf32>
    %328 = arith.mulf %312, %320 : vector<2x32xf32>
    %329 = arith.addf %327, %328 : vector<2x32xf32>
    %330 = math.tanh %329 : vector<2x32xf32>
    %331 = arith.mulf %326, %330 : vector<2x32xf32>
    %c0_161 = arith.constant 0 : index
    %c0_162 = arith.constant 0 : index
    %332 = vector.load %arg17[%c0_161, %c0_162] : memref<32x32xf32, #tpu.memory_space<vmem>>, vector<32x32xf32>
    %cst_163 = arith.constant dense<0.000000e+00> : vector<2x32xf32>
    %333 = tpu.matmul %331, %332, %cst_163 {dimension_numbers = #tpu.dot_dimension_numbers<[1], [0], [0], [1], [0, 0, 1, 1], [], []>} : vector<2x32xf32>, vector<32x32xf32>, vector<2x32xf32> -> vector<2x32xf32>
    %c0_164 = arith.constant 0 : index
    %c0_165 = arith.constant 0 : index
    %334 = vector.load %arg18[%c0_164, %c0_165] : memref<1x32xf32, #tpu.memory_space<vmem>>, vector<1x32xf32>
    %335 = vector.broadcast %334 : vector<1x32xf32> to vector<2x32xf32>
    %336 = arith.addf %333, %335 : vector<2x32xf32>
    %c3_166 = arith.constant 3 : index
    %c0_167 = arith.constant 0 : index
    %c0_168 = arith.constant 0 : index
    %337 = vector.load %arg19[%c3_166, %c0_167, %c0_168] : memref<7x2x32xf32, #tpu.memory_space<vmem>>, vector<1x2x32xf32>
    %338 = vector.shape_cast %337 : vector<1x2x32xf32> to vector<2x32xf32>
    %339 = vector.shape_cast %336 : vector<2x32xf32> to vector<1x2x32xf32>
    tpu.vector_store %arg19[%c3_166, %c0_167, %c0_168], %339 {strides = array<i32>} : memref<7x2x32xf32, #tpu.memory_space<vmem>>, vector<1x2x32xf32>,
    %c3_169 = arith.constant 3 : index
    %c0_170 = arith.constant 0 : index
    %c0_171 = arith.constant 0 : index
    %340 = vector.load %arg20[%c3_169, %c0_170, %c0_171] : memref<7x2x16xf32, #tpu.memory_space<vmem>>, vector<1x2x16xf32>
    %341 = vector.shape_cast %340 : vector<1x2x16xf32> to vector<2x16xf32>
    %342 = vector.shape_cast %290 : vector<2x16xf32> to vector<1x2x16xf32>
    tpu.vector_store %arg20[%c3_169, %c0_170, %c0_171], %342 {strides = array<i32>} : memref<7x2x16xf32, #tpu.memory_space<vmem>>, vector<1x2x16xf32>,
    %c0_172 = arith.constant 0 : index
    %c0_173 = arith.constant 0 : index
    %343 = vector.load %arg6[%c0_172, %c0_173] : memref<32x32xf32, #tpu.memory_space<vmem>>, vector<32x32xf32>
    %cst_174 = arith.constant dense<0.000000e+00> : vector<2x32xf32>
    %344 = tpu.matmul %331, %343, %cst_174 {dimension_numbers = #tpu.dot_dimension_numbers<[1], [0], [0], [1], [0, 0, 1, 1], [], []>} : vector<2x32xf32>, vector<32x32xf32>, vector<2x32xf32> -> vector<2x32xf32>
    %c0_175 = arith.constant 0 : index
    %c0_176 = arith.constant 0 : index
    %345 = vector.load %arg7[%c0_175, %c0_176] : memref<1x32xf32, #tpu.memory_space<vmem>>, vector<1x32xf32>
    %346 = vector.broadcast %345 : vector<1x32xf32> to vector<2x32xf32>
    %347 = arith.addf %344, %346 : vector<2x32xf32>
    %348 = vector.shape_cast %347 : vector<2x32xf32> to vector<2x1x32xf32>
    %349 = vector.broadcast %348 : vector<2x1x32xf32> to vector<2x16x32xf32>
    %350 = arith.addf %12, %349 : vector<2x16x32xf32>
    %cst_177 = arith.constant 0.000000e+00 : f32
    %351 = vector.broadcast %cst_177 : f32 to vector<2x16x32xf32>
    %352 = arith.maximumf %350, %351 : vector<2x16x32xf32>
    %353 = vector.shape_cast %23 : vector<1x32xf32> to vector<1x1x32xf32>
    %354 = vector.broadcast %353 : vector<1x1x32xf32> to vector<2x16x32xf32>
    %355 = arith.mulf %352, %354 : vector<2x16x32xf32>
    %cst_178 = arith.constant dense<0.000000e+00> : vector<2x16xf32>
    %356 = vector.multi_reduction <add>, %355, %cst_178 [2] : vector<2x16x32xf32> to vector<2x16xf32>
    %c0_179 = arith.constant 0 : index
    %c0_180 = arith.constant 0 : index
    %357 = vector.load %arg9[%c0_179, %c0_180] : memref<1x1xf32, #tpu.memory_space<vmem>>, vector<1x1xf32>
    %358 = vector.broadcast %357 : vector<1x1xf32> to vector<2x16xf32>
    %359 = arith.addf %356, %358 : vector<2x16xf32>
    %cst_181 = arith.constant dense<0xFF800000> : vector<2xf32>
    %360 = vector.multi_reduction <maximumf>, %359, %cst_181 [1] : vector<2x16xf32> to vector<2xf32>
    %361 = vector.shape_cast %360 : vector<2xf32> to vector<2x1xf32>
    %362 = vector.broadcast %361 : vector<2x1xf32> to vector<2x16xf32>
    %363 = arith.subf %359, %362 : vector<2x16xf32>
    %364 = math.exp %363 : vector<2x16xf32>
    %cst_182 = arith.constant dense<0.000000e+00> : vector<2xf32>
    %365 = vector.multi_reduction <add>, %364, %cst_182 [1] : vector<2x16xf32> to vector<2xf32>
    %366 = vector.shape_cast %365 : vector<2xf32> to vector<2x1xf32>
    %367 = tpu.reciprocal %366 {approx = true} : vector<2x1xf32> -> vector<2x1xf32>
    %368 = vector.broadcast %367 : vector<2x1xf32> to vector<2x16xf32>
    %369 = arith.mulf %364, %368 : vector<2x16xf32>
    %370 = vector.shape_cast %369 : vector<2x16xf32> to vector<2x16x1xf32>
    %371 = vector.broadcast %370 : vector<2x16x1xf32> to vector<2x16x32xf32>
    %372 = arith.mulf %6, %371 : vector<2x16x32xf32>
    %cst_183 = arith.constant dense<0.000000e+00> : vector<2x32xf32>
    %373 = vector.multi_reduction <add>, %372, %cst_183 [1] : vector<2x16x32xf32> to vector<2x32xf32>
    %c4 = arith.constant 4 : index
    %c0_184 = arith.constant 0 : index
    %c0_185 = arith.constant 0 : index
    %374 = vector.load %arg1[%c4, %c0_184, %c0_185] : memref<7x2x16xf32, #tpu.memory_space<vmem>>, vector<1x2x16xf32>
    %375 = vector.shape_cast %374 : vector<1x2x16xf32> to vector<2x16xf32>
    %c0_186 = arith.constant 0 : index
    %c0_187 = arith.constant 0 : index
    %376 = vector.load %arg12[%c0_186, %c0_187] : memref<16x128xf32, #tpu.memory_space<vmem>>, vector<16x128xf32>
    %cst_188 = arith.constant dense<0.000000e+00> : vector<2x128xf32>
    %377 = tpu.matmul %375, %376, %cst_188 {dimension_numbers = #tpu.dot_dimension_numbers<[1], [0], [0], [1], [0, 0, 1, 1], [], []>} : vector<2x16xf32>, vector<16x128xf32>, vector<2x128xf32> -> vector<2x128xf32>
    %c0_189 = arith.constant 0 : index
    %c0_190 = arith.constant 0 : index
    %378 = vector.load %arg13[%c0_189, %c0_190] : memref<32x128xf32, #tpu.memory_space<vmem>>, vector<32x128xf32>
    %cst_191 = arith.constant dense<0.000000e+00> : vector<2x128xf32>
    %379 = tpu.matmul %373, %378, %cst_191 {dimension_numbers = #tpu.dot_dimension_numbers<[1], [0], [0], [1], [0, 0, 1, 1], [], []>} : vector<2x32xf32>, vector<32x128xf32>, vector<2x128xf32> -> vector<2x128xf32>
    %380 = arith.addf %377, %379 : vector<2x128xf32>
    %c0_192 = arith.constant 0 : index
    %c0_193 = arith.constant 0 : index
    %381 = vector.load %arg15[%c0_192, %c0_193] : memref<32x128xf32, #tpu.memory_space<vmem>>, vector<32x128xf32>
    %cst_194 = arith.constant dense<0.000000e+00> : vector<2x128xf32>
    %382 = tpu.matmul %331, %381, %cst_194 {dimension_numbers = #tpu.dot_dimension_numbers<[1], [0], [0], [1], [0, 0, 1, 1], [], []>} : vector<2x32xf32>, vector<32x128xf32>, vector<2x128xf32> -> vector<2x128xf32>
    %383 = arith.addf %380, %382 : vector<2x128xf32>
    %384 = vector.broadcast %26 : vector<1x128xf32> to vector<2x128xf32>
    %385 = arith.addf %383, %384 : vector<2x128xf32>
    %386 = vector.extract_strided_slice %385 {offsets = [0, 0], sizes = [2, 32], strides = [1, 1]} : vector<2x128xf32> to vector<2x32xf32>
    %387 = arith.negf %386 : vector<2x32xf32>
    %388 = math.exp %387 : vector<2x32xf32>
    %cst_195 = arith.constant 1.000000e+00 : f32
    %389 = vector.broadcast %cst_195 : f32 to vector<2x32xf32>
    %390 = arith.addf %389, %388 : vector<2x32xf32>
    %391 = arith.divf %389, %390 : vector<2x32xf32>
    %392 = vector.extract_strided_slice %385 {offsets = [0, 32], sizes = [2, 32], strides = [1, 1]} : vector<2x128xf32> to vector<2x32xf32>
    %393 = arith.negf %392 : vector<2x32xf32>
    %394 = math.exp %393 : vector<2x32xf32>
    %cst_196 = arith.constant 1.000000e+00 : f32
    %395 = vector.broadcast %cst_196 : f32 to vector<2x32xf32>
    %396 = arith.addf %395, %394 : vector<2x32xf32>
    %397 = arith.divf %395, %396 : vector<2x32xf32>
    %398 = vector.extract_strided_slice %385 {offsets = [0, 64], sizes = [2, 32], strides = [1, 1]} : vector<2x128xf32> to vector<2x32xf32>
    %399 = math.tanh %398 : vector<2x32xf32>
    %400 = vector.extract_strided_slice %385 {offsets = [0, 96], sizes = [2, 32], strides = [1, 1]} : vector<2x128xf32> to vector<2x32xf32>
    %401 = arith.negf %400 : vector<2x32xf32>
    %402 = math.exp %401 : vector<2x32xf32>
    %cst_197 = arith.constant 1.000000e+00 : f32
    %403 = vector.broadcast %cst_197 : f32 to vector<2x32xf32>
    %404 = arith.addf %403, %402 : vector<2x32xf32>
    %405 = arith.divf %403, %404 : vector<2x32xf32>
    %406 = arith.mulf %397, %329 : vector<2x32xf32>
    %407 = arith.mulf %391, %399 : vector<2x32xf32>
    %408 = arith.addf %406, %407 : vector<2x32xf32>
    %409 = math.tanh %408 : vector<2x32xf32>
    %410 = arith.mulf %405, %409 : vector<2x32xf32>
    %c0_198 = arith.constant 0 : index
    %c0_199 = arith.constant 0 : index
    %411 = vector.load %arg17[%c0_198, %c0_199] : memref<32x32xf32, #tpu.memory_space<vmem>>, vector<32x32xf32>
    %cst_200 = arith.constant dense<0.000000e+00> : vector<2x32xf32>
    %412 = tpu.matmul %410, %411, %cst_200 {dimension_numbers = #tpu.dot_dimension_numbers<[1], [0], [0], [1], [0, 0, 1, 1], [], []>} : vector<2x32xf32>, vector<32x32xf32>, vector<2x32xf32> -> vector<2x32xf32>
    %c0_201 = arith.constant 0 : index
    %c0_202 = arith.constant 0 : index
    %413 = vector.load %arg18[%c0_201, %c0_202] : memref<1x32xf32, #tpu.memory_space<vmem>>, vector<1x32xf32>
    %414 = vector.broadcast %413 : vector<1x32xf32> to vector<2x32xf32>
    %415 = arith.addf %412, %414 : vector<2x32xf32>
    %c4_203 = arith.constant 4 : index
    %c0_204 = arith.constant 0 : index
    %c0_205 = arith.constant 0 : index
    %416 = vector.load %arg19[%c4_203, %c0_204, %c0_205] : memref<7x2x32xf32, #tpu.memory_space<vmem>>, vector<1x2x32xf32>
    %417 = vector.shape_cast %416 : vector<1x2x32xf32> to vector<2x32xf32>
    %418 = vector.shape_cast %415 : vector<2x32xf32> to vector<1x2x32xf32>
    tpu.vector_store %arg19[%c4_203, %c0_204, %c0_205], %418 {strides = array<i32>} : memref<7x2x32xf32, #tpu.memory_space<vmem>>, vector<1x2x32xf32>,
    %c4_206 = arith.constant 4 : index
    %c0_207 = arith.constant 0 : index
    %c0_208 = arith.constant 0 : index
    %419 = vector.load %arg20[%c4_206, %c0_207, %c0_208] : memref<7x2x16xf32, #tpu.memory_space<vmem>>, vector<1x2x16xf32>
    %420 = vector.shape_cast %419 : vector<1x2x16xf32> to vector<2x16xf32>
    %421 = vector.shape_cast %369 : vector<2x16xf32> to vector<1x2x16xf32>
    tpu.vector_store %arg20[%c4_206, %c0_207, %c0_208], %421 {strides = array<i32>} : memref<7x2x16xf32, #tpu.memory_space<vmem>>, vector<1x2x16xf32>,
    %c0_209 = arith.constant 0 : index
    %c0_210 = arith.constant 0 : index
    %422 = vector.load %arg6[%c0_209, %c0_210] : memref<32x32xf32, #tpu.memory_space<vmem>>, vector<32x32xf32>
    %cst_211 = arith.constant dense<0.000000e+00> : vector<2x32xf32>
    %423 = tpu.matmul %410, %422, %cst_211 {dimension_numbers = #tpu.dot_dimension_numbers<[1], [0], [0], [1], [0, 0, 1, 1], [], []>} : vector<2x32xf32>, vector<32x32xf32>, vector<2x32xf32> -> vector<2x32xf32>
    %c0_212 = arith.constant 0 : index
    %c0_213 = arith.constant 0 : index
    %424 = vector.load %arg7[%c0_212, %c0_213] : memref<1x32xf32, #tpu.memory_space<vmem>>, vector<1x32xf32>
    %425 = vector.broadcast %424 : vector<1x32xf32> to vector<2x32xf32>
    %426 = arith.addf %423, %425 : vector<2x32xf32>
    %427 = vector.shape_cast %426 : vector<2x32xf32> to vector<2x1x32xf32>
    %428 = vector.broadcast %427 : vector<2x1x32xf32> to vector<2x16x32xf32>
    %429 = arith.addf %12, %428 : vector<2x16x32xf32>
    %cst_214 = arith.constant 0.000000e+00 : f32
    %430 = vector.broadcast %cst_214 : f32 to vector<2x16x32xf32>
    %431 = arith.maximumf %429, %430 : vector<2x16x32xf32>
    %432 = vector.shape_cast %23 : vector<1x32xf32> to vector<1x1x32xf32>
    %433 = vector.broadcast %432 : vector<1x1x32xf32> to vector<2x16x32xf32>
    %434 = arith.mulf %431, %433 : vector<2x16x32xf32>
    %cst_215 = arith.constant dense<0.000000e+00> : vector<2x16xf32>
    %435 = vector.multi_reduction <add>, %434, %cst_215 [2] : vector<2x16x32xf32> to vector<2x16xf32>
    %c0_216 = arith.constant 0 : index
    %c0_217 = arith.constant 0 : index
    %436 = vector.load %arg9[%c0_216, %c0_217] : memref<1x1xf32, #tpu.memory_space<vmem>>, vector<1x1xf32>
    %437 = vector.broadcast %436 : vector<1x1xf32> to vector<2x16xf32>
    %438 = arith.addf %435, %437 : vector<2x16xf32>
    %cst_218 = arith.constant dense<0xFF800000> : vector<2xf32>
    %439 = vector.multi_reduction <maximumf>, %438, %cst_218 [1] : vector<2x16xf32> to vector<2xf32>
    %440 = vector.shape_cast %439 : vector<2xf32> to vector<2x1xf32>
    %441 = vector.broadcast %440 : vector<2x1xf32> to vector<2x16xf32>
    %442 = arith.subf %438, %441 : vector<2x16xf32>
    %443 = math.exp %442 : vector<2x16xf32>
    %cst_219 = arith.constant dense<0.000000e+00> : vector<2xf32>
    %444 = vector.multi_reduction <add>, %443, %cst_219 [1] : vector<2x16xf32> to vector<2xf32>
    %445 = vector.shape_cast %444 : vector<2xf32> to vector<2x1xf32>
    %446 = tpu.reciprocal %445 {approx = true} : vector<2x1xf32> -> vector<2x1xf32>
    %447 = vector.broadcast %446 : vector<2x1xf32> to vector<2x16xf32>
    %448 = arith.mulf %443, %447 : vector<2x16xf32>
    %449 = vector.shape_cast %448 : vector<2x16xf32> to vector<2x16x1xf32>
    %450 = vector.broadcast %449 : vector<2x16x1xf32> to vector<2x16x32xf32>
    %451 = arith.mulf %6, %450 : vector<2x16x32xf32>
    %cst_220 = arith.constant dense<0.000000e+00> : vector<2x32xf32>
    %452 = vector.multi_reduction <add>, %451, %cst_220 [1] : vector<2x16x32xf32> to vector<2x32xf32>
    %c5 = arith.constant 5 : index
    %c0_221 = arith.constant 0 : index
    %c0_222 = arith.constant 0 : index
    %453 = vector.load %arg1[%c5, %c0_221, %c0_222] : memref<7x2x16xf32, #tpu.memory_space<vmem>>, vector<1x2x16xf32>
    %454 = vector.shape_cast %453 : vector<1x2x16xf32> to vector<2x16xf32>
    %c0_223 = arith.constant 0 : index
    %c0_224 = arith.constant 0 : index
    %455 = vector.load %arg12[%c0_223, %c0_224] : memref<16x128xf32, #tpu.memory_space<vmem>>, vector<16x128xf32>
    %cst_225 = arith.constant dense<0.000000e+00> : vector<2x128xf32>
    %456 = tpu.matmul %454, %455, %cst_225 {dimension_numbers = #tpu.dot_dimension_numbers<[1], [0], [0], [1], [0, 0, 1, 1], [], []>} : vector<2x16xf32>, vector<16x128xf32>, vector<2x128xf32> -> vector<2x128xf32>
    %c0_226 = arith.constant 0 : index
    %c0_227 = arith.constant 0 : index
    %457 = vector.load %arg13[%c0_226, %c0_227] : memref<32x128xf32, #tpu.memory_space<vmem>>, vector<32x128xf32>
    %cst_228 = arith.constant dense<0.000000e+00> : vector<2x128xf32>
    %458 = tpu.matmul %452, %457, %cst_228 {dimension_numbers = #tpu.dot_dimension_numbers<[1], [0], [0], [1], [0, 0, 1, 1], [], []>} : vector<2x32xf32>, vector<32x128xf32>, vector<2x128xf32> -> vector<2x128xf32>
    %459 = arith.addf %456, %458 : vector<2x128xf32>
    %c0_229 = arith.constant 0 : index
    %c0_230 = arith.constant 0 : index
    %460 = vector.load %arg15[%c0_229, %c0_230] : memref<32x128xf32, #tpu.memory_space<vmem>>, vector<32x128xf32>
    %cst_231 = arith.constant dense<0.000000e+00> : vector<2x128xf32>
    %461 = tpu.matmul %410, %460, %cst_231 {dimension_numbers = #tpu.dot_dimension_numbers<[1], [0], [0], [1], [0, 0, 1, 1], [], []>} : vector<2x32xf32>, vector<32x128xf32>, vector<2x128xf32> -> vector<2x128xf32>
    %462 = arith.addf %459, %461 : vector<2x128xf32>
    %463 = vector.broadcast %26 : vector<1x128xf32> to vector<2x128xf32>
    %464 = arith.addf %462, %463 : vector<2x128xf32>
    %465 = vector.extract_strided_slice %464 {offsets = [0, 0], sizes = [2, 32], strides = [1, 1]} : vector<2x128xf32> to vector<2x32xf32>
    %466 = arith.negf %465 : vector<2x32xf32>
    %467 = math.exp %466 : vector<2x32xf32>
    %cst_232 = arith.constant 1.000000e+00 : f32
    %468 = vector.broadcast %cst_232 : f32 to vector<2x32xf32>
    %469 = arith.addf %468, %467 : vector<2x32xf32>
    %470 = arith.divf %468, %469 : vector<2x32xf32>
    %471 = vector.extract_strided_slice %464 {offsets = [0, 32], sizes = [2, 32], strides = [1, 1]} : vector<2x128xf32> to vector<2x32xf32>
    %472 = arith.negf %471 : vector<2x32xf32>
    %473 = math.exp %472 : vector<2x32xf32>
    %cst_233 = arith.constant 1.000000e+00 : f32
    %474 = vector.broadcast %cst_233 : f32 to vector<2x32xf32>
    %475 = arith.addf %474, %473 : vector<2x32xf32>
    %476 = arith.divf %474, %475 : vector<2x32xf32>
    %477 = vector.extract_strided_slice %464 {offsets = [0, 64], sizes = [2, 32], strides = [1, 1]} : vector<2x128xf32> to vector<2x32xf32>
    %478 = math.tanh %477 : vector<2x32xf32>
    %479 = vector.extract_strided_slice %464 {offsets = [0, 96], sizes = [2, 32], strides = [1, 1]} : vector<2x128xf32> to vector<2x32xf32>
    %480 = arith.negf %479 : vector<2x32xf32>
    %481 = math.exp %480 : vector<2x32xf32>
    %cst_234 = arith.constant 1.000000e+00 : f32
    %482 = vector.broadcast %cst_234 : f32 to vector<2x32xf32>
    %483 = arith.addf %482, %481 : vector<2x32xf32>
    %484 = arith.divf %482, %483 : vector<2x32xf32>
    %485 = arith.mulf %476, %408 : vector<2x32xf32>
    %486 = arith.mulf %470, %478 : vector<2x32xf32>
    %487 = arith.addf %485, %486 : vector<2x32xf32>
    %488 = math.tanh %487 : vector<2x32xf32>
    %489 = arith.mulf %484, %488 : vector<2x32xf32>
    %c0_235 = arith.constant 0 : index
    %c0_236 = arith.constant 0 : index
    %490 = vector.load %arg17[%c0_235, %c0_236] : memref<32x32xf32, #tpu.memory_space<vmem>>, vector<32x32xf32>
    %cst_237 = arith.constant dense<0.000000e+00> : vector<2x32xf32>
    %491 = tpu.matmul %489, %490, %cst_237 {dimension_numbers = #tpu.dot_dimension_numbers<[1], [0], [0], [1], [0, 0, 1, 1], [], []>} : vector<2x32xf32>, vector<32x32xf32>, vector<2x32xf32> -> vector<2x32xf32>
    %c0_238 = arith.constant 0 : index
    %c0_239 = arith.constant 0 : index
    %492 = vector.load %arg18[%c0_238, %c0_239] : memref<1x32xf32, #tpu.memory_space<vmem>>, vector<1x32xf32>
    %493 = vector.broadcast %492 : vector<1x32xf32> to vector<2x32xf32>
    %494 = arith.addf %491, %493 : vector<2x32xf32>
    %c5_240 = arith.constant 5 : index
    %c0_241 = arith.constant 0 : index
    %c0_242 = arith.constant 0 : index
    %495 = vector.load %arg19[%c5_240, %c0_241, %c0_242] : memref<7x2x32xf32, #tpu.memory_space<vmem>>, vector<1x2x32xf32>
    %496 = vector.shape_cast %495 : vector<1x2x32xf32> to vector<2x32xf32>
    %497 = vector.shape_cast %494 : vector<2x32xf32> to vector<1x2x32xf32>
    tpu.vector_store %arg19[%c5_240, %c0_241, %c0_242], %497 {strides = array<i32>} : memref<7x2x32xf32, #tpu.memory_space<vmem>>, vector<1x2x32xf32>,
    %c5_243 = arith.constant 5 : index
    %c0_244 = arith.constant 0 : index
    %c0_245 = arith.constant 0 : index
    %498 = vector.load %arg20[%c5_243, %c0_244, %c0_245] : memref<7x2x16xf32, #tpu.memory_space<vmem>>, vector<1x2x16xf32>
    %499 = vector.shape_cast %498 : vector<1x2x16xf32> to vector<2x16xf32>
    %500 = vector.shape_cast %448 : vector<2x16xf32> to vector<1x2x16xf32>
    tpu.vector_store %arg20[%c5_243, %c0_244, %c0_245], %500 {strides = array<i32>} : memref<7x2x16xf32, #tpu.memory_space<vmem>>, vector<1x2x16xf32>,
    %c0_246 = arith.constant 0 : index
    %c0_247 = arith.constant 0 : index
    %501 = vector.load %arg6[%c0_246, %c0_247] : memref<32x32xf32, #tpu.memory_space<vmem>>, vector<32x32xf32>
    %cst_248 = arith.constant dense<0.000000e+00> : vector<2x32xf32>
    %502 = tpu.matmul %489, %501, %cst_248 {dimension_numbers = #tpu.dot_dimension_numbers<[1], [0], [0], [1], [0, 0, 1, 1], [], []>} : vector<2x32xf32>, vector<32x32xf32>, vector<2x32xf32> -> vector<2x32xf32>
    %c0_249 = arith.constant 0 : index
    %c0_250 = arith.constant 0 : index
    %503 = vector.load %arg7[%c0_249, %c0_250] : memref<1x32xf32, #tpu.memory_space<vmem>>, vector<1x32xf32>
    %504 = vector.broadcast %503 : vector<1x32xf32> to vector<2x32xf32>
    %505 = arith.addf %502, %504 : vector<2x32xf32>
    %506 = vector.shape_cast %505 : vector<2x32xf32> to vector<2x1x32xf32>
    %507 = vector.broadcast %506 : vector<2x1x32xf32> to vector<2x16x32xf32>
    %508 = arith.addf %12, %507 : vector<2x16x32xf32>
    %cst_251 = arith.constant 0.000000e+00 : f32
    %509 = vector.broadcast %cst_251 : f32 to vector<2x16x32xf32>
    %510 = arith.maximumf %508, %509 : vector<2x16x32xf32>
    %511 = vector.shape_cast %23 : vector<1x32xf32> to vector<1x1x32xf32>
    %512 = vector.broadcast %511 : vector<1x1x32xf32> to vector<2x16x32xf32>
    %513 = arith.mulf %510, %512 : vector<2x16x32xf32>
    %cst_252 = arith.constant dense<0.000000e+00> : vector<2x16xf32>
    %514 = vector.multi_reduction <add>, %513, %cst_252 [2] : vector<2x16x32xf32> to vector<2x16xf32>
    %c0_253 = arith.constant 0 : index
    %c0_254 = arith.constant 0 : index
    %515 = vector.load %arg9[%c0_253, %c0_254] : memref<1x1xf32, #tpu.memory_space<vmem>>, vector<1x1xf32>
    %516 = vector.broadcast %515 : vector<1x1xf32> to vector<2x16xf32>
    %517 = arith.addf %514, %516 : vector<2x16xf32>
    %cst_255 = arith.constant dense<0xFF800000> : vector<2xf32>
    %518 = vector.multi_reduction <maximumf>, %517, %cst_255 [1] : vector<2x16xf32> to vector<2xf32>
    %519 = vector.shape_cast %518 : vector<2xf32> to vector<2x1xf32>
    %520 = vector.broadcast %519 : vector<2x1xf32> to vector<2x16xf32>
    %521 = arith.subf %517, %520 : vector<2x16xf32>
    %522 = math.exp %521 : vector<2x16xf32>
    %cst_256 = arith.constant dense<0.000000e+00> : vector<2xf32>
    %523 = vector.multi_reduction <add>, %522, %cst_256 [1] : vector<2x16xf32> to vector<2xf32>
    %524 = vector.shape_cast %523 : vector<2xf32> to vector<2x1xf32>
    %525 = tpu.reciprocal %524 {approx = true} : vector<2x1xf32> -> vector<2x1xf32>
    %526 = vector.broadcast %525 : vector<2x1xf32> to vector<2x16xf32>
    %527 = arith.mulf %522, %526 : vector<2x16xf32>
    %528 = vector.shape_cast %527 : vector<2x16xf32> to vector<2x16x1xf32>
    %529 = vector.broadcast %528 : vector<2x16x1xf32> to vector<2x16x32xf32>
    %530 = arith.mulf %6, %529 : vector<2x16x32xf32>
    %cst_257 = arith.constant dense<0.000000e+00> : vector<2x32xf32>
    %531 = vector.multi_reduction <add>, %530, %cst_257 [1] : vector<2x16x32xf32> to vector<2x32xf32>
    %c6 = arith.constant 6 : index
    %c0_258 = arith.constant 0 : index
    %c0_259 = arith.constant 0 : index
    %532 = vector.load %arg1[%c6, %c0_258, %c0_259] : memref<7x2x16xf32, #tpu.memory_space<vmem>>, vector<1x2x16xf32>
    %533 = vector.shape_cast %532 : vector<1x2x16xf32> to vector<2x16xf32>
    %c0_260 = arith.constant 0 : index
    %c0_261 = arith.constant 0 : index
    %534 = vector.load %arg12[%c0_260, %c0_261] : memref<16x128xf32, #tpu.memory_space<vmem>>, vector<16x128xf32>
    %cst_262 = arith.constant dense<0.000000e+00> : vector<2x128xf32>
    %535 = tpu.matmul %533, %534, %cst_262 {dimension_numbers = #tpu.dot_dimension_numbers<[1], [0], [0], [1], [0, 0, 1, 1], [], []>} : vector<2x16xf32>, vector<16x128xf32>, vector<2x128xf32> -> vector<2x128xf32>
    %c0_263 = arith.constant 0 : index
    %c0_264 = arith.constant 0 : index
    %536 = vector.load %arg13[%c0_263, %c0_264] : memref<32x128xf32, #tpu.memory_space<vmem>>, vector<32x128xf32>
    %cst_265 = arith.constant dense<0.000000e+00> : vector<2x128xf32>
    %537 = tpu.matmul %531, %536, %cst_265 {dimension_numbers = #tpu.dot_dimension_numbers<[1], [0], [0], [1], [0, 0, 1, 1], [], []>} : vector<2x32xf32>, vector<32x128xf32>, vector<2x128xf32> -> vector<2x128xf32>
    %538 = arith.addf %535, %537 : vector<2x128xf32>
    %c0_266 = arith.constant 0 : index
    %c0_267 = arith.constant 0 : index
    %539 = vector.load %arg15[%c0_266, %c0_267] : memref<32x128xf32, #tpu.memory_space<vmem>>, vector<32x128xf32>
    %cst_268 = arith.constant dense<0.000000e+00> : vector<2x128xf32>
    %540 = tpu.matmul %489, %539, %cst_268 {dimension_numbers = #tpu.dot_dimension_numbers<[1], [0], [0], [1], [0, 0, 1, 1], [], []>} : vector<2x32xf32>, vector<32x128xf32>, vector<2x128xf32> -> vector<2x128xf32>
    %541 = arith.addf %538, %540 : vector<2x128xf32>
    %542 = vector.broadcast %26 : vector<1x128xf32> to vector<2x128xf32>
    %543 = arith.addf %541, %542 : vector<2x128xf32>
    %544 = vector.extract_strided_slice %543 {offsets = [0, 0], sizes = [2, 32], strides = [1, 1]} : vector<2x128xf32> to vector<2x32xf32>
    %545 = arith.negf %544 : vector<2x32xf32>
    %546 = math.exp %545 : vector<2x32xf32>
    %cst_269 = arith.constant 1.000000e+00 : f32
    %547 = vector.broadcast %cst_269 : f32 to vector<2x32xf32>
    %548 = arith.addf %547, %546 : vector<2x32xf32>
    %549 = arith.divf %547, %548 : vector<2x32xf32>
    %550 = vector.extract_strided_slice %543 {offsets = [0, 32], sizes = [2, 32], strides = [1, 1]} : vector<2x128xf32> to vector<2x32xf32>
    %551 = arith.negf %550 : vector<2x32xf32>
    %552 = math.exp %551 : vector<2x32xf32>
    %cst_270 = arith.constant 1.000000e+00 : f32
    %553 = vector.broadcast %cst_270 : f32 to vector<2x32xf32>
    %554 = arith.addf %553, %552 : vector<2x32xf32>
    %555 = arith.divf %553, %554 : vector<2x32xf32>
    %556 = vector.extract_strided_slice %543 {offsets = [0, 64], sizes = [2, 32], strides = [1, 1]} : vector<2x128xf32> to vector<2x32xf32>
    %557 = math.tanh %556 : vector<2x32xf32>
    %558 = vector.extract_strided_slice %543 {offsets = [0, 96], sizes = [2, 32], strides = [1, 1]} : vector<2x128xf32> to vector<2x32xf32>
    %559 = arith.negf %558 : vector<2x32xf32>
    %560 = math.exp %559 : vector<2x32xf32>
    %cst_271 = arith.constant 1.000000e+00 : f32
    %561 = vector.broadcast %cst_271 : f32 to vector<2x32xf32>
    %562 = arith.addf %561, %560 : vector<2x32xf32>
    %563 = arith.divf %561, %562 : vector<2x32xf32>
    %564 = arith.mulf %555, %487 : vector<2x32xf32>
    %565 = arith.mulf %549, %557 : vector<2x32xf32>
    %566 = arith.addf %564, %565 : vector<2x32xf32>
    %567 = math.tanh %566 : vector<2x32xf32>
    %568 = arith.mulf %563, %567 : vector<2x32xf32>
    %c0_272 = arith.constant 0 : index
    %c0_273 = arith.constant 0 : index
    %569 = vector.load %arg17[%c0_272, %c0_273] : memref<32x32xf32, #tpu.memory_space<vmem>>, vector<32x32xf32>
    %cst_274 = arith.constant dense<0.000000e+00> : vector<2x32xf32>
    %570 = tpu.matmul %568, %569, %cst_274 {dimension_numbers = #tpu.dot_dimension_numbers<[1], [0], [0], [1], [0, 0, 1, 1], [], []>} : vector<2x32xf32>, vector<32x32xf32>, vector<2x32xf32> -> vector<2x32xf32>
    %c0_275 = arith.constant 0 : index
    %c0_276 = arith.constant 0 : index
    %571 = vector.load %arg18[%c0_275, %c0_276] : memref<1x32xf32, #tpu.memory_space<vmem>>, vector<1x32xf32>
    %572 = vector.broadcast %571 : vector<1x32xf32> to vector<2x32xf32>
    %573 = arith.addf %570, %572 : vector<2x32xf32>
    %c6_277 = arith.constant 6 : index
    %c0_278 = arith.constant 0 : index
    %c0_279 = arith.constant 0 : index
    %574 = vector.load %arg19[%c6_277, %c0_278, %c0_279] : memref<7x2x32xf32, #tpu.memory_space<vmem>>, vector<1x2x32xf32>
    %575 = vector.shape_cast %574 : vector<1x2x32xf32> to vector<2x32xf32>
    %576 = vector.shape_cast %573 : vector<2x32xf32> to vector<1x2x32xf32>
    tpu.vector_store %arg19[%c6_277, %c0_278, %c0_279], %576 {strides = array<i32>} : memref<7x2x32xf32, #tpu.memory_space<vmem>>, vector<1x2x32xf32>,
    %c6_280 = arith.constant 6 : index
    %c0_281 = arith.constant 0 : index
    %c0_282 = arith.constant 0 : index
    %577 = vector.load %arg20[%c6_280, %c0_281, %c0_282] : memref<7x2x16xf32, #tpu.memory_space<vmem>>, vector<1x2x16xf32>
    %578 = vector.shape_cast %577 : vector<1x2x16xf32> to vector<2x16xf32>
    %579 = vector.shape_cast %527 : vector<2x16xf32> to vector<1x2x16xf32>
    tpu.vector_store %arg20[%c6_280, %c0_281, %c0_282], %579 {strides = array<i32>} : memref<7x2x16xf32, #tpu.memory_space<vmem>>, vector<1x2x16xf32>,
    return
  }
}

</mosaic_0001>

<bundles_post_ra>
// kernel: tpu_custom_call.1
= control target key start
LH: loop header
LB: loop body
LE: loop exit
PB: predicated region body
PF: predicated region fallthrough
CT: control target
= control target key end

     0   :  { %s7586_s0 = inlined_call_operand.vmem [shape: f32[32,48], index: 0, kind: input, shape index: {}]   ;;  %s7587_s1 = inlined_call_operand.hbm [shape: f32[7,2,16], index: 1, kind: input, shape index: {}]   ;;  %s7588_s2 = inlined_call_operand.vmem [shape: f32[48,32], index: 2, kind: input, shape index: {}]   ;;  %s7589_s3 = inlined_call_operand.hbm [shape: f32[1,32], index: 3, kind: input, shape index: {}]   ;;  %s7590_s4 = inlined_call_operand.vmem [shape: f32[32,32], index: 4, kind: input, shape index: {}]   ;;  %s7591_s5 = inlined_call_operand.hbm [shape: f32[1,32], index: 5, kind: input, shape index: {}]   ;;  %s7592_s6 = inlined_call_operand.hbm [shape: f32[32,32], index: 6, kind: input, shape index: {}]   ;;  %s7593_s7 = inlined_call_operand.hbm [shape: f32[1,32], index: 7, kind: input, shape index: {}]   ;;  %s7594_s8 = inlined_call_operand.hbm [shape: f32[1,32], index: 8, kind: input, shape index: {}]   ;;  %s7595_s9 = inlined_call_operand.<no memory space> [shape: f32[1,1], index: 9, kind: input, shape index: {}]   ;;  %s7596_s10 = inlined_call_operand.vmem [shape: f32[32,64], index: 10, kind: input, shape index: {}]   ;;  %s7597_s11 = inlined_call_operand.vmem [shape: f32[1,64], index: 11, kind: input, shape index: {}]   ;;  %s7598_s12 = inlined_call_operand.hbm [shape: f32[16,128], index: 12, kind: input, shape index: {}]   ;;  %s7599_s13 = inlined_call_operand.hbm [shape: f32[32,128], index: 13, kind: input, shape index: {}]   ;;  %s7600_s14 = inlined_call_operand.vmem [shape: f32[1,128], index: 14, kind: input, shape index: {}]   ;;  %s7601_s15 = inlined_call_operand.hbm [shape: f32[32,128], index: 15, kind: input, shape index: {}]   ;;  %s7602_s16 = inlined_call_operand.vmem [shape: f32[1,128], index: 16, kind: input, shape index: {}]   ;;  %s7603_s17 = inlined_call_operand.hbm [shape: f32[32,32], index: 17, kind: input, shape index: {}]   ;;  %s7604_s18 = inlined_call_operand.vmem [shape: f32[1,32], index: 18, kind: input, shape index: {}]   ;;  %s7605_s19 = inlined_call_operand.hbm [shape: f32[7,2,32], index: 19, kind: output, shape index: {0}]   ;;  %s7606_s20 = inlined_call_operand.hbm [shape: f32[7,2,16], index: 20, kind: output, shape index: {1}]  }
   0x1   :  { %7610 = sst [smem:[#allocation31_spill]] %s7586_s0  ;;  %v26_v0 = vstv %s7595_s9 }
   0x2   :  { %7611 = sst [smem:[#allocation32_spill]] %s7587_s1  ;;  %27 = vst [vmem:[#allocation2] sm:$0x1] %v26_v0 }
   0x3   :  { %7612 = sst [smem:[#allocation33_spill]] %s7588_s2 }
   0x4   :  { %7613 = sst [smem:[#allocation34_spill]] %s7589_s3 }
   0x5   :  { %7614 = sst [smem:[#allocation35_spill]] %s7590_s4 }
   0x6   :  { %28 = vsyncpa [#allocation4], 0 }
   0x7   :  { %29 = vsyncpa [#allocation7], 0 }
   0x8   :  { %30 = vsyncpa [#allocation10], 0 }
   0x9   :  { %31 = vsyncpa [#allocation13], 0 }
   0xa   :  { %32 = vsyncpa [#allocation16], 0 }
   0xb   :  { %33 = vsyncpa [#allocation19], 0 }
   0xc   :  { %34 = vsyncpa [#allocation5], 0 }
   0xd   :  { %35 = vsyncpa [#allocation22], 0  ;;  %s6311_s23 = smov [#allocation6]   ;;  %s6312_s2 = smov [#allocation9]  }
   0xe   :  { %s58_s24 = sshll.u32 %s6311_s23, 4  ;;  %s79_s25 = sshll.u32 %s6312_s2, 4  ;;  %s59_s24 = int_to_ptr.vmem [resolvable:$true] %s58_s24  ;;  %s80_s25 = int_to_ptr.vmem [resolvable:$true] %s79_s25 }
   0xf   :  { %s6063_s3 = scalar_lea.vmem %s59_s24, 16  ;;  %s6067_s26 = scalar_lea.vmem %s59_s24, 32 }
  0x10   :  { %p6064_p0 = scmp.ne.s32.totalorder %s59_s24, %s6063_s3  ;;  %p6068_p1 = scmp.lt.s32.totalorder %s59_s24, %s59_s24 }
  0x11   :  { %p6069_p2 = scmp.lt.s32.totalorder %s6067_s26, %s6063_s3 }
  0x13   :  { %p6070_p3 = por %p6069_p2, %p6068_p1 }
  0x15   :  { %p6071_p4 = pnand %p6070_p3, %p6064_p0 }
  0x17   :  { %6074 = shalt.err (!%p6071_p4)
}
  0x18   :  { %s7615_s28 = sld [smem:[#allocation34_spill]]  ;;  %s6083_s4 = scalar_lea.vmem %s80_s25, 512 }
  0x19   :  { %p6084_p5 = scmp.ne.s32.totalorder %s80_s25, %s6083_s4  ;;  %p6088_p6 = scmp.lt.s32.totalorder %s80_s25, %s80_s25 }
  0x1a   :  { %p6089_p7 = scmp.lt.s32.totalorder %s6083_s4, %s6083_s4 }
  0x1c   :  { %p6090_p8 = por %p6089_p7, %p6088_p6 }
  0x1e   :  { %61 = dma.hbm_to_vmem [thread:$0]  %s7615_s28, 16, %s59_s24, [#allocation7]  }
  0x1f   :  { %p6091_p9 = pnand %p6090_p8, %p6084_p5 }
  0x21   :  { %6094 = shalt.err (!%p6091_p9)
}
  0x22   :  { %s6313_s29 = smov 128   ;;  %s6314_s30 = smov 8  }
  0x23   :  { %85 = dma.hbm_to_vmem [thread:$0]  %s7592_s6, 512, %s80_s25, [#allocation10], %s6313_s29, %s6313_s29, %s6314_s30  }
  0x24   :  { %s6315_s1 = smov [#allocation12]   ;;  %s6316_s23 = smov [#allocation15]  }
  0x25   :  { %s102_s22 = sshll.u32 %s6315_s1, 4  ;;  %s129_s24 = sshll.u32 %s6316_s23, 4  ;;  %s103_s22 = int_to_ptr.vmem [resolvable:$true] %s102_s22  ;;  %s130_s24 = int_to_ptr.vmem [resolvable:$true] %s129_s24 }
  0x26   :  { %s6103_s2 = scalar_lea.vmem %s103_s22, 16  ;;  %s6107_s3 = scalar_lea.vmem %s103_s22, 32 }
  0x27   :  { %p6104_p10 = scmp.ne.s32.totalorder %s103_s22, %s6103_s2  ;;  %p6108_p11 = scmp.lt.s32.totalorder %s103_s22, %s103_s22 }
  0x28   :  { %p6109_p12 = scmp.lt.s32.totalorder %s6107_s3, %s6103_s2 }
  0x2a   :  { %p6110_p13 = por %p6109_p12, %p6108_p11 }
  0x2c   :  { %p6111_p0 = pnand %p6110_p13, %p6104_p10 }
  0x2e   :  { %6114 = shalt.err (!%p6111_p0)
}
  0x2f   :  { %105 = dma.hbm_to_vmem [thread:$0]  %s7594_s8, 16, %s103_s22, [#allocation13]  }
  0x30   :  { %s6123_s27 = scalar_lea.vmem %s130_s24, 512  ;;  %p6128_p2 = scmp.lt.s32.totalorder %s130_s24, %s130_s24 }
  0x31   :  { %p6124_p1 = scmp.ne.s32.totalorder %s130_s24, %s6123_s27  ;;  %p6129_p3 = scmp.lt.s32.totalorder %s6123_s27, %s6123_s27 }
  0x33   :  { %p6130_p4 = por %p6129_p3, %p6128_p2 }
  0x35   :  { %p6131_p5 = pnand %p6130_p4, %p6124_p1 }
  0x37   :  { %6134 = shalt.err (!%p6131_p5)
}
  0x38   :  { %135 = dma.hbm_to_vmem [thread:$0]  %s7599_s13, 512, %s130_s24, [#allocation16], %s6313_s29, %s6313_s29, %s6314_s30  }
  0x39   :  { %s6317_s28 = smov [#allocation3]  }
  0x3a   :  { %s43_s4 = sshll.u32 %s6317_s28, 4  ;;  %s44_s4 = int_to_ptr.vmem [resolvable:$true] %s43_s4 }
  0x3b   :  { %s6143_s0 = scalar_lea.vmem %s44_s4, 224  ;;  %p6148_p7 = scmp.lt.s32.totalorder %s44_s4, %s44_s4 }
  0x3c   :  { %p6144_p6 = scmp.ne.s32.totalorder %s44_s4, %s6143_s0  ;;  %p6149_p8 = scmp.lt.s32.totalorder %s6143_s0, %s6143_s0 }
  0x3e   :  { %p6150_p9 = por %p6149_p8, %p6148_p7 }
  0x40   :  { %p6151_p10 = pnand %p6150_p9, %p6144_p6 }
  0x42   :  { %6154 = shalt.err (!%p6151_p10)
}
  0x43   :  { %s6318_s8 = smov 32   ;;  %s6319_s21 = smov 2  }
  0x44   :  { %s7616_s23 = sld [smem:[#allocation32_spill]]  ;;  %s6320_s13 = smov [#allocation8]  }
  0x45   :  { %s70_s24 = sshll.u32 %s6320_s13, 4  ;;  %s6321_s2 = smov [#allocation11]   ;;  %s71_s24 = int_to_ptr.vmem [resolvable:$true] %s70_s24 }
  0x46   :  { %s92_s3 = sshll.u32 %s6321_s2, 4  ;;  %s6163_s26 = scalar_lea.vmem %s71_s24, 16  ;;  %s93_s3 = int_to_ptr.vmem [resolvable:$true] %s92_s3 }
  0x47   :  { %p6164_p11 = scmp.ne.s32.totalorder %s71_s24, %s6163_s26  ;;  %s6167_s9 = scalar_lea.vmem %s71_s24, 32 }
  0x48   :  { %p6168_p12 = scmp.lt.s32.totalorder %s71_s24, %s71_s24  ;;  %p6169_p13 = scmp.lt.s32.totalorder %s6167_s9, %s6163_s26 }
  0x4a   :  { %49 = dma.hbm_to_vmem [thread:$0]  %s7616_s23, 224, %s44_s4, [#allocation4], %s6318_s8, %s6318_s8, %s6319_s21  }
  0x4b   :  { %p6170_p0 = por %p6169_p13, %p6168_p12 }
  0x4d   :  { %p6171_p1 = pnand %p6170_p0, %p6164_p11 }
  0x4f   :  { %6174 = shalt.err (!%p6171_p1)
}
  0x50   :  { %73 = dma.hbm_to_vmem [thread:$0]  %s7591_s5, 16, %s71_s24, [#allocation7]  }
  0x51   :  { %s6183_s25 = scalar_lea.vmem %s93_s3, 16  ;;  %s6187_s28 = scalar_lea.vmem %s93_s3, 32 }
  0x52   :  { %p6184_p2 = scmp.ne.s32.totalorder %s93_s3, %s6183_s25  ;;  %p6188_p3 = scmp.lt.s32.totalorder %s93_s3, %s93_s3 }
  0x53   :  { %p6189_p4 = scmp.lt.s32.totalorder %s6187_s28, %s6183_s25 }
  0x55   :  { %p6190_p5 = por %p6189_p4, %p6188_p3 }
  0x57   :  { %p6191_p6 = pnand %p6190_p5, %p6184_p2 }
  0x59   :  { %6194 = shalt.err (!%p6191_p6)
}
  0x5a   :  { %95 = dma.hbm_to_vmem [thread:$0]  %s7593_s7, 16, %s93_s3, [#allocation10]  }
  0x5b   :  { %s6322_s1 = smov [#allocation14]   ;;  %s6323_s23 = smov [#allocation17]  }
  0x5c   :  { %s117_s22 = sshll.u32 %s6322_s1, 4  ;;  %s143_s13 = sshll.u32 %s6323_s23, 4  ;;  %s118_s22 = int_to_ptr.vmem [resolvable:$true] %s117_s22  ;;  %s144_s13 = int_to_ptr.vmem [resolvable:$true] %s143_s13 }
  0x5d   :  { %s6203_s2 = scalar_lea.vmem %s118_s22, 256  ;;  %p6208_p8 = scmp.lt.s32.totalorder %s118_s22, %s118_s22 }
  0x5e   :  { %p6204_p7 = scmp.ne.s32.totalorder %s118_s22, %s6203_s2  ;;  %p6209_p9 = scmp.lt.s32.totalorder %s6203_s2, %s6203_s2 }
  0x60   :  { %p6210_p10 = por %p6209_p9, %p6208_p8 }
  0x62   :  { %p6211_p11 = pnand %p6210_p10, %p6204_p7 }
  0x64   :  { %6214 = shalt.err (!%p6211_p11)
}
  0x65   :  { %123 = dma.hbm_to_vmem [thread:$0]  %s7598_s12, 256, %s118_s22, [#allocation13], %s6313_s29, %s6313_s29, %s6314_s30  }
  0x66   :  { %s6223_s7 = scalar_lea.vmem %s144_s13, 512  ;;  %p6228_p13 = scmp.lt.s32.totalorder %s144_s13, %s144_s13 }
  0x67   :  { %p6224_p12 = scmp.ne.s32.totalorder %s144_s13, %s6223_s7  ;;  %p6229_p0 = scmp.lt.s32.totalorder %s6223_s7, %s6223_s7 }
  0x69   :  { %p6230_p1 = por %p6229_p0, %p6228_p13 }
  0x6b   :  { %p6231_p2 = pnand %p6230_p1, %p6224_p12 }
  0x6d   :  { %6234 = shalt.err (!%p6231_p2)
}
  0x6e   :  { %149 = dma.hbm_to_vmem [thread:$0]  %s7601_s15, 512, %s144_s13, [#allocation16], %s6313_s29, %s6313_s29, %s6314_s30  }
  0x6f   :  { %s6324_s9 = smov [#allocation18]  }
  0x70   :  { %s157_s27 = sshll.u32 %s6324_s9, 4  ;;  %s158_s27 = int_to_ptr.vmem [resolvable:$true] %s157_s27 }
  0x71   :  { %s6243_s6 = scalar_lea.vmem %s158_s27, 512  ;;  %p6248_p4 = scmp.lt.s32.totalorder %s158_s27, %s158_s27 }
  0x72   :  { %p6244_p3 = scmp.ne.s32.totalorder %s158_s27, %s6243_s6  ;;  %p6249_p5 = scmp.lt.s32.totalorder %s6243_s6, %s6243_s6 }
  0x74   :  { %p6250_p6 = por %p6249_p5, %p6248_p4 }
  0x76   :  { %p6251_p7 = pnand %p6250_p6, %p6244_p3 }
  0x78   :  { %6254 = shalt.err (!%p6251_p7)
}
  0x79   :  { %163 = dma.hbm_to_vmem [thread:$0]  %s7603_s17, 512, %s158_s27, [#allocation19], %s6313_s29, %s6313_s29, %s6314_s30  }
  0x7a   :  { %6295 = dma.done.wait [#allocation4], 224  }
  0x7b   :  { %6296 = vsyncadd [#allocation4], 4294967072 }
  0x7c   :  { %6297 = dma.done.wait [#allocation7], 32  }
  0x7d   :  { %6298 = vsyncadd [#allocation7], 4294967264 }
  0x7e   :  { %6299 = dma.done.wait [#allocation10], 528  }
  0x7f   :  { %6300 = vsyncadd [#allocation10], 4294966768 }
  0x80   :  { %6301 = dma.done.wait [#allocation13], 272  }
  0x81   :  { %6302 = vsyncadd [#allocation13], 4294967024 }
  0x82   :  { %6303 = dma.done.wait [#allocation16], 1024  }
  0x83   :  { %6304 = vsyncadd [#allocation16], 4294966272 }
  0x84   :  { %6305 = dma.done.wait [#allocation19], 512  }
  0x85   :  { %6306 = vsyncadd [#allocation19], 4294966784  ;;  %s7617_s4 = sld [smem:[#allocation33_spill]]  ;;  %vm213_vm0 = vcmask 392192   ;;  %v6325_v15 = vmov 0.0   ;;  %vm6326_vm1 = vmmov 0  }
  0x86   :  { %s7618_s23 = sld [smem:[#allocation31_spill]]  ;;  %v5244_v16 = vld [vmem:[#allocation6] ss:$0 sm:$0xff]  ;;  %vm322_vm2 = vcmask 261120   ;;  %v444_v22 = vld [vmem:[%s7596_s10 + $0x18] sm:$0xff]  ;;  %v443_v27 = vld [vmem:[%s7596_s10 + $0x10] sm:$0xff] }
  0x87   :  { %s7619_s5 = sld [smem:[#allocation35_spill]]  ;;  %v442_v30 = vld [vmem:[%s7596_s10 + $0x8] sm:$0xff]  ;;  %v441_v34 = vld [vmem:[%s7596_s10] sm:$0xff]  ;;  %vm454_vm3 = vcmask 1041409   ;;  %v6596_v53 = vld [vmem:[#allocation9] sm:$0xff]  ;;  %vm927_vm4 = vcmask 130048  }
  0x88   :  { %v6584_v50 = vld [vmem:[#allocation9 + $0x18] sm:$0xff]  ;;  %v6586_v51 = vld [vmem:[#allocation9 + $0x10] sm:$0xff]  ;;  %v6590_v52 = vld [vmem:[#allocation9 + $0x8] sm:$0xff]  ;;  %vm708_vm5 = vcmask 130112   ;;  %vm721_vm6 = vcmask 123904   ;;  %s6329_s25 = smov 64  }
  0x89   :  { %v5254_v58 = vld [vmem:[%s7597_s11] ss:$0 sm:$0xff]  ;;  %v6613_v63 = vld [vmem:[#allocation14] sm:$0xff]  ;;  %v845_v0 = vld [vmem:[#allocation3] sm:$0x3]  ;;  %vm1193_vm7 = vcmask 254976  }
  0x8a   :  { %v6609_v61 = vld [vmem:[#allocation14 + $0x8] sm:$0xff]  ;;  %s6330_s0 = smov [#allocation21]  }
  0x8b   :  { %v205_v1 = vld [vmem:[%s7617_s4 + $0x28] sm:$0xff]  ;;  %v204_v2 = vld [vmem:[%s7617_s4 + $0x20] sm:$0xff]  ;;  %v203_v3 = vld [vmem:[%s7617_s4 + $0x18] sm:$0xff] }
  0x8c   :  { %5504 = vmatprep.subr.mxu0 %v205_v1  ;;  %v196_v4 = vld [vmem:[%s7618_s23] sm:$0xff]  ;;  %v202_v6 = vld [vmem:[%s7617_s4 + $0x10] sm:$0xff]  ;;  %v201_v7 = vld [vmem:[%s7617_s4 + $0x8] sm:$0xff] }
  0x8d   :  { %5505 = vmatpush3.msra.mxu0 %v205_v1  ;;  %5516 = vmatprep.mubr.msk.f32.mxu0 %vm213_vm0, %v196_v4  ;;  %v314_v5 = vld [vmem:[%s7619_s5 + $0x18] sm:$0xff]  ;;  %v200_v8 = vld [vmem:[%s7617_s4] sm:$0xff]  ;;  %v197_v9 = vld [vmem:[%s7618_s23 + $0x8] sm:$0xff]  ;;  %s5223_s4 = sshll.u32 %s6330_s0, 4  ;;  %s5224_s4 = int_to_ptr.vmem [resolvable:$true] %s5223_s4 }
  0x8e   :  { %5506 = vmatprep.subr.mxu0 %v204_v2  ;;  %5522 = vmatprep.subr.mxu1 %v314_v5  ;;  %v198_v10 = vld [vmem:[%s7618_s23 + $0x10] sm:$0xff]  ;;  %v199_v11 = vld [vmem:[%s7618_s23 + $0x18] sm:$0xff]  ;;  %v312_v13 = vld [vmem:[%s7619_s5 + $0x8] sm:$0xff]  ;;  %s6255_s1 = scalar_lea.vmem %s5224_s4, 224  ;;  %p6260_p9 = scmp.lt.s32.totalorder %s5224_s4, %s5224_s4 }
  0x8f   :  { %5507 = vmatpush3.msra.mxu0 %v204_v2  ;;  %5523 = vmatpush3.msra.mxu1 %v314_v5  ;;  %v313_v12 = vld [vmem:[%s7619_s5 + $0x10] sm:$0xff]  ;;  %v311_v14 = vld [vmem:[%s7619_s5] sm:$0xff]  ;;  %v6327_v5 = vmov 0   ;;  %p6256_p8 = scmp.ne.s32.totalorder %s5224_s4, %s6255_s1  ;;  %p6261_p10 = scmp.lt.s32.totalorder %s6255_s1, %s6255_s1 }
  0x90   :  { %5508 = vmatprep.subr.mxu0 %v203_v3  ;;  %5524 = vmatprep.subr.mxu1 %v313_v12  ;;  %v6619_v1 = vld [vmem:[#allocation17 + $0x18] sm:$0xff]  ;;  %v6624_v2 = vld [vmem:[#allocation17 + $0x10] sm:$0xff]  ;;  %v6634_v4 = vld [vmem:[#allocation17] sm:$0xff] }
  0x91   :  { %5509 = vmatpush3.msra.mxu0 %v203_v3  ;;  %5525 = vmatpush3.msra.mxu1 %v313_v12  ;;  %v6630_v3 = vld [vmem:[#allocation17 + $0x8] sm:$0xff]  ;;  %p6262_p11 = por %p6261_p10, %p6260_p9 }
  0x92   :  { %5510 = vmatprep.subr.mxu0 %v202_v6  ;;  %5526 = vmatprep.subr.mxu1 %v312_v13 }
  0x93   :  { %5511 = vmatpush3.msra.mxu0 %v202_v6  ;;  %5527 = vmatpush3.msra.mxu1 %v312_v13  ;;  %v6328_v6 = vmov 1966171168   ;;  %p6263_p12 = pnand %p6262_p11, %p6256_p8 }
  0x94   :  { %5512 = vmatprep.subr.mxu0 %v201_v7  ;;  %5528 = vmatprep.subr.mxu1 %v311_v14 }
  0x95   :  { %5513 = vmatpush3.msra.mxu0 %v201_v7  ;;  %5529 = vmatpush3.msra.mxu1 %v311_v14  ;;  %v618_v7 = vunpack.c.l.s4 %v6328_v6 }
  0x96   :  { %5514 = vmatprep.subr.mxu0 %v200_v8  ;;  %5536 = vmatprep.subr.mxu1 %v6325_v15 }
  0x97   :  { %5515 = vmatpush3.msra.mxu0 %v200_v8  ;;  %5925 = vset.pattern.permute.xlu0 %v6327_v5  ;;  %v620_v8 = vlaneseq }
  0x98   :  { %5517 = vmatmul.mubr.msk.f32.vlgmr.msra.gmra.mxu0 %vm213_vm0, %v197_v9  ;;  %5547 = vmatprep.subr.mxu0 %v6325_v15  ;;  %v619_v9 = vunpack.c.0.s8 %v618_v7 }
  0x99   :  { %5519 = vmatprep.mubr.msk.f32.mxu0 %vm213_vm0, %v198_v10  ;;  %5548 = vmatpush3.msra.mxu0 %v6584_v50  ;;  %v6652_v10 = vshrl.u32 %v620_v8, 7 }
  0x9a   :  { %5549 = vmatprep.subr.mxu0 %v6325_v15  ;;  %5926 = vset.pattern.permute.xlu1 %v6327_v5 }
  0x9b   :  { %5550 = vmatpush3.msra.mxu0 %v6586_v51  ;;  %v6657_v12 = vsub.s32 %v619_v9, %v6652_v10 }
  0x9c   :  { %5520 = vmatmul.mubr.msk.f32.gmra.mxu0 %vm213_vm0, %v199_v11  ;;  %5551 = vmatprep.subr.mxu0 %v6325_v15  ;;  %v6654_v11 = vld [vmem:[#allocation11] ss:$0 sm:$0xff] }
  0x9d   :  { %5555 = vmatprep.mubr.msk.f32.mxu0 %vm6326_vm1, %v6325_v15  ;;  %5552 = vmatpush3.msra.mxu0 %v6590_v52 }
  0x9e   :  { %5553 = vmatprep.subr.mxu0 %v6325_v15 }
  0x9f   :  { %5554 = vmatpush3.msra.mxu0 %v6596_v53 }
  0xa0   :  { %5569 = vmatprep.subr.mxu0 %v6325_v15 }
 0x158   :  { %v5518_v17 = vpop.f32.mrf.mxu0 }
 0x159   :  { %v6538_v18 = vadd.f32 %v5518_v17, %v5244_v16 }
 0x15a   :  { %v292_v19 = vpop.f32.mrf.mxu0 }
 0x15b   :  { %v6540_v20 = vadd.f32 %v5244_v16, %v292_v19  ;;  %v421_v25 = vsel %vm322_vm2, %v6538_v18, 0.0  ;;  %v6662_v19 = vsub.s32 0, %v6652_v10 }
 0x15c   :  { %v5521_v21 = vpop.f32.mrf.mxu0 }
 0x15d   :  { %v6545_v23 = vadd.f32 %v5521_v21, %v5244_v16  ;;  %5530 = vmatprep.mubr.msk.f32.mxu1 %vm322_vm2, %v6540_v20  ;;  %v420_v24 = vsel %vm322_vm2, %v6540_v20, 0.0  ;;  %v5249_v21 = vld [vmem:[#allocation8] ss:$0 sm:$0xff] }
 0x15e   :  { %v302_v26 = vpop.f32.mrf.mxu0  ;;  %5531 = vmatmul.mubr.msk.f32.vlgmr.msra.gmra.mxu1 %vm322_vm2, %v6538_v18  ;;  %v422_v28 = vadd.f32 %v421_v25, %v420_v24 }
 0x15f   :  { %v6558_v29 = vadd.f32 %v5244_v16, %v302_v26  ;;  %5537 = vmatpush3.msra.mxu1 %v444_v22  ;;  %v430_v33 = vsel %vm322_vm2, %v6545_v23, 0.0 }
 0x160   :  { %5538 = vmatprep.subr.mxu1 %v6325_v15  ;;  %v423_v31 = vrot.slane %v422_v28, 4 }
 0x161   :  { %5533 = vmatprep.mubr.msk.f32.mxu1 %vm322_vm2, %v6558_v29  ;;  %5539 = vmatpush3.msra.mxu1 %v443_v27  ;;  %v429_v32 = vsel %vm322_vm2, %v6558_v29, 0.0 }
 0x162   :  { %5534 = vmatmul.mubr.msk.f32.gmra.mxu1 %vm322_vm2, %v6545_v23  ;;  %5540 = vmatprep.subr.mxu1 %v6325_v15  ;;  %v424_v35 = vadd.f32 %v423_v31, %v422_v28  ;;  %v431_v36 = vadd.f32 %v430_v33, %v429_v32 }
 0x163   :  { %5541 = vmatpush3.msra.mxu1 %v442_v30  ;;  %5544 = vmatprep.mubr.msk.f32.mxu1 %vm6326_vm1, %v6325_v15 }
 0x164   :  { %5542 = vmatprep.subr.mxu1 %v6325_v15  ;;  %v425_v37 = vrot.slane %v424_v35, 2  ;;  %v432_v38 = vrot.slane %v431_v36, 4 }
 0x165   :  { %5543 = vmatpush3.msra.mxu1 %v441_v34 }
 0x166   :  { %v426_v39 = vadd.f32 %v425_v37, %v424_v35  ;;  %v433_v40 = vadd.f32 %v432_v38, %v431_v36  ;;  %5558 = vmatprep.subr.mxu1 %v6325_v15  ;;  %v6682_v37 = vld [vmem:[#allocation12] ss:$0 sm:$0xff] }
 0x168   :  { %v427_v41 = vrot.slane %v426_v39, 1  ;;  %v434_v42 = vrot.slane %v433_v40, 2 }
 0x16a   :  { %v435_v43 = vadd.f32 %v434_v42, %v433_v40  ;;  %v428_v44 = vadd.f32 %v427_v41, %v426_v39 }
 0x16c   :  { %v436_v45 = vrot.slane %v435_v43, 1  ;;  %v439_v47 = vmul.f32 0.0625, %v428_v44 }
 0x16e   :  { %v437_v46 = vadd.f32 %v436_v45, %v435_v43 }
 0x170   :  { %v440_v48 = vmul.f32 0.0625, %v437_v46 }
 0x172   :  { %v455_v49 = vsel %vm454_vm3, %v440_v48, %v439_v47 }
 0x173   :  { %5545 = vmatmul.mubr.msk.f32.vlgmr.msra.gmra.mxu1 %vm322_vm2, %v455_v49 }
 0x174   :  { %5566 = vmatprep.mubr.msk.f32.mxu1 %vm6326_vm1, %v6325_v15 }
 0x21e   :  { %v5532_v54 = vpop.f32.mrf.mxu1 }
 0x21f   :  { %v6667_v27 = vadd.f32 %v5532_v54, %v5249_v21 }
 0x220   :  { %v401_v55 = vpop.f32.mrf.mxu1 }
 0x221   :  { %v6669_v28 = vadd.f32 %v5249_v21, %v401_v55 }
 0x222   :  { %v6600_v56 = vpop.f32.mrf.mxu1 }
 0x223   :  { %v6674_v32 = vadd.f32 %v6600_v56, %v5249_v21 }
 0x224   :  { %v6602_v57 = vpop.f32.mrf.mxu1 }
 0x225   :  { %v6677_v33 = vadd.f32 %v5249_v21, %v6602_v57 }
 0x233   :  { %v524_v59 = vpop.f32.mrf.mxu1 }
 0x234   :  { %v6607_v60 = vadd.f32 %v5254_v58, %v524_v59  ;;  %v6696_v58 = vld [vmem:[#allocation2] ss:$0 sm:$0xff] }
 0x235   :  { %v5546_v62 = vpop.f32.mrf.mxu1 }
 0x236   :  { %5556 = vmatmul.mubr.msk.f32.vlgmr.msra.gmra.mxu0 %vm322_vm2, %v6607_v60  ;;  %v698_v62 = vand.u32 127, %v620_v8 }
 0x237   :  { %5570 = vmatpush3.msra.mxu0 %v6609_v61  ;;  %5573 = vmatprep.mubr.msk.f32.mxu0 %vm6326_vm1, %v6325_v15 }
 0x238   :  { %5571 = vmatprep.subr.mxu0 %v6325_v15  ;;  %v703_v5 = vadd.s32 4294967288, %v698_v62  ;;  %v6700_v7 = vsub.s32 %v698_v62, %v6652_v10 }
 0x239   :  { %5572 = vmatpush3.msra.mxu0 %v6613_v63 }
 0x23a   :  { %5576 = vmatprep.subr.mxu0 %v6325_v15  ;;  %5574 = vmatmul.mubr.msk.f32.vlgmr.msra.gmra.mxu0 %vm927_vm4, %v845_v0  ;;  %v6703_v9 = vsub.s32 %v703_v5, %v6652_v10 }
 0x23b   :  { %5577 = vmatpush3.msra.mxu0 %v6619_v1  ;;  %5584 = vmatprep.mubr.msk.f32.mxu0 %vm6326_vm1, %v6325_v15 }
 0x23c   :  { %5578 = vmatprep.subr.mxu0 %v6325_v15 }
 0x23d   :  { %5579 = vmatpush3.msra.mxu0 %v6624_v2 }
 0x23e   :  { %5580 = vmatprep.subr.mxu0 %v6325_v15 }
 0x23f   :  { %5581 = vmatpush3.msra.mxu0 %v6630_v3 }
 0x240   :  { %5582 = vmatprep.subr.mxu0 %v6325_v15 }
 0x241   :  { %5583 = vmatpush3.msra.mxu0 %v6634_v4 }
 0x242   :  { %5585 = vmatmul.mubr.msk.f32.vlgmr.msra.gmra.mxu0 %vm322_vm2, %v6607_v60  ;;  %5598 = vmatprep.subr.mxu0 %v6325_v15 }
 0x243   :  { %5599 = vmatpush3.msra.mxu0 %v6584_v50  ;;  %5606 = vmatprep.mubr.msk.f32.mxu0 %vm6326_vm1, %v6325_v15 }
 0x244   :  { %5600 = vmatprep.subr.mxu0 %v6325_v15 }
 0x245   :  { %5601 = vmatpush3.msra.mxu0 %v6586_v51 }
 0x246   :  { %5602 = vmatprep.subr.mxu0 %v6325_v15 }
 0x247   :  { %5603 = vmatpush3.msra.mxu0 %v6590_v52 }
 0x248   :  { %5604 = vmatprep.subr.mxu0 %v6325_v15 }
 0x249   :  { %5605 = vmatpush3.msra.mxu0 %v6596_v53 }
 0x24a   :  { %5620 = vmatprep.subr.mxu0 %v6325_v15 }
 0x2f6   :  { %v612_v13 = vpop.f32.mrf.mxu0 }
 0x2f7   :  { %v613_v14 = vadd.f32 %v6654_v11, %v612_v13 }
 0x2f8   :  { %v5557_v16 = vpop.f32.mrf.mxu0 }
 0x2f9   :  { %v623_v17 = vrot.slane %v613_v14, %v6657_v12 }
 0x2fa   :  { %v6664_v22 = vpop.f32.mrf.mxu0 }
 0x2fb   :  { %v624_v24 = vcombine.high %v623_v17, %v623_v17  ;;  %v631_v25 = vrot.slane %v623_v17, %v6657_v12 }
 0x2fc   :  { %v5575_v26 = vpop.f32.mrf.mxu0 }
 0x2fd   :  { %v638_v30 = vrot.slane %v624_v24, %v6657_v12  ;;  %v642_v31 = vrot.slane %v631_v25, %v6662_v19 }
 0x2ff   :  { %v649_v34 = vadd.f32 %v642_v31, %v6669_v28  ;;  %v646_v35 = vrot.slane %v638_v30, %v6662_v19  ;;  %v650_v36 = vadd.f32 %v642_v31, %v6667_v27 }
 0x301   :  { %v653_v38 = vmax.f32 %v649_v34, 0.0  ;;  %v651_v39 = vadd.f32 %v646_v35, %v6677_v33  ;;  %v654_v40 = vmax.f32 %v650_v36, 0.0  ;;  %v652_v41 = vadd.f32 %v646_v35, %v6674_v32 }
 0x302   :  { %v6686_v42 = vpop.f32.mrf.mxu0 }
 0x303   :  { %v663_v43 = vmul.f32 %v6682_v37, %v653_v38  ;;  %v655_v44 = vmax.f32 %v651_v39, 0.0  ;;  %v656_v45 = vmax.f32 %v652_v41, 0.0  ;;  %v664_v49 = vmul.f32 %v6682_v37, %v654_v40 }
 0x304   :  { %v5586_v46 = vpop.f32.mrf.mxu0  ;;  %v6714_v38 = vsub.s32 1, %v6652_v10 }
 0x305   :  { %v667_v47 = vsel %vm322_vm2, %v663_v43, 0.0  ;;  %v665_v48 = vmul.f32 %v6682_v37, %v655_v44  ;;  %v666_v55 = vmul.f32 %v6682_v37, %v656_v45  ;;  %v670_v56 = vsel %vm322_vm2, %v664_v49, 0.0 }
 0x306   :  { %668 = vadd.xlane.f32.xlu0 %v667_v47 }
 0x307   :  { %v673_v54 = vsel %vm322_vm2, %v665_v48, 0.0  ;;  %v676_v57 = vsel %vm322_vm2, %v666_v55, 0.0 }
 0x308   :  { %674 = vadd.xlane.f32.xlu1 %v673_v54 }
 0x30a   :  { %671 = vadd.xlane.f32.xlu0 %v670_v56 }
 0x30c   :  { %677 = vadd.xlane.f32.xlu1 %v676_v57 }
 0x320   :  { %686 = vperm.xlu0 %5925, %v6696_v58  }
 0x38f   :  { %v669_v59 = vpop.xlane.xlu0 %668 }
 0x391   :  { %v675_v0 = vpop.xlane.xlu1 %674 }
 0x393   :  { %v672_v6 = vpop.xlane.xlu0 %671 }
 0x395   :  { %v678_v13 = vpop.xlane.xlu1 %677 }
 0x39b   :  { %v687_v14 = vpop.permute.xlu0 %686 }
 0x39c   :  { %v689_v16 = vadd.f32 %v687_v14, %v669_v59  ;;  %v690_v17 = vadd.f32 %v687_v14, %v672_v6  ;;  %v691_v21 = vadd.f32 %v687_v14, %v675_v0  ;;  %v692_v24 = vadd.f32 %v687_v14, %v678_v13 }
 0x39e   :  { %v702_v25 = vrot.slane %v689_v16, %v6700_v7  ;;  %v707_v8 = vrot.slane %v690_v17, %v6703_v9  ;;  %v713_v26 = vrot.slane %v691_v21, %v6700_v7  ;;  %v717_v30 = vrot.slane %v692_v24, %v6703_v9 }
 0x3a0   :  { %v709_v31 = vsel %vm708_vm5, %v707_v8, %v702_v25  ;;  %v718_v34 = vsel %vm708_vm5, %v717_v30, %v713_v26 }
 0x3a1   :  { %v719_v35 = vsel %vm454_vm3, %v718_v34, %v709_v31 }
 0x3a2   :  { %v722_v36 = vsel %vm721_vm6, %v719_v35, -inf }
 0x3a3   :  { %723 = vmax.xlane.f32.xlu1 %v722_v36 }
 0x42c   :  { %v724_v39 = vpop.xlane.xlu1 %723 }
 0x42d   :  { %v729_v40 = vrot.slane %v724_v39, %v6662_v19  ;;  %v733_v41 = vrot.slane %v724_v39, %v6714_v38 }
 0x42f   :  { %v736_v43 = vsub.f32 %v689_v16, %v729_v40  ;;  %v737_v44 = vsub.f32 %v690_v17, %v729_v40  ;;  %v738_v46 = vsub.f32 %v691_v21, %v733_v41  ;;  %v739_v48 = vsub.f32 %v692_v24, %v733_v41  ;;  %v6728_v40 = vld [vmem:[#allocation15 + $0x18] sm:$0xff]  ;;  %v6730_v41 = vld [vmem:[#allocation15 + $0x10] sm:$0xff] }
 0x430   :  { %5559 = vmatpush3.msra.mxu1 %v6728_v40 }
 0x431   :  { %v740_v45 = vmul.f32 1.442695, %v736_v43  ;;  %v742_v47 = vmul.f32 1.442695, %v737_v44  ;;  %v744_v49 = vmul.f32 1.442695, %v738_v46  ;;  %5560 = vmatprep.subr.mxu1 %v6325_v15 }
 0x432   :  { %v746_v54 = vmul.f32 1.442695, %v739_v48  ;;  %v6734_v43 = vld [vmem:[#allocation15 + $0x8] sm:$0xff]  ;;  %5561 = vmatpush3.msra.mxu1 %v6730_v41  ;;  %v6738_v44 = vld [vmem:[#allocation15] sm:$0xff] }
 0x433   :  { %5927 = vpow2.f32 %v740_v45  ;;  %5562 = vmatprep.subr.mxu1 %v6325_v15 }
 0x434   :  { %5929 = vpow2.f32 %v742_v47  ;;  %5563 = vmatpush3.msra.mxu1 %v6734_v43 }
 0x435   :  { %5931 = vpow2.f32 %v744_v49  ;;  %5564 = vmatprep.subr.mxu1 %v6325_v15 }
 0x436   :  { %5933 = vpow2.f32 %v746_v54  ;;  %5565 = vmatpush3.msra.mxu1 %v6738_v44 }
 0x437   :  { %5587 = vmatprep.subr.mxu1 %v6325_v15 }
 0x440   :  { %v5928_v55 = vpop.eup %5927 }
 0x441   :  { %753 = vperm.xlu1 %5926, %v5928_v55   ;;  %v5930_v10 = vpop.eup %5929 }
 0x442   :  { %v5932_v56 = vpop.eup %5931 }
 0x443   :  { %v5934_v57 = vpop.eup %5933 }
 0x445   :  { %756 = vperm.xlu1 %5926, %v5930_v10  }
 0x449   :  { %759 = vperm.xlu1 %5926, %v5932_v56  }
 0x44d   :  { %762 = vperm.xlu1 %5926, %v5934_v57  }
 0x4bc   :  { %v754_v59 = vpop.permute.xlu1 %753 }
 0x4bd   :  { %v767_v13 = vrot.slane %v754_v59, %v6700_v7 }
 0x4c0   :  { %v757_v62 = vpop.permute.xlu1 %756 }
 0x4c1   :  { %v771_v5 = vrot.slane %v757_v62, %v6703_v9 }
 0x4c3   :  { %v772_v17 = vsel %vm708_vm5, %v771_v5, %v767_v13 }
 0x4c4   :  { %v760_v0 = vpop.permute.xlu1 %759 }
 0x4c5   :  { %v776_v14 = vrot.slane %v760_v0, %v6700_v7 }
 0x4c8   :  { %v763_v6 = vpop.permute.xlu1 %762 }
 0x4c9   :  { %v780_v16 = vrot.slane %v763_v6, %v6703_v9 }
 0x4cb   :  { %v781_v21 = vsel %vm708_vm5, %v780_v16, %v776_v14 }
 0x4cc   :  { %v782_v24 = vsel %vm454_vm3, %v781_v21, %v772_v17 }
 0x4cd   :  { %v784_v25 = vsel %vm721_vm6, %v782_v24, 0.0 }
 0x4ce   :  { %785 = vadd.xlane.f32.xlu1 %v784_v25 }
 0x557   :  { %v786_v8 = vpop.xlane.xlu1 %785 }
 0x558   :  { %5935 = vrcp.f32 %v786_v8 }
 0x565   :  { %v5936_v26 = vpop.eup %5935 }
 0x566   :  { %v792_v30 = vrot.slane %v5936_v26, %v6662_v19  ;;  %v796_v35 = vrot.slane %v5936_v26, %v6714_v38 }
 0x568   :  { %v799_v31 = vmul.f32 %v5928_v55, %v792_v30  ;;  %v800_v34 = vmul.f32 %v5930_v10, %v792_v30  ;;  %v801_v36 = vmul.f32 %v5932_v56, %v796_v35  ;;  %v802_v39 = vmul.f32 %v5934_v57, %v796_v35 }
 0x56a   :  { %805 = vperm.xlu0 %5925, %v799_v31  }
 0x56e   :  { %810 = vperm.xlu0 %5925, %v800_v34  }
 0x572   :  { %815 = vperm.xlu0 %5925, %v801_v36  }
 0x576   :  { %820 = vperm.xlu0 %5925, %v802_v39  }
 0x5e5   :  { %v806_v45 = vpop.permute.xlu0 %805 }
 0x5e6   :  { %v823_v46 = vmul.f32 %v806_v45, %v6540_v20  ;;  %v1198_v5 = vrot.slane %v806_v45, %v6700_v7 }
 0x5e8   :  { %v827_v49 = vsel %vm322_vm2, %v823_v46, 0.0 }
 0x5e9   :  { %v811_v47 = vpop.permute.xlu0 %810 }
 0x5ea   :  { %v824_v48 = vmul.f32 %v811_v47, %v6538_v18  ;;  %v1202_v57 = vrot.slane %v811_v47, %v6703_v9 }
 0x5ec   :  { %v828_v54 = vsel %vm322_vm2, %v824_v48, 0.0  ;;  %v1203_v16 = vsel %vm708_vm5, %v1202_v57, %v1198_v5 }
 0x5ed   :  { %v829_v55 = vadd.f32 %v828_v54, %v827_v49  ;;  %v816_v10 = vpop.permute.xlu0 %815  ;;  %v529_v49 = vld [vmem:[%s7600_s14] sm:$0x1] }
 0x5ee   :  { %v825_v59 = vmul.f32 %v816_v10, %v6558_v29  ;;  %v1207_v6 = vrot.slane %v816_v10, %v6700_v7  ;;  %v530_v54 = vld [vmem:[%s7602_s16] sm:$0x1] }
 0x5ef   :  { %v830_v56 = vrot.slane %v829_v55, 4 }
 0x5f0   :  { %v836_v17 = vsel %vm322_vm2, %v825_v59, 0.0 }
 0x5f1   :  { %v831_v62 = vadd.f32 %v830_v56, %v829_v55  ;;  %v821_v0 = vpop.permute.xlu0 %820  ;;  %v531_v55 = vadd.f32 %v530_v54, %v529_v49 }
 0x5f2   :  { %v826_v13 = vmul.f32 %v821_v0, %v6545_v23  ;;  %v1211_v14 = vrot.slane %v821_v0, %v6703_v9 }
 0x5f3   :  { %v832_v25 = vrot.slane %v831_v62, 2  ;;  %v6772_v57 = vrot.slane %v531_v55, %v6662_v19 }
 0x5f4   :  { %v837_v21 = vsel %vm322_vm2, %v826_v13, 0.0  ;;  %v1212_v24 = vsel %vm708_vm5, %v1211_v14, %v1207_v6 }
 0x5f5   :  { %v838_v8 = vadd.f32 %v837_v21, %v836_v17  ;;  %v1213_v26 = vsel %vm454_vm3, %v1212_v24, %v1203_v16  ;;  %v833_v31 = vadd.f32 %v832_v25, %v831_v62  ;;  %v6782_v25 = vld [vmem:[#allocation18 + $0x18] sm:$0xff] }
 0x5f6   :  { %1215 = vst.msk [vmem:[#allocation21] sm:$0x3] %vm721_vm6, %v1213_v26  ;;  %v6788_v26 = vld [vmem:[#allocation18 + $0x8] sm:$0xff] }
 0x5f7   :  { %v839_v30 = vrot.slane %v838_v8, 4  ;;  %v834_v39 = vrot.slane %v833_v31, 1 }
 0x5f9   :  { %v840_v34 = vadd.f32 %v839_v30, %v838_v8  ;;  %v835_v46 = vadd.f32 %v834_v39, %v833_v31  ;;  %v6784_v8 = vld [vmem:[#allocation18 + $0x10] sm:$0xff] }
 0x5fb   :  { %v841_v35 = vrot.slane %v840_v34, 2 }
 0x5fd   :  { %v842_v36 = vadd.f32 %v841_v35, %v840_v34 }
 0x5ff   :  { %v843_v45 = vrot.slane %v842_v36, 1 }
 0x601   :  { %v844_v47 = vadd.f32 %v843_v45, %v842_v36 }
 0x603   :  { %v854_v48 = vsel %vm454_vm3, %v844_v47, %v835_v46 }
 0x604   :  { %5567 = vmatmul.mubr.msk.f32.vlgmr.msra.gmra.mxu1 %vm322_vm2, %v854_v48 }
 0x605   :  { %5595 = vmatprep.mubr.msk.f32.mxu1 %vm6326_vm1, %v6325_v15  ;;  %5588 = vmatpush3.msra.mxu1 %v6782_v25 }
 0x606   :  { %5589 = vmatprep.subr.mxu1 %v6325_v15 }
 0x607   :  { %5590 = vmatpush3.msra.mxu1 %v6784_v8 }
 0x608   :  { %5591 = vmatprep.subr.mxu1 %v6325_v15 }
 0x609   :  { %5592 = vmatpush3.msra.mxu1 %v6788_v26 }
 0x60a   :  { %5593 = vmatprep.subr.mxu1 %v6325_v15 }
 0x6c4   :  { %v923_v10 = vpop.f32.mrf.mxu1 }
 0x6c5   :  { %v998_v56 = vadd.f32 %v6664_v22, %v923_v10 }
 0x6c6   :  { %v5568_v59 = vpop.f32.mrf.mxu1 }
 0x6c7   :  { %v1075_v62 = vadd.f32 %v6686_v42, %v998_v56 }
 0x6c9   :  { %v1082_v0 = vadd.f32 %v6772_v57, %v1075_v62 }
 0x6cb   :  { %5937 = vtanh.f32 %v1082_v0  ;;  %v5263_v6 = vmul.f32 -1.442695, %v1082_v0 }
 0x6cd   :  { %5939 = vpow2.f32 %v5263_v6 }
 0x6d8   :  { %v5938_v5 = vpop.eup %5937 }
 0x6d9   :  { %1092 = vrot.lane.b32.xlu0 %v5938_v5, %s6329_s25 }
 0x6da   :  { %v5940_v13 = vpop.eup %5939 }
 0x6db   :  { %v1086_v14 = vadd.f32 1.0, %v5940_v13 }
 0x6dd   :  { %5941 = vrcp.f32 %v1086_v14 }
 0x6ea   :  { %v5942_v16 = vpop.eup %5941 }
 0x6eb   :  { %v1090_v21 = vmul.f32 %v5942_v16, %v6607_v60  ;;  %v6792_v60 = vld [vmem:[#allocation18] sm:$0xff] }
 0x6ec   :  { %5594 = vmatpush3.msra.mxu1 %v6792_v60 }
 0x6ed   :  { %5609 = vmatprep.subr.mxu1 %v6325_v15 }
 0x74b   :  { %v1093_v22 = vpop.permute.xlu0 %1092 }
 0x74c   :  { %v1095_v17 = vmul.f32 %v5942_v16, %v1093_v22 }
 0x74e   :  { %1097 = vrot.lane.b32.xlu0 %v1095_v17, %s6318_s8 }
 0x7c0   :  { %v1098_v42 = vpop.permute.xlu0 %1097 }
 0x7c1   :  { %v6779_v24 = vadd.f32 %v1098_v42, %v1090_v21 }
 0x7c3   :  { %5943 = vtanh.f32 %v6779_v24 }
 0x7d0   :  { %v5944_v30 = vpop.eup %5943 }
 0x7d1   :  { %1103 = vrot.lane.b32.xlu0 %v5944_v30, %s6329_s25 }
 0x843   :  { %v1104_v31 = vpop.permute.xlu0 %1103 }
 0x844   :  { %v1106_v34 = vmul.f32 %v5942_v16, %v1104_v31 }
 0x846   :  { %1119 = vrot.lane.b32.xlu1 %v1106_v34, %s6318_s8 }
 0x8b8   :  { %v6800_v35 = vpop.permute.xlu1 %1119 }
 0x8b9   :  { %5596 = vmatmul.mubr.msk.f32.vlgmr.msra.gmra.mxu1 %vm322_vm2, %v6800_v35  ;;  %5607 = vmatmul.mubr.msk.f32.vlgmr.msra.gmra.mxu0 %vm322_vm2, %v6800_v35 }
 0x8ba   :  { %5610 = vmatpush3.msra.mxu1 %v6728_v40  ;;  %5621 = vmatpush3.msra.mxu0 %v6609_v61  ;;  %v6825_v61 = vld [vmem:[%s7604_s18] ss:$0 sm:$0xff] }
 0x8bb   :  { %5611 = vmatprep.subr.mxu1 %v6325_v15  ;;  %5622 = vmatprep.subr.mxu0 %v6325_v15 }
 0x8bc   :  { %5612 = vmatpush3.msra.mxu1 %v6730_v41  ;;  %5617 = vmatprep.mubr.msk.f32.mxu1 %vm6326_vm1, %v6325_v15 }
 0x8bd   :  { %5613 = vmatprep.subr.mxu1 %v6325_v15  ;;  %5623 = vmatpush3.msra.mxu0 %v6613_v63 }
 0x8be   :  { %5614 = vmatpush3.msra.mxu1 %v6734_v43  ;;  %5624 = vmatprep.mubr.msk.f32.mxu0 %vm6326_vm1, %v6325_v15 }
 0x8bf   :  { %5615 = vmatprep.subr.mxu1 %v6325_v15  ;;  %5638 = vmatprep.subr.mxu0 %v6325_v15 }
 0x8c0   :  { %5616 = vmatpush3.msra.mxu1 %v6738_v44 }
 0x8c1   :  { %5627 = vmatprep.subr.mxu1 %v6325_v15 }
 0x979   :  { %v1189_v36 = vpop.f32.mrf.mxu1  ;;  %v1293_v63 = vpop.f32.mrf.mxu0 }
 0x97a   :  { %v1190_v39 = vadd.f32 %v6825_v61, %v1189_v36  ;;  %v1294_v45 = vadd.f32 %v6654_v11, %v1293_v63 }
 0x97b   :  { %v5597_v46 = vpop.f32.mrf.mxu1  ;;  %v5608_v47 = vpop.f32.mrf.mxu0 }
 0x97c   :  { %1194 = vst.msk [vmem:[#allocation20] sm:$0x3] %vm1193_vm7, %v1190_v39  ;;  %v1304_v48 = vrot.slane %v1294_v45, %v6657_v12 }
 0x97e   :  { %v1305_v49 = vcombine.high %v1304_v48, %v1304_v48  ;;  %v1312_v54 = vrot.slane %v1304_v48, %v6657_v12 }
 0x980   :  { %v1319_v55 = vrot.slane %v1305_v49, %v6657_v12  ;;  %v1323_v10 = vrot.slane %v1312_v54, %v6662_v19 }
 0x982   :  { %v1331_v56 = vadd.f32 %v1323_v10, %v6667_v27  ;;  %v1330_v59 = vadd.f32 %v1323_v10, %v6669_v28  ;;  %v1327_v62 = vrot.slane %v1319_v55, %v6662_v19 }
 0x984   :  { %v1335_v0 = vmax.f32 %v1331_v56, 0.0  ;;  %v1334_v5 = vmax.f32 %v1330_v59, 0.0  ;;  %v1332_v6 = vadd.f32 %v1327_v62, %v6677_v33  ;;  %v1333_v13 = vadd.f32 %v1327_v62, %v6674_v32 }
 0x986   :  { %v1339_v14 = vmul.f32 %v6682_v37, %v1335_v0  ;;  %v1338_v16 = vmul.f32 %v6682_v37, %v1334_v5  ;;  %v1336_v22 = vmax.f32 %v1332_v6, 0.0  ;;  %v1337_v30 = vmax.f32 %v1333_v13, 0.0 }
 0x988   :  { %v1345_v17 = vsel %vm322_vm2, %v1339_v14, 0.0  ;;  %v1342_v21 = vsel %vm322_vm2, %v1338_v16, 0.0  ;;  %v1340_v42 = vmul.f32 %v6682_v37, %v1336_v22  ;;  %v1341_v34 = vmul.f32 %v6682_v37, %v1337_v30 }
 0x989   :  { %1346 = vadd.xlane.f32.xlu1 %v1345_v17  ;;  %1343 = vadd.xlane.f32.xlu0 %v1342_v21 }
 0x98a   :  { %v1348_v31 = vsel %vm322_vm2, %v1340_v42, 0.0  ;;  %v1351_v36 = vsel %vm322_vm2, %v1341_v34, 0.0 }
 0x98d   :  { %1349 = vadd.xlane.f32.xlu0 %v1348_v31 }
 0x991   :  { %1352 = vadd.xlane.f32.xlu0 %v1351_v36 }
 0x9a7   :  { %1361 = vperm.xlu0 %5925, %v6696_v58  }
 0xa12   :  { %v1344_v63 = vpop.xlane.xlu0 %1343  ;;  %v1347_v46 = vpop.xlane.xlu1 %1346 }
 0xa16   :  { %v1350_v39 = vpop.xlane.xlu0 %1349 }
 0xa1a   :  { %v1353_v45 = vpop.xlane.xlu0 %1352 }
 0xa22   :  { %v1362_v47 = vpop.permute.xlu0 %1361 }
 0xa23   :  { %v1364_v48 = vadd.f32 %v1362_v47, %v1344_v63  ;;  %v1365_v49 = vadd.f32 %v1362_v47, %v1347_v46  ;;  %v1366_v54 = vadd.f32 %v1362_v47, %v1350_v39  ;;  %v1367_v55 = vadd.f32 %v1362_v47, %v1353_v45 }
 0xa25   :  { %v1375_v10 = vrot.slane %v1364_v48, %v6700_v7  ;;  %v1379_v56 = vrot.slane %v1365_v49, %v6703_v9  ;;  %v1384_v59 = vrot.slane %v1366_v54, %v6700_v7  ;;  %v1388_v62 = vrot.slane %v1367_v55, %v6703_v9 }
 0xa27   :  { %v1380_v0 = vsel %vm708_vm5, %v1379_v56, %v1375_v10  ;;  %v1389_v5 = vsel %vm708_vm5, %v1388_v62, %v1384_v59 }
 0xa28   :  { %v1390_v6 = vsel %vm454_vm3, %v1389_v5, %v1380_v0 }
 0xa29   :  { %v1392_v13 = vsel %vm721_vm6, %v1390_v6, -inf }
 0xa2a   :  { %1393 = vmax.xlane.f32.xlu1 %v1392_v13 }
 0xab3   :  { %v1394_v14 = vpop.xlane.xlu1 %1393 }
 0xab4   :  { %v1399_v16 = vrot.slane %v1394_v14, %v6662_v19  ;;  %v1403_v22 = vrot.slane %v1394_v14, %v6714_v38 }
 0xab6   :  { %v1406_v17 = vsub.f32 %v1364_v48, %v1399_v16  ;;  %v1407_v21 = vsub.f32 %v1365_v49, %v1399_v16  ;;  %v1408_v42 = vsub.f32 %v1366_v54, %v1403_v22  ;;  %v1409_v34 = vsub.f32 %v1367_v55, %v1403_v22 }
 0xab8   :  { %v1410_v30 = vmul.f32 1.442695, %v1406_v17  ;;  %v1412_v31 = vmul.f32 1.442695, %v1407_v21  ;;  %v1414_v36 = vmul.f32 1.442695, %v1408_v42 }
 0xab9   :  { %v1416_v63 = vmul.f32 1.442695, %v1409_v34  ;;  %v1516_v34 = vld [vmem:[#allocation3 + $0x2] sm:$0x3] }
 0xaba   :  { %5945 = vpow2.f32 %v1410_v30  ;;  %5625 = vmatmul.mubr.msk.f32.vlgmr.msra.gmra.mxu0 %vm927_vm4, %v1516_v34 }
 0xabb   :  { %5947 = vpow2.f32 %v1412_v31  ;;  %5639 = vmatpush3.msra.mxu0 %v6782_v25  ;;  %5646 = vmatprep.mubr.msk.f32.mxu0 %vm6326_vm1, %v6325_v15 }
 0xabc   :  { %5949 = vpow2.f32 %v1414_v36  ;;  %5640 = vmatprep.subr.mxu0 %v6325_v15 }
 0xabd   :  { %5951 = vpow2.f32 %v1416_v63  ;;  %5641 = vmatpush3.msra.mxu0 %v6784_v8 }
 0xabe   :  { %5642 = vmatprep.subr.mxu0 %v6325_v15 }
 0xabf   :  { %5643 = vmatpush3.msra.mxu0 %v6788_v26 }
 0xac0   :  { %5644 = vmatprep.subr.mxu0 %v6325_v15 }
 0xac1   :  { %5645 = vmatpush3.msra.mxu0 %v6792_v60 }
 0xac2   :  { %5660 = vmatprep.subr.mxu0 %v6325_v15 }
 0xac7   :  { %v5946_v39 = vpop.eup %5945 }
 0xac8   :  { %v5948_v45 = vpop.eup %5947  ;;  %1423 = vperm.xlu1 %5926, %v5946_v39  }
 0xac9   :  { %1426 = vperm.xlu0 %5925, %v5948_v45   ;;  %v5950_v46 = vpop.eup %5949 }
 0xaca   :  { %v5952_v47 = vpop.eup %5951 }
 0xacd   :  { %1429 = vperm.xlu0 %5925, %v5950_v46  }
 0xad1   :  { %1432 = vperm.xlu0 %5925, %v5952_v47  }
 0xb43   :  { %v1424_v49 = vpop.permute.xlu1 %1423 }
 0xb44   :  { %v1427_v48 = vpop.permute.xlu0 %1426  ;;  %v1437_v55 = vrot.slane %v1424_v49, %v6700_v7 }
 0xb45   :  { %v1441_v10 = vrot.slane %v1427_v48, %v6703_v9 }
 0xb47   :  { %v1442_v0 = vsel %vm708_vm5, %v1441_v10, %v1437_v55 }
 0xb48   :  { %v1430_v54 = vpop.permute.xlu0 %1429 }
 0xb49   :  { %v1446_v59 = vrot.slane %v1430_v54, %v6700_v7 }
 0xb4c   :  { %v1433_v56 = vpop.permute.xlu0 %1432 }
 0xb4d   :  { %v1450_v62 = vrot.slane %v1433_v56, %v6703_v9 }
 0xb4f   :  { %v1451_v5 = vsel %vm708_vm5, %v1450_v62, %v1446_v59 }
 0xb50   :  { %v1452_v6 = vsel %vm454_vm3, %v1451_v5, %v1442_v0 }
 0xb51   :  { %v1454_v13 = vsel %vm721_vm6, %v1452_v6, 0.0 }
 0xb52   :  { %1455 = vadd.xlane.f32.xlu1 %v1454_v13 }
 0xbdb   :  { %v1456_v14 = vpop.xlane.xlu1 %1455 }
 0xbdc   :  { %5953 = vrcp.f32 %v1456_v14 }
 0xbe9   :  { %v5954_v16 = vpop.eup %5953 }
 0xbea   :  { %v1462_v22 = vrot.slane %v5954_v16, %v6662_v19  ;;  %v1466_v42 = vrot.slane %v5954_v16, %v6714_v38 }
 0xbec   :  { %v1469_v17 = vmul.f32 %v5946_v39, %v1462_v22  ;;  %v1470_v21 = vmul.f32 %v5948_v45, %v1462_v22  ;;  %v1471_v30 = vmul.f32 %v5950_v46, %v1466_v42  ;;  %v1472_v31 = vmul.f32 %v5952_v47, %v1466_v42 }
 0xbee   :  { %1475 = vperm.xlu0 %5925, %v1469_v17  }
 0xbf2   :  { %1480 = vperm.xlu0 %5925, %v1470_v21  }
 0xbf6   :  { %1485 = vperm.xlu0 %5925, %v1471_v30  }
 0xbfa   :  { %1490 = vperm.xlu0 %5925, %v1472_v31  }
 0xc69   :  { %v1476_v36 = vpop.permute.xlu0 %1475 }
 0xc6a   :  { %v1493_v63 = vmul.f32 %v1476_v36, %v6540_v20  ;;  %v1862_v62 = vrot.slane %v1476_v36, %v6700_v7 }
 0xc6c   :  { %v1497_v46 = vsel %vm322_vm2, %v1493_v63, 0.0 }
 0xc6d   :  { %v1481_v39 = vpop.permute.xlu0 %1480 }
 0xc6e   :  { %v1494_v45 = vmul.f32 %v1481_v39, %v6538_v18  ;;  %v1866_v10 = vrot.slane %v1481_v39, %v6703_v9 }
 0xc70   :  { %v1498_v47 = vsel %vm322_vm2, %v1494_v45, 0.0  ;;  %v1867_v13 = vsel %vm708_vm5, %v1866_v10, %v1862_v62 }
 0xc71   :  { %v1499_v48 = vadd.f32 %v1498_v47, %v1497_v46  ;;  %v1486_v49 = vpop.permute.xlu0 %1485 }
 0xc72   :  { %v1495_v55 = vmul.f32 %v1486_v49, %v6558_v29  ;;  %v1871_v0 = vrot.slane %v1486_v49, %v6700_v7 }
 0xc73   :  { %v1500_v54 = vrot.slane %v1499_v48, 4 }
 0xc74   :  { %v1506_v14 = vsel %vm322_vm2, %v1495_v55, 0.0 }
 0xc75   :  { %v1501_v56 = vadd.f32 %v1500_v54, %v1499_v48  ;;  %v1491_v59 = vpop.permute.xlu0 %1490 }
 0xc76   :  { %v1496_v5 = vmul.f32 %v1491_v59, %v6545_v23  ;;  %v1875_v6 = vrot.slane %v1491_v59, %v6703_v9 }
 0xc77   :  { %v1502_v17 = vrot.slane %v1501_v56, 2 }
 0xc78   :  { %v1507_v16 = vsel %vm322_vm2, %v1496_v5, 0.0  ;;  %v1876_v22 = vsel %vm708_vm5, %v1875_v6, %v1871_v0 }
 0xc79   :  { %v1508_v21 = vadd.f32 %v1507_v16, %v1506_v14  ;;  %v1877_v42 = vsel %vm454_vm3, %v1876_v22, %v1867_v13  ;;  %v1503_v31 = vadd.f32 %v1502_v17, %v1501_v56 }
 0xc7a   :  { %1880 = vst.msk [vmem:[#allocation21 + $0x2] sm:$0x3] %vm721_vm6, %v1877_v42 }
 0xc7b   :  { %v1509_v30 = vrot.slane %v1508_v21, 4  ;;  %v1504_v39 = vrot.slane %v1503_v31, 1 }
 0xc7d   :  { %v1510_v34 = vadd.f32 %v1509_v30, %v1508_v21  ;;  %v1505_v46 = vadd.f32 %v1504_v39, %v1503_v31 }
 0xc7f   :  { %v1511_v36 = vrot.slane %v1510_v34, 2 }
 0xc81   :  { %v1512_v63 = vadd.f32 %v1511_v36, %v1510_v34 }
 0xc83   :  { %v1513_v45 = vrot.slane %v1512_v63, 1 }
 0xc85   :  { %v1514_v47 = vadd.f32 %v1513_v45, %v1512_v63 }
 0xc87   :  { %v1525_v48 = vsel %vm454_vm3, %v1514_v47, %v1505_v46 }
 0xc88   :  { %5618 = vmatmul.mubr.msk.f32.vlgmr.msra.gmra.mxu1 %vm322_vm2, %v1525_v48 }
 0xc89   :  { %5628 = vmatpush3.msra.mxu1 %v6619_v1  ;;  %5635 = vmatprep.mubr.msk.f32.mxu1 %vm6326_vm1, %v6325_v15  ;;  %v1667_v1 = vpop.f32.mrf.mxu0 }
 0xc8a   :  { %5629 = vmatprep.subr.mxu1 %v6325_v15 }
 0xc8b   :  { %5630 = vmatpush3.msra.mxu1 %v6624_v2  ;;  %v5626_v2 = vpop.f32.mrf.mxu0 }
 0xc8c   :  { %5631 = vmatprep.subr.mxu1 %v6325_v15 }
 0xc8d   :  { %5632 = vmatpush3.msra.mxu1 %v6630_v3 }
 0xc8e   :  { %5633 = vmatprep.subr.mxu1 %v6325_v15 }
 0xc8f   :  { %5634 = vmatpush3.msra.mxu1 %v6634_v4 }
 0xc90   :  { %5636 = vmatmul.mubr.msk.f32.vlgmr.msra.gmra.mxu1 %vm322_vm2, %v6800_v35  ;;  %5649 = vmatprep.subr.mxu1 %v6325_v15 }
 0xc91   :  { %5650 = vmatpush3.msra.mxu1 %v6584_v50  ;;  %5657 = vmatprep.mubr.msk.f32.mxu1 %vm6326_vm1, %v6325_v15 }
 0xc92   :  { %5651 = vmatprep.subr.mxu1 %v6325_v15 }
 0xc93   :  { %5652 = vmatpush3.msra.mxu1 %v6586_v51 }
 0xc94   :  { %5653 = vmatprep.subr.mxu1 %v6325_v15 }
 0xc95   :  { %5654 = vmatpush3.msra.mxu1 %v6590_v52 }
 0xc96   :  { %5655 = vmatprep.subr.mxu1 %v6325_v15 }
 0xc97   :  { %5656 = vmatpush3.msra.mxu1 %v6596_v53 }
 0xc98   :  { %5671 = vmatprep.subr.mxu1 %v6325_v15 }
 0xd48   :  { %v1594_v50 = vpop.f32.mrf.mxu1 }
 0xd49   :  { %v1668_v4 = vadd.f32 %v1667_v1, %v1594_v50 }
 0xd4a   :  { %v5619_v3 = vpop.f32.mrf.mxu1 }
 0xd50   :  { %v1741_v35 = vpop.f32.mrf.mxu1 }
 0xd51   :  { %v1745_v49 = vadd.f32 %v1741_v35, %v1668_v4 }
 0xd52   :  { %v5637_v54 = vpop.f32.mrf.mxu1 }
 0xd53   :  { %v1746_v51 = vadd.f32 %v1745_v49, %v6772_v57 }
 0xd55   :  { %5955 = vtanh.f32 %v1746_v51  ;;  %v5272_v52 = vmul.f32 -1.442695, %v1746_v51 }
 0xd57   :  { %5957 = vpow2.f32 %v5272_v52 }
 0xd62   :  { %v5956_v10 = vpop.eup %5955 }
 0xd63   :  { %1756 = vrot.lane.b32.xlu0 %v5956_v10, %s6329_s25 }
 0xd64   :  { %v5958_v55 = vpop.eup %5957 }
 0xd65   :  { %v1750_v53 = vadd.f32 1.0, %v5958_v55 }
 0xd67   :  { %5959 = vrcp.f32 %v1750_v53 }
 0xd74   :  { %v5960_v56 = vpop.eup %5959 }
 0xd75   :  { %v1754_v0 = vmul.f32 %v5960_v56, %v6779_v24 }
 0xdd5   :  { %v1757_v59 = vpop.permute.xlu0 %1756 }
 0xdd6   :  { %v1759_v62 = vmul.f32 %v5960_v56, %v1757_v59 }
 0xdd8   :  { %1761 = vrot.lane.b32.xlu0 %v1759_v62, %s6318_s8 }
 0xe4a   :  { %v1762_v5 = vpop.permute.xlu0 %1761 }
 0xe4b   :  { %v6923_v6 = vadd.f32 %v1762_v5, %v1754_v0 }
 0xe4d   :  { %5961 = vtanh.f32 %v6923_v6 }
 0xe5a   :  { %v5962_v13 = vpop.eup %5961 }
 0xe5b   :  { %1767 = vrot.lane.b32.xlu0 %v5962_v13, %s6329_s25 }
 0xecd   :  { %v1768_v14 = vpop.permute.xlu0 %1767 }
 0xece   :  { %v1770_v16 = vmul.f32 %v5960_v56, %v1768_v14 }
 0xed0   :  { %1783 = vrot.lane.b32.xlu0 %v1770_v16, %s6318_s8 }
 0xf42   :  { %v6928_v22 = vpop.permute.xlu0 %1783 }
 0xf43   :  { %5647 = vmatmul.mubr.msk.f32.vlgmr.msra.gmra.mxu0 %vm322_vm2, %v6928_v22  ;;  %5658 = vmatmul.mubr.msk.f32.vlgmr.msra.gmra.mxu1 %vm322_vm2, %v6928_v22 }
 0xf44   :  { %5661 = vmatpush3.msra.mxu0 %v6728_v40  ;;  %5668 = vmatprep.mubr.msk.f32.mxu0 %vm6326_vm1, %v6325_v15 }
 0xf45   :  { %5662 = vmatprep.subr.mxu0 %v6325_v15  ;;  %5675 = vmatprep.mubr.msk.f32.mxu1 %vm6326_vm1, %v6325_v15 }
 0xf46   :  { %5663 = vmatpush3.msra.mxu0 %v6730_v41 }
 0xf47   :  { %5664 = vmatprep.subr.mxu0 %v6325_v15 }
 0xf48   :  { %5665 = vmatpush3.msra.mxu0 %v6734_v43 }
 0xf49   :  { %5666 = vmatprep.subr.mxu0 %v6325_v15 }
 0xf4a   :  { %5667 = vmatpush3.msra.mxu0 %v6738_v44 }
 0xf4b   :  { %5678 = vmatprep.subr.mxu0 %v6325_v15 }
0x1003   :  { %v1853_v40 = vpop.f32.mrf.mxu0  ;;  %v1958_v24 = vpop.f32.mrf.mxu1 }
0x1004   :  { %v1854_v17 = vadd.f32 %v6825_v61, %v1853_v40  ;;  %v1959_v21 = vadd.f32 %v6654_v11, %v1958_v24 }
0x1005   :  { %v5648_v42 = vpop.f32.mrf.mxu0  ;;  %v5659_v30 = vpop.f32.mrf.mxu1 }
0x1006   :  { %1858 = vst.msk [vmem:[#allocation20 + $0x2] sm:$0x3] %vm1193_vm7, %v1854_v17  ;;  %v1969_v41 = vrot.slane %v1959_v21, %v6657_v12 }
0x1008   :  { %v1970_v31 = vcombine.high %v1969_v41, %v1969_v41  ;;  %v1977_v43 = vrot.slane %v1969_v41, %v6657_v12 }
0x100a   :  { %v1984_v34 = vrot.slane %v1970_v31, %v6657_v12  ;;  %v1988_v44 = vrot.slane %v1977_v43, %v6662_v19 }
0x100c   :  { %v1996_v36 = vadd.f32 %v1988_v44, %v6667_v27  ;;  %v1995_v63 = vadd.f32 %v1988_v44, %v6669_v28  ;;  %v1992_v39 = vrot.slane %v1984_v34, %v6662_v19 }
0x100e   :  { %v2000_v11 = vmax.f32 %v1996_v36, 0.0  ;;  %v1999_v45 = vmax.f32 %v1995_v63, 0.0  ;;  %v1997_v46 = vadd.f32 %v1992_v39, %v6677_v33  ;;  %v1998_v47 = vadd.f32 %v1992_v39, %v6674_v32 }
0x1010   :  { %v2004_v48 = vmul.f32 %v6682_v37, %v2000_v11  ;;  %v2003_v1 = vmul.f32 %v6682_v37, %v1999_v45  ;;  %v2001_v2 = vmax.f32 %v1997_v46, 0.0  ;;  %v2002_v35 = vmax.f32 %v1998_v47, 0.0 }
0x1012   :  { %v2010_v50 = vsel %vm322_vm2, %v2004_v48, 0.0  ;;  %v2007_v3 = vsel %vm322_vm2, %v2003_v1, 0.0  ;;  %v2005_v4 = vmul.f32 %v6682_v37, %v2001_v2  ;;  %v2006_v54 = vmul.f32 %v6682_v37, %v2002_v35 }
0x1013   :  { %2011 = vadd.xlane.f32.xlu1 %v2010_v50  ;;  %2008 = vadd.xlane.f32.xlu0 %v2007_v3 }
0x1014   :  { %v2013_v49 = vsel %vm322_vm2, %v2005_v4, 0.0  ;;  %v2016_v51 = vsel %vm322_vm2, %v2006_v54, 0.0 }
0x1017   :  { %2014 = vadd.xlane.f32.xlu1 %v2013_v49 }
0x101b   :  { %2017 = vadd.xlane.f32.xlu1 %v2016_v51 }
0x102c   :  { %2026 = vperm.xlu1 %5926, %v6696_v58  }
0x109c   :  { %v2012_v10 = vpop.xlane.xlu1 %2011  ;;  %v2009_v53 = vpop.xlane.xlu0 %2008 }
0x10a0   :  { %v2015_v52 = vpop.xlane.xlu1 %2014 }
0x10a4   :  { %v2018_v55 = vpop.xlane.xlu1 %2017 }
0x10a8   :  { %v2027_v56 = vpop.permute.xlu1 %2026 }
0x10a9   :  { %v2029_v59 = vadd.f32 %v2027_v56, %v2009_v53  ;;  %v2030_v62 = vadd.f32 %v2027_v56, %v2012_v10  ;;  %v2031_v0 = vadd.f32 %v2027_v56, %v2015_v52  ;;  %v2032_v5 = vadd.f32 %v2027_v56, %v2018_v55 }
0x10ab   :  { %v2040_v13 = vrot.slane %v2029_v59, %v6700_v7  ;;  %v2044_v14 = vrot.slane %v2030_v62, %v6703_v9  ;;  %v2049_v37 = vrot.slane %v2031_v0, %v6700_v7  ;;  %v2053_v16 = vrot.slane %v2032_v5, %v6703_v9 }
0x10ad   :  { %v2045_v40 = vsel %vm708_vm5, %v2044_v14, %v2040_v13  ;;  %v2054_v58 = vsel %vm708_vm5, %v2053_v16, %v2049_v37  ;;  %v6987_v14 = vld [vmem:[#allocation14 + $0x8] sm:$0xff]  ;;  %v6989_v37 = vld [vmem:[#allocation14] sm:$0xff] }
0x10ae   :  { %v2055_v24 = vsel %vm454_vm3, %v2054_v58, %v2045_v40  ;;  %5672 = vmatpush3.msra.mxu1 %v6987_v14  ;;  %v2181_v16 = vld [vmem:[#allocation3 + $0x4] sm:$0x3] }
0x10af   :  { %v2057_v17 = vsel %vm721_vm6, %v2055_v24, -inf  ;;  %5673 = vmatprep.subr.mxu1 %v6325_v15 }
0x10b0   :  { %2058 = vmax.xlane.f32.xlu0 %v2057_v17  ;;  %5674 = vmatpush3.msra.mxu1 %v6989_v37 }
0x10b1   :  { %5689 = vmatprep.subr.mxu1 %v6325_v15  ;;  %5676 = vmatmul.mubr.msk.f32.vlgmr.msra.gmra.mxu1 %vm927_vm4, %v2181_v16 }
0x10b2   :  { %5690 = vmatpush3.msra.mxu1 %v6782_v25  ;;  %5697 = vmatprep.mubr.msk.f32.mxu1 %vm6326_vm1, %v6325_v15 }
0x10b3   :  { %5691 = vmatprep.subr.mxu1 %v6325_v15 }
0x10b4   :  { %5692 = vmatpush3.msra.mxu1 %v6784_v8 }
0x10b5   :  { %5693 = vmatprep.subr.mxu1 %v6325_v15 }
0x10b6   :  { %5694 = vmatpush3.msra.mxu1 %v6788_v26 }
0x10b7   :  { %5695 = vmatprep.subr.mxu1 %v6325_v15 }
0x10b8   :  { %5696 = vmatpush3.msra.mxu1 %v6792_v60 }
0x10b9   :  { %5711 = vmatprep.subr.mxu1 %v6325_v15 }
0x1139   :  { %v2059_v21 = vpop.xlane.xlu0 %2058 }
0x113a   :  { %v2064_v42 = vrot.slane %v2059_v21, %v6662_v19  ;;  %v2068_v30 = vrot.slane %v2059_v21, %v6714_v38 }
0x113c   :  { %v2071_v41 = vsub.f32 %v2029_v59, %v2064_v42  ;;  %v2072_v31 = vsub.f32 %v2030_v62, %v2064_v42  ;;  %v2073_v43 = vsub.f32 %v2031_v0, %v2068_v30  ;;  %v2074_v36 = vsub.f32 %v2032_v5, %v2068_v30 }
0x113e   :  { %v2075_v34 = vmul.f32 1.442695, %v2071_v41  ;;  %v2077_v44 = vmul.f32 1.442695, %v2072_v31  ;;  %v2079_v63 = vmul.f32 1.442695, %v2073_v43 }
0x113f   :  { %v2081_v39 = vmul.f32 1.442695, %v2074_v36 }
0x1140   :  { %5963 = vpow2.f32 %v2075_v34 }
0x1141   :  { %5965 = vpow2.f32 %v2077_v44 }
0x1142   :  { %5967 = vpow2.f32 %v2079_v63 }
0x1143   :  { %5969 = vpow2.f32 %v2081_v39 }
0x114d   :  { %v5964_v11 = vpop.eup %5963 }
0x114e   :  { %v5966_v45 = vpop.eup %5965  ;;  %2088 = vperm.xlu1 %5926, %v5964_v11  }
0x114f   :  { %2091 = vperm.xlu0 %5925, %v5966_v45   ;;  %v5968_v46 = vpop.eup %5967 }
0x1150   :  { %v5970_v47 = vpop.eup %5969 }
0x1152   :  { %2094 = vperm.xlu1 %5926, %v5968_v46  }
0x1156   :  { %2097 = vperm.xlu1 %5926, %v5970_v47  }
0x11c9   :  { %v2089_v48 = vpop.permute.xlu1 %2088 }
0x11ca   :  { %v2092_v1 = vpop.permute.xlu0 %2091  ;;  %v2102_v3 = vrot.slane %v2089_v48, %v6700_v7 }
0x11cb   :  { %v2106_v50 = vrot.slane %v2092_v1, %v6703_v9 }
0x11cd   :  { %v2095_v2 = vpop.permute.xlu1 %2094  ;;  %v2107_v54 = vsel %vm708_vm5, %v2106_v50, %v2102_v3 }
0x11ce   :  { %v2111_v35 = vrot.slane %v2095_v2, %v6700_v7 }
0x11d1   :  { %v2098_v4 = vpop.permute.xlu1 %2097 }
0x11d2   :  { %v2115_v49 = vrot.slane %v2098_v4, %v6703_v9 }
0x11d4   :  { %v2116_v51 = vsel %vm708_vm5, %v2115_v49, %v2111_v35 }
0x11d5   :  { %v2117_v10 = vsel %vm454_vm3, %v2116_v51, %v2107_v54 }
0x11d6   :  { %v2119_v52 = vsel %vm721_vm6, %v2117_v10, 0.0  ;;  %v7022_v10 = vld [vmem:[#allocation17 + $0x18] sm:$0xff] }
0x11d7   :  { %2120 = vadd.xlane.f32.xlu1 %v2119_v52 }
0x1260   :  { %v2121_v55 = vpop.xlane.xlu1 %2120 }
0x1261   :  { %5971 = vrcp.f32 %v2121_v55  ;;  %v7026_v55 = vld [vmem:[#allocation17 + $0x10] sm:$0xff] }
0x126e   :  { %v5972_v53 = vpop.eup %5971 }
0x126f   :  { %v2127_v56 = vrot.slane %v5972_v53, %v6662_v19  ;;  %v2131_v0 = vrot.slane %v5972_v53, %v6714_v38  ;;  %v7032_v53 = vld [vmem:[#allocation17 + $0x8] sm:$0xff] }
0x1271   :  { %v2134_v59 = vmul.f32 %v5964_v11, %v2127_v56  ;;  %v2135_v62 = vmul.f32 %v5966_v45, %v2127_v56  ;;  %v2136_v5 = vmul.f32 %v5968_v46, %v2131_v0  ;;  %v2137_v13 = vmul.f32 %v5970_v47, %v2131_v0  ;;  %v7036_v56 = vld [vmem:[#allocation17] sm:$0xff] }
0x1273   :  { %2140 = vperm.xlu0 %5925, %v2134_v59   ;;  %v2332_v59 = vpop.f32.mrf.mxu1 }
0x1277   :  { %2145 = vperm.xlu0 %5925, %v2135_v62   ;;  %v5677_v62 = vpop.f32.mrf.mxu1 }
0x127b   :  { %2150 = vperm.xlu0 %5925, %v2136_v5  }
0x127f   :  { %2155 = vperm.xlu0 %5925, %v2137_v13  }
0x12ee   :  { %v2141_v40 = vpop.permute.xlu0 %2140 }
0x12ef   :  { %v2158_v25 = vmul.f32 %v2141_v40, %v6540_v20  ;;  %v2527_v43 = vrot.slane %v2141_v40, %v6700_v7 }
0x12f1   :  { %v2162_v17 = vsel %vm322_vm2, %v2158_v25, 0.0 }
0x12f2   :  { %v2146_v58 = vpop.permute.xlu0 %2145 }
0x12f3   :  { %v2159_v24 = vmul.f32 %v2146_v58, %v6538_v18  ;;  %v2531_v26 = vrot.slane %v2146_v58, %v6703_v9 }
0x12f5   :  { %v2163_v8 = vsel %vm322_vm2, %v2159_v24, 0.0  ;;  %v2532_v63 = vsel %vm708_vm5, %v2531_v26, %v2527_v43  ;;  %v7055_v43 = vld [vmem:[#allocation9 + $0x10] sm:$0xff] }
0x12f6   :  { %v2164_v21 = vadd.f32 %v2163_v8, %v2162_v17  ;;  %v2151_v42 = vpop.permute.xlu0 %2150 }
0x12f7   :  { %v2160_v41 = vmul.f32 %v2151_v42, %v6558_v29  ;;  %v2536_v34 = vrot.slane %v2151_v42, %v6700_v7 }
0x12f8   :  { %v2165_v30 = vrot.slane %v2164_v21, 4 }
0x12f9   :  { %v2171_v39 = vsel %vm322_vm2, %v2160_v41, 0.0 }
0x12fa   :  { %v2166_v60 = vadd.f32 %v2165_v30, %v2164_v21  ;;  %v2156_v31 = vpop.permute.xlu0 %2155 }
0x12fb   :  { %v2161_v44 = vmul.f32 %v2156_v31, %v6545_v23  ;;  %v2540_v36 = vrot.slane %v2156_v31, %v6703_v9  ;;  %v7053_v31 = vld [vmem:[#allocation9 + $0x18] sm:$0xff] }
0x12fc   :  { %v2167_v46 = vrot.slane %v2166_v60, 2 }
0x12fd   :  { %v2172_v11 = vsel %vm322_vm2, %v2161_v44, 0.0  ;;  %v2541_v45 = vsel %vm708_vm5, %v2540_v36, %v2536_v34  ;;  %v7059_v34 = vld [vmem:[#allocation9 + $0x8] sm:$0xff] }
0x12fe   :  { %v2173_v47 = vadd.f32 %v2172_v11, %v2171_v39  ;;  %v2542_v48 = vsel %vm454_vm3, %v2541_v45, %v2532_v63  ;;  %v2168_v2 = vadd.f32 %v2167_v46, %v2166_v60  ;;  %v7085_v11 = vld [vmem:[#allocation11] ss:$0 sm:$0xff] }
0x12ff   :  { %2545 = vst.msk [vmem:[#allocation21 + $0x4] sm:$0x3] %vm721_vm6, %v2542_v48 }
0x1300   :  { %v2174_v1 = vrot.slane %v2173_v47, 4  ;;  %v2169_v4 = vrot.slane %v2168_v2, 1 }
0x1302   :  { %v2175_v50 = vadd.f32 %v2174_v1, %v2173_v47  ;;  %v2170_v54 = vadd.f32 %v2169_v4, %v2168_v2 }
0x1304   :  { %v2176_v3 = vrot.slane %v2175_v50, 2 }
0x1306   :  { %v2177_v35 = vadd.f32 %v2176_v3, %v2175_v50 }
0x1308   :  { %v2178_v49 = vrot.slane %v2177_v35, 1 }
0x130a   :  { %v2179_v51 = vadd.f32 %v2178_v49, %v2177_v35 }
0x130c   :  { %v2190_v52 = vsel %vm454_vm3, %v2179_v51, %v2170_v54 }
0x130d   :  { %5669 = vmatmul.mubr.msk.f32.vlgmr.msra.gmra.mxu0 %vm322_vm2, %v2190_v52 }
0x130e   :  { %5679 = vmatpush3.msra.mxu0 %v7022_v10  ;;  %5686 = vmatprep.mubr.msk.f32.mxu0 %vm6326_vm1, %v6325_v15 }
0x130f   :  { %5680 = vmatprep.subr.mxu0 %v6325_v15 }
0x1310   :  { %5681 = vmatpush3.msra.mxu0 %v7026_v55 }
0x1311   :  { %5682 = vmatprep.subr.mxu0 %v6325_v15 }
0x1312   :  { %5683 = vmatpush3.msra.mxu0 %v7032_v53 }
0x1313   :  { %5684 = vmatprep.subr.mxu0 %v6325_v15 }
0x1314   :  { %5685 = vmatpush3.msra.mxu0 %v7036_v56 }
0x1315   :  { %5687 = vmatmul.mubr.msk.f32.vlgmr.msra.gmra.mxu0 %vm322_vm2, %v6928_v22  ;;  %5700 = vmatprep.subr.mxu0 %v6325_v15 }
0x1316   :  { %5708 = vmatprep.mubr.msk.f32.mxu0 %vm6326_vm1, %v6325_v15  ;;  %5701 = vmatpush3.msra.mxu0 %v7053_v31 }
0x1317   :  { %5702 = vmatprep.subr.mxu0 %v6325_v15 }
0x1318   :  { %5703 = vmatpush3.msra.mxu0 %v7055_v43 }
0x1319   :  { %5704 = vmatprep.subr.mxu0 %v6325_v15 }
0x131a   :  { %5705 = vmatpush3.msra.mxu0 %v7059_v34 }
0x131b   :  { %5706 = vmatprep.subr.mxu0 %v6325_v15 }
0x13cd   :  { %v2259_v0 = vpop.f32.mrf.mxu0 }
0x13ce   :  { %v2333_v13 = vadd.f32 %v2332_v59, %v2259_v0 }
0x13cf   :  { %v5670_v5 = vpop.f32.mrf.mxu0 }
0x13d0   :  { %v7099_v5 = vld [vmem:[#allocation12] ss:$0 sm:$0xff] }
0x13d5   :  { %v2406_v16 = vpop.f32.mrf.mxu0 }
0x13d6   :  { %v2410_v40 = vadd.f32 %v2406_v16, %v2333_v13 }
0x13d7   :  { %v5688_v25 = vpop.f32.mrf.mxu0 }
0x13d8   :  { %v2411_v58 = vadd.f32 %v2410_v40, %v6772_v57 }
0x13da   :  { %5973 = vtanh.f32 %v2411_v58  ;;  %v5281_v22 = vmul.f32 -1.442695, %v2411_v58 }
0x13dc   :  { %5975 = vpow2.f32 %v5281_v22 }
0x13e7   :  { %v5974_v24 = vpop.eup %5973 }
0x13e8   :  { %2421 = vrot.lane.b32.xlu0 %v5974_v24, %s6329_s25 }
0x13e9   :  { %v5976_v17 = vpop.eup %5975 }
0x13ea   :  { %v2415_v8 = vadd.f32 1.0, %v5976_v17 }
0x13ec   :  { %5977 = vrcp.f32 %v2415_v8 }
0x13f9   :  { %v5978_v21 = vpop.eup %5977 }
0x13fa   :  { %v2419_v26 = vmul.f32 %v5978_v21, %v6923_v6  ;;  %v7063_v6 = vld [vmem:[#allocation9] sm:$0xff] }
0x13fb   :  { %5707 = vmatpush3.msra.mxu0 %v7063_v6 }
0x13fc   :  { %5722 = vmatprep.subr.mxu0 %v6325_v15 }
0x145a   :  { %v2422_v42 = vpop.permute.xlu0 %2421 }
0x145b   :  { %v2424_v30 = vmul.f32 %v5978_v21, %v2422_v42  ;;  %v7109_v42 = vld [vmem:[#allocation2] ss:$0 sm:$0xff] }
0x145d   :  { %2426 = vrot.lane.b32.xlu0 %v2424_v30, %s6318_s8 }
0x14cf   :  { %v2427_v41 = vpop.permute.xlu0 %2426 }
0x14d0   :  { %v7050_v60 = vadd.f32 %v2427_v41, %v2419_v26 }
0x14d2   :  { %5979 = vtanh.f32 %v7050_v60 }
0x14df   :  { %v5980_v44 = vpop.eup %5979 }
0x14e0   :  { %2432 = vrot.lane.b32.xlu1 %v5980_v44, %s6329_s25 }
0x1552   :  { %v2433_v36 = vpop.permute.xlu1 %2432 }
0x1553   :  { %v2435_v63 = vmul.f32 %v5978_v21, %v2433_v36 }
0x1555   :  { %2448 = vrot.lane.b32.xlu0 %v2435_v63, %s6318_s8 }
0x15c7   :  { %v7071_v39 = vpop.permute.xlu0 %2448 }
0x15c8   :  { %5698 = vmatmul.mubr.msk.f32.vlgmr.msra.gmra.mxu1 %vm322_vm2, %v7071_v39  ;;  %5709 = vmatmul.mubr.msk.f32.vlgmr.msra.gmra.mxu0 %vm322_vm2, %v7071_v39 }
0x15c9   :  { %5723 = vmatpush3.msra.mxu0 %v6987_v14  ;;  %5719 = vmatprep.mubr.msk.f32.mxu1 %vm6326_vm1, %v6325_v15 }
0x15ca   :  { %5724 = vmatprep.subr.mxu0 %v6325_v15  ;;  %5726 = vmatprep.mubr.msk.f32.mxu0 %vm6326_vm1, %v6325_v15 }
0x15cb   :  { %5725 = vmatpush3.msra.mxu0 %v6989_v37 }
0x15cc   :  { %5740 = vmatprep.subr.mxu0 %v6325_v15 }
0x1688   :  { %v2518_v45 = vpop.f32.mrf.mxu1  ;;  %v2623_v46 = vpop.f32.mrf.mxu0 }
0x1689   :  { %v2519_v47 = vadd.f32 %v6825_v61, %v2518_v45  ;;  %v2624_v48 = vadd.f32 %v7085_v11, %v2623_v46 }
0x168a   :  { %v5699_v1 = vpop.f32.mrf.mxu1  ;;  %v5710_v2 = vpop.f32.mrf.mxu0 }
0x168b   :  { %2523 = vst.msk [vmem:[#allocation20 + $0x4] sm:$0x3] %vm1193_vm7, %v2519_v47  ;;  %v2634_v50 = vrot.slane %v2624_v48, %v6657_v12 }
0x168d   :  { %v2635_v3 = vcombine.high %v2634_v50, %v2634_v50  ;;  %v2642_v4 = vrot.slane %v2634_v50, %v6657_v12 }
0x168f   :  { %v2649_v35 = vrot.slane %v2635_v3, %v6657_v12  ;;  %v2653_v49 = vrot.slane %v2642_v4, %v6662_v19 }
0x1691   :  { %v2661_v54 = vadd.f32 %v2653_v49, %v6667_v27  ;;  %v2660_v51 = vadd.f32 %v2653_v49, %v6669_v28  ;;  %v2657_v61 = vrot.slane %v2649_v35, %v6662_v19 }
0x1693   :  { %v2665_v52 = vmax.f32 %v2661_v54, 0.0  ;;  %v2664_v59 = vmax.f32 %v2660_v51, 0.0  ;;  %v2662_v62 = vadd.f32 %v2657_v61, %v6677_v33  ;;  %v2663_v0 = vadd.f32 %v2657_v61, %v6674_v32 }
0x1695   :  { %v2669_v13 = vmul.f32 %v7099_v5, %v2665_v52  ;;  %v2668_v16 = vmul.f32 %v7099_v5, %v2664_v59  ;;  %v2666_v40 = vmax.f32 %v2662_v62, 0.0  ;;  %v2667_v22 = vmax.f32 %v2663_v0, 0.0 }
0x1697   :  { %v2675_v25 = vsel %vm322_vm2, %v2669_v13, 0.0  ;;  %v2672_v58 = vsel %vm322_vm2, %v2668_v16, 0.0  ;;  %v2670_v24 = vmul.f32 %v7099_v5, %v2666_v40  ;;  %v2671_v8 = vmul.f32 %v7099_v5, %v2667_v22 }
0x1698   :  { %2676 = vadd.xlane.f32.xlu1 %v2675_v25  ;;  %2673 = vadd.xlane.f32.xlu0 %v2672_v58 }
0x1699   :  { %v2678_v17 = vsel %vm322_vm2, %v2670_v24, 0.0  ;;  %v2681_v21 = vsel %vm322_vm2, %v2671_v8, 0.0 }
0x169c   :  { %2679 = vadd.xlane.f32.xlu0 %v2678_v17 }
0x16a0   :  { %2682 = vadd.xlane.f32.xlu0 %v2681_v21 }
0x16b6   :  { %2691 = vperm.xlu0 %5925, %v7109_v42  }
0x1721   :  { %v2674_v30 = vpop.xlane.xlu0 %2673  ;;  %v2677_v44 = vpop.xlane.xlu1 %2676 }
0x1725   :  { %v2680_v26 = vpop.xlane.xlu0 %2679 }
0x1729   :  { %v2683_v41 = vpop.xlane.xlu0 %2682 }
0x1731   :  { %v2692_v36 = vpop.permute.xlu0 %2691 }
0x1732   :  { %v2694_v63 = vadd.f32 %v2692_v36, %v2674_v30  ;;  %v2695_v45 = vadd.f32 %v2692_v36, %v2677_v44  ;;  %v2696_v46 = vadd.f32 %v2692_v36, %v2680_v26  ;;  %v2697_v47 = vadd.f32 %v2692_v36, %v2683_v41 }
0x1734   :  { %v2705_v48 = vrot.slane %v2694_v63, %v6700_v7  ;;  %v2709_v1 = vrot.slane %v2695_v45, %v6703_v9  ;;  %v2714_v2 = vrot.slane %v2696_v46, %v6700_v7  ;;  %v2718_v50 = vrot.slane %v2697_v47, %v6703_v9 }
0x1736   :  { %v2710_v3 = vsel %vm708_vm5, %v2709_v1, %v2705_v48  ;;  %v2719_v4 = vsel %vm708_vm5, %v2718_v50, %v2714_v2 }
0x1737   :  { %v2720_v35 = vsel %vm454_vm3, %v2719_v4, %v2710_v3 }
0x1738   :  { %v2722_v49 = vsel %vm721_vm6, %v2720_v35, -inf }
0x1739   :  { %2723 = vmax.xlane.f32.xlu1 %v2722_v49 }
0x17c2   :  { %v2724_v54 = vpop.xlane.xlu1 %2723 }
0x17c3   :  { %v2729_v51 = vrot.slane %v2724_v54, %v6662_v19  ;;  %v2733_v61 = vrot.slane %v2724_v54, %v6714_v38 }
0x17c5   :  { %v2736_v52 = vsub.f32 %v2694_v63, %v2729_v51  ;;  %v2737_v59 = vsub.f32 %v2695_v45, %v2729_v51  ;;  %v2739_v62 = vsub.f32 %v2697_v47, %v2733_v61  ;;  %v2738_v0 = vsub.f32 %v2696_v46, %v2733_v61  ;;  %v7132_v51 = vld [vmem:[#allocation15 + $0x18] sm:$0xff]  ;;  %v7136_v61 = vld [vmem:[#allocation15 + $0x10] sm:$0xff] }
0x17c6   :  { %5712 = vmatpush3.msra.mxu1 %v7132_v51 }
0x17c7   :  { %v2740_v13 = vmul.f32 1.442695, %v2736_v52  ;;  %v2742_v16 = vmul.f32 1.442695, %v2737_v59  ;;  %v2746_v40 = vmul.f32 1.442695, %v2739_v62  ;;  %5713 = vmatprep.subr.mxu1 %v6325_v15 }
0x17c8   :  { %v2744_v25 = vmul.f32 1.442695, %v2738_v0  ;;  %v7138_v52 = vld [vmem:[#allocation15 + $0x8] sm:$0xff]  ;;  %5714 = vmatpush3.msra.mxu1 %v7136_v61  ;;  %v7142_v59 = vld [vmem:[#allocation15] sm:$0xff] }
0x17c9   :  { %5981 = vpow2.f32 %v2740_v13  ;;  %5715 = vmatprep.subr.mxu1 %v6325_v15  ;;  %v2846_v62 = vld [vmem:[#allocation3 + $0x6] sm:$0x3] }
0x17ca   :  { %5983 = vpow2.f32 %v2742_v16  ;;  %5716 = vmatpush3.msra.mxu1 %v7138_v52  ;;  %5727 = vmatmul.mubr.msk.f32.vlgmr.msra.gmra.mxu0 %vm927_vm4, %v2846_v62 }
0x17cb   :  { %5985 = vpow2.f32 %v2746_v40  ;;  %5717 = vmatprep.subr.mxu1 %v6325_v15  ;;  %5748 = vmatprep.mubr.msk.f32.mxu0 %vm6326_vm1, %v6325_v15 }
0x17cc   :  { %5987 = vpow2.f32 %v2744_v25  ;;  %5718 = vmatpush3.msra.mxu1 %v7142_v59 }
0x17cd   :  { %5729 = vmatprep.subr.mxu1 %v6325_v15 }
0x17d6   :  { %v5982_v58 = vpop.eup %5981 }
0x17d7   :  { %v5984_v24 = vpop.eup %5983  ;;  %2753 = vperm.xlu1 %5926, %v5982_v58  }
0x17d8   :  { %2756 = vperm.xlu0 %5925, %v5984_v24   ;;  %v5986_v22 = vpop.eup %5985 }
0x17d9   :  { %v5988_v17 = vpop.eup %5987 }
0x17db   :  { %2762 = vperm.xlu1 %5926, %v5986_v22  }
0x17dc   :  { %2759 = vperm.xlu0 %5925, %v5988_v17  }
0x1852   :  { %v2754_v8 = vpop.permute.xlu1 %2753 }
0x1853   :  { %v2757_v21 = vpop.permute.xlu0 %2756  ;;  %v2767_v26 = vrot.slane %v2754_v8, %v6700_v7 }
0x1854   :  { %v2771_v30 = vrot.slane %v2757_v21, %v6703_v9 }
0x1856   :  { %v2763_v41 = vpop.permute.xlu1 %2762  ;;  %v2772_v45 = vsel %vm708_vm5, %v2771_v30, %v2767_v26 }
0x1857   :  { %v2760_v44 = vpop.permute.xlu0 %2759  ;;  %v2780_v36 = vrot.slane %v2763_v41, %v6703_v9 }
0x1858   :  { %v2776_v63 = vrot.slane %v2760_v44, %v6700_v7 }
0x185a   :  { %v2781_v46 = vsel %vm708_vm5, %v2780_v36, %v2776_v63 }
0x185b   :  { %v2782_v47 = vsel %vm454_vm3, %v2781_v46, %v2772_v45 }
0x185c   :  { %v2784_v48 = vsel %vm721_vm6, %v2782_v47, 0.0 }
0x185d   :  { %2785 = vadd.xlane.f32.xlu0 %v2784_v48 }
0x18e6   :  { %v2786_v1 = vpop.xlane.xlu0 %2785 }
0x18e7   :  { %5989 = vrcp.f32 %v2786_v1 }
0x18f4   :  { %v5990_v2 = vpop.eup %5989 }
0x18f5   :  { %v2792_v50 = vrot.slane %v5990_v2, %v6662_v19  ;;  %v2796_v35 = vrot.slane %v5990_v2, %v6714_v38 }
0x18f7   :  { %v2799_v3 = vmul.f32 %v5982_v58, %v2792_v50  ;;  %v2800_v4 = vmul.f32 %v5984_v24, %v2792_v50  ;;  %v2801_v49 = vmul.f32 %v5988_v17, %v2796_v35  ;;  %v2802_v54 = vmul.f32 %v5986_v22, %v2796_v35 }
0x18f9   :  { %2805 = vperm.xlu1 %5926, %v2799_v3  }
0x18fd   :  { %2810 = vperm.xlu1 %5926, %v2800_v4  }
0x1901   :  { %2815 = vperm.xlu1 %5926, %v2801_v49  }
0x1905   :  { %2820 = vperm.xlu1 %5926, %v2802_v54  }
0x1974   :  { %v2806_v0 = vpop.permute.xlu1 %2805 }
0x1975   :  { %v2823_v13 = vmul.f32 %v2806_v0, %v6540_v20  ;;  %v3192_v41 = vrot.slane %v2806_v0, %v6700_v7 }
0x1977   :  { %v2827_v25 = vsel %vm322_vm2, %v2823_v13, 0.0 }
0x1978   :  { %v2811_v16 = vpop.permute.xlu1 %2810 }
0x1979   :  { %v2824_v40 = vmul.f32 %v2811_v16, %v6538_v18  ;;  %v3196_v8 = vrot.slane %v2811_v16, %v6703_v9 }
0x197b   :  { %v2828_v58 = vsel %vm322_vm2, %v2824_v40, 0.0  ;;  %v3197_v45 = vsel %vm708_vm5, %v3196_v8, %v3192_v41 }
0x197c   :  { %v2829_v24 = vadd.f32 %v2828_v58, %v2827_v25  ;;  %v2816_v22 = vpop.permute.xlu1 %2815 }
0x197d   :  { %v2825_v21 = vmul.f32 %v2816_v22, %v6558_v29  ;;  %v3201_v44 = vrot.slane %v2816_v22, %v6700_v7 }
0x197e   :  { %v2830_v17 = vrot.slane %v2829_v24, 4 }
0x197f   :  { %v2836_v46 = vsel %vm322_vm2, %v2825_v21, 0.0 }
0x1980   :  { %v2831_v30 = vadd.f32 %v2830_v17, %v2829_v24  ;;  %v2821_v26 = vpop.permute.xlu1 %2820 }
0x1981   :  { %v2826_v36 = vmul.f32 %v2821_v26, %v6545_v23  ;;  %v3205_v63 = vrot.slane %v2821_v26, %v6703_v9 }
0x1982   :  { %v2832_v1 = vrot.slane %v2831_v30, 2 }
0x1983   :  { %v2837_v47 = vsel %vm322_vm2, %v2826_v36, 0.0  ;;  %v3206_v48 = vsel %vm708_vm5, %v3205_v63, %v3201_v44 }
0x1984   :  { %v2838_v2 = vadd.f32 %v2837_v47, %v2836_v46  ;;  %v3207_v50 = vsel %vm454_vm3, %v3206_v48, %v3197_v45  ;;  %v2833_v4 = vadd.f32 %v2832_v1, %v2831_v30 }
0x1985   :  { %3210 = vst.msk [vmem:[#allocation21 + $0x6] sm:$0x3] %vm721_vm6, %v3207_v50  ;;  %v7200_v50 = vld [vmem:[#allocation18 + $0x10] sm:$0xff] }
0x1986   :  { %v2839_v3 = vrot.slane %v2838_v2, 4  ;;  %v2834_v54 = vrot.slane %v2833_v4, 1 }
0x1988   :  { %v2840_v35 = vadd.f32 %v2839_v3, %v2838_v2  ;;  %v2835_v13 = vadd.f32 %v2834_v54, %v2833_v4  ;;  %v7198_v2 = vld [vmem:[#allocation18 + $0x18] sm:$0xff]  ;;  %v7204_v3 = vld [vmem:[#allocation18 + $0x8] sm:$0xff] }
0x1989   :  { %5741 = vmatpush3.msra.mxu0 %v7198_v2 }
0x198a   :  { %v2841_v49 = vrot.slane %v2840_v35, 2  ;;  %5742 = vmatprep.subr.mxu0 %v6325_v15 }
0x198b   :  { %5743 = vmatpush3.msra.mxu0 %v7200_v50 }
0x198c   :  { %v2842_v62 = vadd.f32 %v2841_v49, %v2840_v35  ;;  %5744 = vmatprep.subr.mxu0 %v6325_v15 }
0x198d   :  { %5745 = vmatpush3.msra.mxu0 %v7204_v3 }
0x198e   :  { %v2843_v0 = vrot.slane %v2842_v62, 1  ;;  %5746 = vmatprep.subr.mxu0 %v6325_v15 }
0x1990   :  { %v2844_v16 = vadd.f32 %v2843_v0, %v2842_v62 }
0x1992   :  { %v2855_v40 = vsel %vm454_vm3, %v2844_v16, %v2835_v13 }
0x1993   :  { %5720 = vmatmul.mubr.msk.f32.vlgmr.msra.gmra.mxu1 %vm322_vm2, %v2855_v40 }
0x1994   :  { %5730 = vmatpush3.msra.mxu1 %v7022_v10  ;;  %5737 = vmatprep.mubr.msk.f32.mxu1 %vm6326_vm1, %v6325_v15 }
0x1995   :  { %5731 = vmatprep.subr.mxu1 %v6325_v15 }
0x1996   :  { %5732 = vmatpush3.msra.mxu1 %v7026_v55 }
0x1997   :  { %5733 = vmatprep.subr.mxu1 %v6325_v15 }
0x1998   :  { %5734 = vmatpush3.msra.mxu1 %v7032_v53 }
0x1999   :  { %5735 = vmatprep.subr.mxu1 %v6325_v15 }
0x199a   :  { %5736 = vmatpush3.msra.mxu1 %v7036_v56 }
0x199b   :  { %5738 = vmatmul.mubr.msk.f32.vlgmr.msra.gmra.mxu1 %vm322_vm2, %v7071_v39  ;;  %5751 = vmatprep.subr.mxu1 %v6325_v15  ;;  %v2997_v39 = vpop.f32.mrf.mxu0 }
0x199c   :  { %5752 = vmatpush3.msra.mxu1 %v7053_v31  ;;  %5759 = vmatprep.mubr.msk.f32.mxu1 %vm6326_vm1, %v6325_v15 }
0x199d   :  { %5753 = vmatprep.subr.mxu1 %v6325_v15  ;;  %v5728_v25 = vpop.f32.mrf.mxu0 }
0x199e   :  { %5754 = vmatpush3.msra.mxu1 %v7055_v43 }
0x199f   :  { %5755 = vmatprep.subr.mxu1 %v6325_v15 }
0x19a0   :  { %5756 = vmatpush3.msra.mxu1 %v7059_v34 }
0x19a1   :  { %5757 = vmatprep.subr.mxu1 %v6325_v15 }
0x19a2   :  { %5758 = vmatpush3.msra.mxu1 %v7063_v6 }
0x19a3   :  { %5773 = vmatprep.subr.mxu1 %v6325_v15 }
0x1a53   :  { %v2924_v58 = vpop.f32.mrf.mxu1 }
0x1a54   :  { %v2998_v22 = vadd.f32 %v2997_v39, %v2924_v58 }
0x1a55   :  { %v5721_v24 = vpop.f32.mrf.mxu1 }
0x1a5b   :  { %v3071_v17 = vpop.f32.mrf.mxu1 }
0x1a5c   :  { %v3075_v8 = vadd.f32 %v3071_v17, %v2998_v22 }
0x1a5d   :  { %v5739_v21 = vpop.f32.mrf.mxu1 }
0x1a5e   :  { %v3076_v30 = vadd.f32 %v3075_v8, %v6772_v57 }
0x1a60   :  { %5991 = vtanh.f32 %v3076_v30  ;;  %v5290_v41 = vmul.f32 -1.442695, %v3076_v30 }
0x1a62   :  { %5993 = vpow2.f32 %v5290_v41 }
0x1a6d   :  { %v5992_v26 = vpop.eup %5991 }
0x1a6e   :  { %3086 = vrot.lane.b32.xlu1 %v5992_v26, %s6329_s25 }
0x1a6f   :  { %v5994_v44 = vpop.eup %5993 }
0x1a70   :  { %v3080_v36 = vadd.f32 1.0, %v5994_v44 }
0x1a72   :  { %5995 = vrcp.f32 %v3080_v36 }
0x1a7f   :  { %v5996_v63 = vpop.eup %5995 }
0x1a80   :  { %v3084_v47 = vmul.f32 %v5996_v63, %v7050_v60  ;;  %v7208_v60 = vld [vmem:[#allocation18] sm:$0xff] }
0x1a81   :  { %5747 = vmatpush3.msra.mxu0 %v7208_v60 }
0x1a82   :  { %5762 = vmatprep.subr.mxu0 %v6325_v15 }
0x1ae0   :  { %v3087_v45 = vpop.permute.xlu1 %3086 }
0x1ae1   :  { %v3089_v46 = vmul.f32 %v5996_v63, %v3087_v45 }
0x1ae3   :  { %3091 = vrot.lane.b32.xlu1 %v3089_v46, %s6318_s8 }
0x1b55   :  { %v3092_v48 = vpop.permute.xlu1 %3091 }
0x1b56   :  { %v7195_v1 = vadd.f32 %v3092_v48, %v3084_v47 }
0x1b58   :  { %5997 = vtanh.f32 %v7195_v1 }
0x1b65   :  { %v5998_v4 = vpop.eup %5997 }
0x1b66   :  { %3097 = vrot.lane.b32.xlu1 %v5998_v4, %s6329_s25 }
0x1bd8   :  { %v3098_v35 = vpop.permute.xlu1 %3097 }
0x1bd9   :  { %v3100_v49 = vmul.f32 %v5996_v63, %v3098_v35 }
0x1bdb   :  { %3113 = vrot.lane.b32.xlu0 %v3100_v49, %s6318_s8 }
0x1c4d   :  { %v7216_v54 = vpop.permute.xlu0 %3113 }
0x1c4e   :  { %5749 = vmatmul.mubr.msk.f32.vlgmr.msra.gmra.mxu0 %vm322_vm2, %v7216_v54  ;;  %5760 = vmatmul.mubr.msk.f32.vlgmr.msra.gmra.mxu1 %vm322_vm2, %v7216_v54 }
0x1c4f   :  { %5763 = vmatpush3.msra.mxu0 %v7132_v51  ;;  %5774 = vmatpush3.msra.mxu1 %v6987_v14  ;;  %v7241_v14 = vld [vmem:[%s7604_s18] ss:$0 sm:$0xff] }
0x1c50   :  { %5764 = vmatprep.subr.mxu0 %v6325_v15  ;;  %5775 = vmatprep.subr.mxu1 %v6325_v15 }
0x1c51   :  { %5765 = vmatpush3.msra.mxu0 %v7136_v61  ;;  %5770 = vmatprep.mubr.msk.f32.mxu0 %vm6326_vm1, %v6325_v15 }
0x1c52   :  { %5766 = vmatprep.subr.mxu0 %v6325_v15  ;;  %5776 = vmatpush3.msra.mxu1 %v6989_v37 }
0x1c53   :  { %5767 = vmatpush3.msra.mxu0 %v7138_v52  ;;  %5777 = vmatprep.mubr.msk.f32.mxu1 %vm6326_vm1, %v6325_v15 }
0x1c54   :  { %5768 = vmatprep.subr.mxu0 %v6325_v15  ;;  %5791 = vmatprep.subr.mxu1 %v6325_v15 }
0x1c55   :  { %5769 = vmatpush3.msra.mxu0 %v7142_v59 }
0x1c56   :  { %5780 = vmatprep.subr.mxu0 %v6325_v15 }
0x1d0e   :  { %v3183_v62 = vpop.f32.mrf.mxu0  ;;  %v3288_v37 = vpop.f32.mrf.mxu1 }
0x1d0f   :  { %v3184_v0 = vadd.f32 %v7241_v14, %v3183_v62  ;;  %v3289_v13 = vadd.f32 %v7085_v11, %v3288_v37 }
0x1d10   :  { %v5750_v16 = vpop.f32.mrf.mxu0  ;;  %v5761_v40 = vpop.f32.mrf.mxu1 }
0x1d11   :  { %3188 = vst.msk [vmem:[#allocation20 + $0x6] sm:$0x3] %vm1193_vm7, %v3184_v0  ;;  %v3299_v39 = vrot.slane %v3289_v13, %v6657_v12 }
0x1d13   :  { %v3300_v25 = vcombine.high %v3299_v39, %v3299_v39  ;;  %v3307_v58 = vrot.slane %v3299_v39, %v6657_v12 }
0x1d15   :  { %v3314_v24 = vrot.slane %v3300_v25, %v6657_v12  ;;  %v3318_v22 = vrot.slane %v3307_v58, %v6662_v19 }
0x1d17   :  { %v3326_v17 = vadd.f32 %v3318_v22, %v6667_v27  ;;  %v3325_v8 = vadd.f32 %v3318_v22, %v6669_v28  ;;  %v3322_v21 = vrot.slane %v3314_v24, %v6662_v19 }
0x1d19   :  { %v3330_v30 = vmax.f32 %v3326_v17, 0.0  ;;  %v3329_v26 = vmax.f32 %v3325_v8, 0.0  ;;  %v3327_v41 = vadd.f32 %v3322_v21, %v6677_v33  ;;  %v3328_v44 = vadd.f32 %v3322_v21, %v6674_v32 }
0x1d1b   :  { %v3334_v36 = vmul.f32 %v7099_v5, %v3330_v30  ;;  %v3333_v63 = vmul.f32 %v7099_v5, %v3329_v26  ;;  %v3331_v45 = vmax.f32 %v3327_v41, 0.0  ;;  %v3332_v4 = vmax.f32 %v3328_v44, 0.0 }
0x1d1d   :  { %v3340_v46 = vsel %vm322_vm2, %v3334_v36, 0.0  ;;  %v3337_v47 = vsel %vm322_vm2, %v3333_v63, 0.0  ;;  %v3335_v48 = vmul.f32 %v7099_v5, %v3331_v45  ;;  %v3336_v49 = vmul.f32 %v7099_v5, %v3332_v4 }
0x1d1e   :  { %3341 = vadd.xlane.f32.xlu0 %v3340_v46  ;;  %3338 = vadd.xlane.f32.xlu1 %v3337_v47 }
0x1d1f   :  { %v3343_v35 = vsel %vm322_vm2, %v3335_v48, 0.0  ;;  %v3346_v62 = vsel %vm322_vm2, %v3336_v49, 0.0 }
0x1d22   :  { %3344 = vadd.xlane.f32.xlu1 %v3343_v35 }
0x1d26   :  { %3347 = vadd.xlane.f32.xlu1 %v3346_v62 }
0x1d37   :  { %3356 = vperm.xlu1 %5926, %v7109_v42  }
0x1da7   :  { %v3339_v37 = vpop.xlane.xlu1 %3338  ;;  %v3342_v16 = vpop.xlane.xlu0 %3341 }
0x1dab   :  { %v3345_v0 = vpop.xlane.xlu1 %3344 }
0x1daf   :  { %v3348_v13 = vpop.xlane.xlu1 %3347 }
0x1db3   :  { %v3357_v40 = vpop.permute.xlu1 %3356 }
0x1db4   :  { %v3359_v39 = vadd.f32 %v3357_v40, %v3339_v37  ;;  %v3360_v25 = vadd.f32 %v3357_v40, %v3342_v16  ;;  %v3361_v58 = vadd.f32 %v3357_v40, %v3345_v0  ;;  %v3362_v24 = vadd.f32 %v3357_v40, %v3348_v13 }
0x1db6   :  { %v3370_v22 = vrot.slane %v3359_v39, %v6700_v7  ;;  %v3374_v17 = vrot.slane %v3360_v25, %v6703_v9  ;;  %v3379_v8 = vrot.slane %v3361_v58, %v6700_v7  ;;  %v3383_v21 = vrot.slane %v3362_v24, %v6703_v9 }
0x1db8   :  { %v3375_v30 = vsel %vm708_vm5, %v3374_v17, %v3370_v22  ;;  %v3384_v26 = vsel %vm708_vm5, %v3383_v21, %v3379_v8 }
0x1db9   :  { %v3385_v41 = vsel %vm454_vm3, %v3384_v26, %v3375_v30 }
0x1dba   :  { %v3387_v44 = vsel %vm721_vm6, %v3385_v41, -inf }
0x1dbb   :  { %3388 = vmax.xlane.f32.xlu0 %v3387_v44 }
0x1e44   :  { %v3389_v36 = vpop.xlane.xlu0 %3388 }
0x1e45   :  { %v3394_v63 = vrot.slane %v3389_v36, %v6662_v19  ;;  %v3398_v45 = vrot.slane %v3389_v36, %v6714_v38 }
0x1e47   :  { %v3401_v46 = vsub.f32 %v3359_v39, %v3394_v63  ;;  %v3402_v47 = vsub.f32 %v3360_v25, %v3394_v63  ;;  %v3403_v48 = vsub.f32 %v3361_v58, %v3398_v45  ;;  %v3404_v49 = vsub.f32 %v3362_v24, %v3398_v45 }
0x1e49   :  { %v3405_v4 = vmul.f32 1.442695, %v3401_v46  ;;  %v3407_v35 = vmul.f32 1.442695, %v3402_v47  ;;  %v3409_v62 = vmul.f32 1.442695, %v3403_v48 }
0x1e4a   :  { %v3411_v37 = vmul.f32 1.442695, %v3404_v49  ;;  %v3511_v49 = vld [vmem:[#allocation3 + $0x8] sm:$0x3] }
0x1e4b   :  { %5999 = vpow2.f32 %v3405_v4  ;;  %5778 = vmatmul.mubr.msk.f32.vlgmr.msra.gmra.mxu1 %vm927_vm4, %v3511_v49 }
0x1e4c   :  { %6001 = vpow2.f32 %v3407_v35  ;;  %5792 = vmatpush3.msra.mxu1 %v7198_v2  ;;  %5799 = vmatprep.mubr.msk.f32.mxu1 %vm6326_vm1, %v6325_v15 }
0x1e4d   :  { %6003 = vpow2.f32 %v3409_v62  ;;  %5793 = vmatprep.subr.mxu1 %v6325_v15 }
0x1e4e   :  { %6005 = vpow2.f32 %v3411_v37  ;;  %5794 = vmatpush3.msra.mxu1 %v7200_v50 }
0x1e4f   :  { %5795 = vmatprep.subr.mxu1 %v6325_v15 }
0x1e50   :  { %5796 = vmatpush3.msra.mxu1 %v7204_v3 }
0x1e51   :  { %5797 = vmatprep.subr.mxu1 %v6325_v15 }
0x1e52   :  { %5798 = vmatpush3.msra.mxu1 %v7208_v60 }
0x1e53   :  { %5813 = vmatprep.subr.mxu1 %v6325_v15 }
0x1e58   :  { %v6000_v0 = vpop.eup %5999 }
0x1e59   :  { %v6002_v13 = vpop.eup %6001  ;;  %3418 = vperm.xlu0 %5925, %v6000_v0  }
0x1e5a   :  { %3421 = vperm.xlu1 %5926, %v6002_v13   ;;  %v6004_v16 = vpop.eup %6003 }
0x1e5b   :  { %v6006_v40 = vpop.eup %6005 }
0x1e5e   :  { %3424 = vperm.xlu1 %5926, %v6004_v16  }
0x1e62   :  { %3427 = vperm.xlu1 %5926, %v6006_v40  }
0x1ed4   :  { %v3419_v25 = vpop.permute.xlu0 %3418 }
0x1ed5   :  { %v3422_v39 = vpop.permute.xlu1 %3421  ;;  %v3432_v24 = vrot.slane %v3419_v25, %v6700_v7 }
0x1ed6   :  { %v3436_v22 = vrot.slane %v3422_v39, %v6703_v9 }
0x1ed8   :  { %v3437_v30 = vsel %vm708_vm5, %v3436_v22, %v3432_v24 }
0x1ed9   :  { %v3425_v58 = vpop.permute.xlu1 %3424 }
0x1eda   :  { %v3441_v8 = vrot.slane %v3425_v58, %v6700_v7 }
0x1edd   :  { %v3428_v17 = vpop.permute.xlu1 %3427 }
0x1ede   :  { %v3445_v21 = vrot.slane %v3428_v17, %v6703_v9 }
0x1ee0   :  { %v3446_v26 = vsel %vm708_vm5, %v3445_v21, %v3441_v8 }
0x1ee1   :  { %v3447_v41 = vsel %vm454_vm3, %v3446_v26, %v3437_v30 }
0x1ee2   :  { %v3449_v44 = vsel %vm721_vm6, %v3447_v41, 0.0 }
0x1ee3   :  { %3450 = vadd.xlane.f32.xlu1 %v3449_v44 }
0x1f6c   :  { %v3451_v36 = vpop.xlane.xlu1 %3450 }
0x1f6d   :  { %6007 = vrcp.f32 %v3451_v36 }
0x1f7a   :  { %v6008_v63 = vpop.eup %6007 }
0x1f7b   :  { %v3457_v45 = vrot.slane %v6008_v63, %v6662_v19  ;;  %v3461_v48 = vrot.slane %v6008_v63, %v6714_v38 }
0x1f7d   :  { %v3464_v46 = vmul.f32 %v6000_v0, %v3457_v45  ;;  %v3465_v47 = vmul.f32 %v6002_v13, %v3457_v45  ;;  %v3466_v4 = vmul.f32 %v6004_v16, %v3461_v48  ;;  %v3467_v35 = vmul.f32 %v6006_v40, %v3461_v48 }
0x1f7f   :  { %3470 = vperm.xlu0 %5925, %v3464_v46  }
0x1f83   :  { %3475 = vperm.xlu0 %5925, %v3465_v47  }
0x1f87   :  { %3480 = vperm.xlu0 %5925, %v3466_v4  }
0x1f8b   :  { %3485 = vperm.xlu0 %5925, %v3467_v35  }
0x1ffa   :  { %v3471_v62 = vpop.permute.xlu0 %3470 }
0x1ffb   :  { %v3488_v37 = vmul.f32 %v3471_v62, %v6540_v20  ;;  %v3857_v21 = vrot.slane %v3471_v62, %v6700_v7 }
0x1ffd   :  { %v3492_v16 = vsel %vm322_vm2, %v3488_v37, 0.0 }
0x1ffe   :  { %v3476_v0 = vpop.permute.xlu0 %3475 }
0x1fff   :  { %v3489_v13 = vmul.f32 %v3476_v0, %v6538_v18  ;;  %v3861_v22 = vrot.slane %v3476_v0, %v6703_v9 }
0x2001   :  { %v3493_v40 = vsel %vm322_vm2, %v3489_v13, 0.0  ;;  %v3862_v44 = vsel %vm708_vm5, %v3861_v22, %v3857_v21 }
0x2002   :  { %v3494_v39 = vadd.f32 %v3493_v40, %v3492_v16  ;;  %v3481_v25 = vpop.permute.xlu0 %3480 }
0x2003   :  { %v3490_v24 = vmul.f32 %v3481_v25, %v6558_v29  ;;  %v3866_v30 = vrot.slane %v3481_v25, %v6700_v7 }
0x2004   :  { %v3495_v58 = vrot.slane %v3494_v39, 4 }
0x2005   :  { %v3501_v36 = vsel %vm322_vm2, %v3490_v24, 0.0 }
0x2006   :  { %v3496_v17 = vadd.f32 %v3495_v58, %v3494_v39  ;;  %v3486_v8 = vpop.permute.xlu0 %3485 }
0x2007   :  { %v3491_v26 = vmul.f32 %v3486_v8, %v6545_v23  ;;  %v3870_v41 = vrot.slane %v3486_v8, %v6703_v9 }
0x2008   :  { %v3497_v46 = vrot.slane %v3496_v17, 2 }
0x2009   :  { %v3502_v63 = vsel %vm322_vm2, %v3491_v26, 0.0  ;;  %v3871_v45 = vsel %vm708_vm5, %v3870_v41, %v3866_v30 }
0x200a   :  { %v3503_v47 = vadd.f32 %v3502_v63, %v3501_v36  ;;  %v3872_v48 = vsel %vm454_vm3, %v3871_v45, %v3862_v44  ;;  %v3498_v35 = vadd.f32 %v3497_v46, %v3496_v17 }
0x200b   :  { %3875 = vst.msk [vmem:[#allocation21 + $0x8] sm:$0x3] %vm721_vm6, %v3872_v48 }
0x200c   :  { %v3504_v4 = vrot.slane %v3503_v47, 4  ;;  %v3499_v37 = vrot.slane %v3498_v35, 1 }
0x200e   :  { %v3505_v49 = vadd.f32 %v3504_v4, %v3503_v47  ;;  %v3500_v16 = vadd.f32 %v3499_v37, %v3498_v35 }
0x2010   :  { %v3506_v62 = vrot.slane %v3505_v49, 2 }
0x2012   :  { %v3507_v0 = vadd.f32 %v3506_v62, %v3505_v49 }
0x2014   :  { %v3508_v13 = vrot.slane %v3507_v0, 1 }
0x2016   :  { %v3509_v40 = vadd.f32 %v3508_v13, %v3507_v0 }
0x2018   :  { %v3520_v39 = vsel %vm454_vm3, %v3509_v40, %v3500_v16 }
0x2019   :  { %5771 = vmatmul.mubr.msk.f32.vlgmr.msra.gmra.mxu0 %vm322_vm2, %v3520_v39 }
0x201a   :  { %5781 = vmatpush3.msra.mxu0 %v7022_v10  ;;  %5788 = vmatprep.mubr.msk.f32.mxu0 %vm6326_vm1, %v6325_v15  ;;  %v3662_v10 = vpop.f32.mrf.mxu1 }
0x201b   :  { %5782 = vmatprep.subr.mxu0 %v6325_v15 }
0x201c   :  { %5783 = vmatpush3.msra.mxu0 %v7026_v55  ;;  %v5779_v55 = vpop.f32.mrf.mxu1 }
0x201d   :  { %5784 = vmatprep.subr.mxu0 %v6325_v15 }
0x201e   :  { %5785 = vmatpush3.msra.mxu0 %v7032_v53 }
0x201f   :  { %5786 = vmatprep.subr.mxu0 %v6325_v15 }
0x2020   :  { %5787 = vmatpush3.msra.mxu0 %v7036_v56 }
0x2021   :  { %5789 = vmatmul.mubr.msk.f32.vlgmr.msra.gmra.mxu0 %vm322_vm2, %v7216_v54  ;;  %5802 = vmatprep.subr.mxu0 %v6325_v15 }
0x2022   :  { %5803 = vmatpush3.msra.mxu0 %v7053_v31  ;;  %5810 = vmatprep.mubr.msk.f32.mxu0 %vm6326_vm1, %v6325_v15 }
0x2023   :  { %5804 = vmatprep.subr.mxu0 %v6325_v15 }
0x2024   :  { %5805 = vmatpush3.msra.mxu0 %v7055_v43 }
0x2025   :  { %5806 = vmatprep.subr.mxu0 %v6325_v15 }
0x2026   :  { %5807 = vmatpush3.msra.mxu0 %v7059_v34 }
0x2027   :  { %5808 = vmatprep.subr.mxu0 %v6325_v15 }
0x2028   :  { %5809 = vmatpush3.msra.mxu0 %v7063_v6 }
0x2029   :  { %5824 = vmatprep.subr.mxu0 %v6325_v15 }
0x20d9   :  { %v3589_v53 = vpop.f32.mrf.mxu0 }
0x20da   :  { %v3663_v31 = vadd.f32 %v3662_v10, %v3589_v53 }
0x20db   :  { %v5772_v56 = vpop.f32.mrf.mxu0 }
0x20e1   :  { %v3736_v54 = vpop.f32.mrf.mxu0 }
0x20e2   :  { %v3740_v25 = vadd.f32 %v3736_v54, %v3663_v31 }
0x20e3   :  { %v5790_v58 = vpop.f32.mrf.mxu0 }
0x20e4   :  { %v3741_v43 = vadd.f32 %v3740_v25, %v6772_v57 }
0x20e6   :  { %6009 = vtanh.f32 %v3741_v43  ;;  %v5299_v34 = vmul.f32 -1.442695, %v3741_v43 }
0x20e8   :  { %6011 = vpow2.f32 %v5299_v34 }
0x20f3   :  { %v6010_v22 = vpop.eup %6009 }
0x20f4   :  { %3751 = vrot.lane.b32.xlu0 %v6010_v22, %s6329_s25 }
0x20f5   :  { %v6012_v24 = vpop.eup %6011 }
0x20f6   :  { %v3745_v6 = vadd.f32 1.0, %v6012_v24 }
0x20f8   :  { %6013 = vrcp.f32 %v3745_v6 }
0x2105   :  { %v6014_v17 = vpop.eup %6013 }
0x2106   :  { %v3749_v30 = vmul.f32 %v6014_v17, %v7195_v1 }
0x2166   :  { %v3752_v8 = vpop.permute.xlu0 %3751 }
0x2167   :  { %v3754_v21 = vmul.f32 %v6014_v17, %v3752_v8 }
0x2169   :  { %3756 = vrot.lane.b32.xlu0 %v3754_v21, %s6318_s8 }
0x21db   :  { %v3757_v26 = vpop.permute.xlu0 %3756 }
0x21dc   :  { %v7339_v41 = vadd.f32 %v3757_v26, %v3749_v30 }
0x21de   :  { %6015 = vtanh.f32 %v7339_v41 }
0x21eb   :  { %v6016_v44 = vpop.eup %6015 }
0x21ec   :  { %3762 = vrot.lane.b32.xlu0 %v6016_v44, %s6329_s25 }
0x225e   :  { %v3763_v36 = vpop.permute.xlu0 %3762 }
0x225f   :  { %v3765_v63 = vmul.f32 %v6014_v17, %v3763_v36 }
0x2261   :  { %3778 = vrot.lane.b32.xlu0 %v3765_v63, %s6318_s8 }
0x22d3   :  { %v7344_v45 = vpop.permute.xlu0 %3778 }
0x22d4   :  { %5800 = vmatmul.mubr.msk.f32.vlgmr.msra.gmra.mxu1 %vm322_vm2, %v7344_v45  ;;  %5811 = vmatmul.mubr.msk.f32.vlgmr.msra.gmra.mxu0 %vm322_vm2, %v7344_v45 }
0x22d5   :  { %5814 = vmatpush3.msra.mxu1 %v7132_v51  ;;  %5821 = vmatprep.mubr.msk.f32.mxu1 %vm6326_vm1, %v6325_v15 }
0x22d6   :  { %5815 = vmatprep.subr.mxu1 %v6325_v15  ;;  %5828 = vmatprep.mubr.msk.f32.mxu0 %vm6326_vm1, %v6325_v15 }
0x22d7   :  { %5816 = vmatpush3.msra.mxu1 %v7136_v61 }
0x22d8   :  { %5817 = vmatprep.subr.mxu1 %v6325_v15 }
0x22d9   :  { %5818 = vmatpush3.msra.mxu1 %v7138_v52 }
0x22da   :  { %5819 = vmatprep.subr.mxu1 %v6325_v15 }
0x22db   :  { %5820 = vmatpush3.msra.mxu1 %v7142_v59 }
0x22dc   :  { %5831 = vmatprep.subr.mxu1 %v6325_v15 }
0x2394   :  { %v3848_v51 = vpop.f32.mrf.mxu1  ;;  %v3953_v1 = vpop.f32.mrf.mxu0 }
0x2395   :  { %v3849_v46 = vadd.f32 %v7241_v14, %v3848_v51  ;;  %v3954_v47 = vadd.f32 %v7085_v11, %v3953_v1 }
0x2396   :  { %v5801_v48 = vpop.f32.mrf.mxu1  ;;  %v5812_v4 = vpop.f32.mrf.mxu0 }
0x2397   :  { %3853 = vst.msk [vmem:[#allocation20 + $0x8] sm:$0x3] %vm1193_vm7, %v3849_v46  ;;  %v3964_v61 = vrot.slane %v3954_v47, %v6657_v12 }
0x2399   :  { %v3965_v35 = vcombine.high %v3964_v61, %v3964_v61  ;;  %v3972_v52 = vrot.slane %v3964_v61, %v6657_v12 }
0x239b   :  { %v3979_v49 = vrot.slane %v3965_v35, %v6657_v12  ;;  %v3983_v59 = vrot.slane %v3972_v52, %v6662_v19 }
0x239d   :  { %v3991_v62 = vadd.f32 %v3983_v59, %v6667_v27  ;;  %v3990_v37 = vadd.f32 %v3983_v59, %v6669_v28  ;;  %v3987_v0 = vrot.slane %v3979_v49, %v6662_v19 }
0x239f   :  { %v3995_v11 = vmax.f32 %v3991_v62, 0.0  ;;  %v3994_v13 = vmax.f32 %v3990_v37, 0.0  ;;  %v3992_v16 = vadd.f32 %v3987_v0, %v6677_v33  ;;  %v3993_v40 = vadd.f32 %v3987_v0, %v6674_v32 }
0x23a1   :  { %v3999_v39 = vmul.f32 %v7099_v5, %v3995_v11  ;;  %v3998_v10 = vmul.f32 %v7099_v5, %v3994_v13  ;;  %v3996_v55 = vmax.f32 %v3992_v16, 0.0  ;;  %v3997_v54 = vmax.f32 %v3993_v40, 0.0 }
0x23a3   :  { %v4005_v53 = vsel %vm322_vm2, %v3999_v39, 0.0  ;;  %v4002_v56 = vsel %vm322_vm2, %v3998_v10, 0.0  ;;  %v4000_v31 = vmul.f32 %v7099_v5, %v3996_v55  ;;  %v4001_v58 = vmul.f32 %v7099_v5, %v3997_v54 }
0x23a4   :  { %4006 = vadd.xlane.f32.xlu0 %v4005_v53  ;;  %4003 = vadd.xlane.f32.xlu1 %v4002_v56 }
0x23a5   :  { %v4008_v25 = vsel %vm322_vm2, %v4000_v31, 0.0  ;;  %v4011_v43 = vsel %vm322_vm2, %v4001_v58, 0.0 }
0x23a8   :  { %4009 = vadd.xlane.f32.xlu1 %v4008_v25 }
0x23ac   :  { %4012 = vadd.xlane.f32.xlu1 %v4011_v43 }
0x23bd   :  { %4021 = vperm.xlu1 %5926, %v7109_v42  }
0x242d   :  { %v4004_v22 = vpop.xlane.xlu1 %4003  ;;  %v4007_v6 = vpop.xlane.xlu0 %4006 }
0x2431   :  { %v4010_v34 = vpop.xlane.xlu1 %4009 }
0x2435   :  { %v4013_v24 = vpop.xlane.xlu1 %4012 }
0x2439   :  { %v4022_v17 = vpop.permute.xlu1 %4021 }
0x243a   :  { %v4024_v8 = vadd.f32 %v4022_v17, %v4004_v22  ;;  %v4025_v21 = vadd.f32 %v4022_v17, %v4007_v6  ;;  %v4026_v30 = vadd.f32 %v4022_v17, %v4010_v34  ;;  %v4027_v26 = vadd.f32 %v4022_v17, %v4013_v24 }
0x243c   :  { %v4035_v44 = vrot.slane %v4024_v8, %v6700_v7  ;;  %v4039_v36 = vrot.slane %v4025_v21, %v6703_v9  ;;  %v4044_v5 = vrot.slane %v4026_v30, %v6700_v7  ;;  %v4048_v63 = vrot.slane %v4027_v26, %v6703_v9 }
0x243e   :  { %v4040_v51 = vsel %vm708_vm5, %v4039_v36, %v4035_v44  ;;  %v4049_v42 = vsel %vm708_vm5, %v4048_v63, %v4044_v5  ;;  %v7403_v36 = vld [vmem:[#allocation14 + $0x8] sm:$0xff]  ;;  %v7405_v5 = vld [vmem:[#allocation14] sm:$0xff]  ;;  %v4176_v63 = vld [vmem:[#allocation3 + $0xa] sm:$0x3] }
0x243f   :  { %v4050_v1 = vsel %vm454_vm3, %v4049_v42, %v4040_v51  ;;  %5825 = vmatpush3.msra.mxu0 %v7403_v36 }
0x2440   :  { %v4052_v46 = vsel %vm721_vm6, %v4050_v1, -inf  ;;  %5826 = vmatprep.subr.mxu0 %v6325_v15 }
0x2441   :  { %4053 = vmax.xlane.f32.xlu1 %v4052_v46  ;;  %5827 = vmatpush3.msra.mxu0 %v7405_v5 }
0x2442   :  { %5842 = vmatprep.subr.mxu0 %v6325_v15  ;;  %5829 = vmatmul.mubr.msk.f32.vlgmr.msra.gmra.mxu0 %vm927_vm4, %v4176_v63 }
0x2443   :  { %5843 = vmatpush3.msra.mxu0 %v7198_v2  ;;  %5850 = vmatprep.mubr.msk.f32.mxu0 %vm6326_vm1, %v6325_v15 }
0x2444   :  { %5844 = vmatprep.subr.mxu0 %v6325_v15 }
0x2445   :  { %5845 = vmatpush3.msra.mxu0 %v7200_v50 }
0x2446   :  { %5846 = vmatprep.subr.mxu0 %v6325_v15 }
0x2447   :  { %5847 = vmatpush3.msra.mxu0 %v7204_v3 }
0x2448   :  { %5848 = vmatprep.subr.mxu0 %v6325_v15 }
0x2449   :  { %5849 = vmatpush3.msra.mxu0 %v7208_v60 }
0x244a   :  { %5864 = vmatprep.subr.mxu0 %v6325_v15 }
0x24ca   :  { %v4054_v47 = vpop.xlane.xlu1 %4053 }
0x24cb   :  { %v4059_v48 = vrot.slane %v4054_v47, %v6662_v19  ;;  %v4063_v4 = vrot.slane %v4054_v47, %v6714_v38 }
0x24cd   :  { %v4066_v61 = vsub.f32 %v4024_v8, %v4059_v48  ;;  %v4067_v35 = vsub.f32 %v4025_v21, %v4059_v48  ;;  %v4068_v49 = vsub.f32 %v4026_v30, %v4063_v4  ;;  %v4069_v62 = vsub.f32 %v4027_v26, %v4063_v4 }
0x24cf   :  { %v4070_v52 = vmul.f32 1.442695, %v4066_v61  ;;  %v4072_v59 = vmul.f32 1.442695, %v4067_v35  ;;  %v4074_v37 = vmul.f32 1.442695, %v4068_v49 }
0x24d0   :  { %v4076_v0 = vmul.f32 1.442695, %v4069_v62 }
0x24d1   :  { %6017 = vpow2.f32 %v4070_v52 }
0x24d2   :  { %6019 = vpow2.f32 %v4072_v59 }
0x24d3   :  { %6021 = vpow2.f32 %v4074_v37 }
0x24d4   :  { %6023 = vpow2.f32 %v4076_v0 }
0x24de   :  { %v6018_v11 = vpop.eup %6017 }
0x24df   :  { %4083 = vperm.xlu0 %5925, %v6018_v11   ;;  %v6020_v13 = vpop.eup %6019 }
0x24e0   :  { %v6022_v16 = vpop.eup %6021 }
0x24e1   :  { %v6024_v40 = vpop.eup %6023 }
0x24e3   :  { %4086 = vperm.xlu0 %5925, %v6020_v13  }
0x24e7   :  { %4089 = vperm.xlu0 %5925, %v6022_v16  }
0x24eb   :  { %4092 = vperm.xlu0 %5925, %v6024_v40  }
0x255a   :  { %v4084_v39 = vpop.permute.xlu0 %4083 }
0x255b   :  { %v4097_v31 = vrot.slane %v4084_v39, %v6700_v7 }
0x255e   :  { %v4087_v10 = vpop.permute.xlu0 %4086 }
0x255f   :  { %v4101_v53 = vrot.slane %v4087_v10, %v6703_v9 }
0x2561   :  { %v4102_v58 = vsel %vm708_vm5, %v4101_v53, %v4097_v31 }
0x2562   :  { %v4090_v55 = vpop.permute.xlu0 %4089 }
0x2563   :  { %v4106_v54 = vrot.slane %v4090_v55, %v6700_v7 }
0x2566   :  { %v4093_v56 = vpop.permute.xlu0 %4092 }
0x2567   :  { %v4110_v25 = vrot.slane %v4093_v56, %v6703_v9 }
0x2569   :  { %v4111_v43 = vsel %vm708_vm5, %v4110_v25, %v4106_v54 }
0x256a   :  { %v4112_v22 = vsel %vm454_vm3, %v4111_v43, %v4102_v58 }
0x256b   :  { %v4114_v34 = vsel %vm721_vm6, %v4112_v22, 0.0  ;;  %v7438_v22 = vld [vmem:[#allocation17 + $0x18] sm:$0xff] }
0x256c   :  { %4115 = vadd.xlane.f32.xlu1 %v4114_v34 }
0x25f5   :  { %v4116_v24 = vpop.xlane.xlu1 %4115 }
0x25f6   :  { %6025 = vrcp.f32 %v4116_v24  ;;  %v7442_v24 = vld [vmem:[#allocation17 + $0x10] sm:$0xff] }
0x2603   :  { %v6026_v6 = vpop.eup %6025 }
0x2604   :  { %v4122_v17 = vrot.slane %v6026_v6, %v6662_v19  ;;  %v4126_v30 = vrot.slane %v6026_v6, %v6714_v38  ;;  %v7448_v6 = vld [vmem:[#allocation17 + $0x8] sm:$0xff] }
0x2606   :  { %v4130_v8 = vmul.f32 %v6020_v13, %v4122_v17  ;;  %v4129_v21 = vmul.f32 %v6018_v11, %v4122_v17  ;;  %v4131_v26 = vmul.f32 %v6022_v16, %v4126_v30  ;;  %v4132_v44 = vmul.f32 %v6024_v40, %v4126_v30  ;;  %v7452_v17 = vld [vmem:[#allocation17] sm:$0xff] }
0x2608   :  { %4140 = vperm.xlu1 %5926, %v4130_v8   ;;  %4135 = vperm.xlu0 %5925, %v4129_v21   ;;  %v4327_v8 = vpop.f32.mrf.mxu0 }
0x260a   :  { %v5830_v21 = vpop.f32.mrf.mxu0 }
0x260b   :  { %v6054_v21 = vld [vmem:[#allocation12] ss:$0 sm:$0xff] }
0x260c   :  { %4145 = vperm.xlu0 %5925, %v4131_v26  }
0x2610   :  { %4150 = vperm.xlu0 %5925, %v4132_v44  }
0x2683   :  { %v4141_v51 = vpop.permute.xlu1 %4140  ;;  %v4136_v42 = vpop.permute.xlu0 %4135 }
0x2684   :  { %v4154_v2 = vmul.f32 %v4141_v51, %v6538_v18  ;;  %v4153_v1 = vmul.f32 %v4136_v42, %v6540_v20  ;;  %v4526_v3 = vrot.slane %v4141_v51, %v6703_v9  ;;  %v4522_v61 = vrot.slane %v4136_v42, %v6700_v7 }
0x2686   :  { %v4158_v46 = vsel %vm322_vm2, %v4154_v2, 0.0  ;;  %v4157_v50 = vsel %vm322_vm2, %v4153_v1, 0.0  ;;  %v4527_v37 = vsel %vm708_vm5, %v4526_v3, %v4522_v61 }
0x2687   :  { %v4159_v47 = vadd.f32 %v4158_v46, %v4157_v50  ;;  %v4146_v48 = vpop.permute.xlu0 %4145 }
0x2688   :  { %v4155_v60 = vmul.f32 %v4146_v48, %v6558_v29  ;;  %v4531_v49 = vrot.slane %v4146_v48, %v6700_v7 }
0x2689   :  { %v4160_v4 = vrot.slane %v4159_v47, 4 }
0x268a   :  { %v4166_v0 = vsel %vm322_vm2, %v4155_v60, 0.0 }
0x268b   :  { %v4161_v35 = vadd.f32 %v4160_v4, %v4159_v47  ;;  %v4151_v52 = vpop.permute.xlu0 %4150 }
0x268c   :  { %v4156_v59 = vmul.f32 %v4151_v52, %v6545_v23  ;;  %v4535_v62 = vrot.slane %v4151_v52, %v6703_v9  ;;  %v4543_v52 = vld [vmem:[#allocation9 + $0x10] sm:$0xff] }
0x268d   :  { %v4162_v16 = vrot.slane %v4161_v35, 2 }
0x268e   :  { %v4167_v11 = vsel %vm322_vm2, %v4156_v59, 0.0  ;;  %v4536_v13 = vsel %vm708_vm5, %v4535_v62, %v4531_v49  ;;  %v4542_v49 = vld [vmem:[#allocation9 + $0x8] sm:$0xff]  ;;  %v4541_v59 = vld [vmem:[#allocation9] sm:$0xff] }
0x268f   :  { %v4168_v40 = vadd.f32 %v4167_v11, %v4166_v0  ;;  %v4537_v39 = vsel %vm454_vm3, %v4536_v13, %v4527_v37  ;;  %v4163_v55 = vadd.f32 %v4162_v16, %v4161_v35  ;;  %v4544_v35 = vld [vmem:[#allocation9 + $0x18] sm:$0xff]  ;;  %v5311_v11 = vld [vmem:[#allocation11] ss:$0 sm:$0xff] }
0x2690   :  { %4540 = vst.msk [vmem:[#allocation21 + $0xa] sm:$0x3] %vm721_vm6, %v4537_v39 }
0x2691   :  { %v4169_v10 = vrot.slane %v4168_v40, 4  ;;  %v4164_v31 = vrot.slane %v4163_v55, 1 }
0x2693   :  { %v4170_v53 = vadd.f32 %v4169_v10, %v4168_v40  ;;  %v4165_v58 = vadd.f32 %v4164_v31, %v4163_v55 }
0x2695   :  { %v4171_v56 = vrot.slane %v4170_v53, 2 }
0x2697   :  { %v4172_v54 = vadd.f32 %v4171_v56, %v4170_v53 }
0x2699   :  { %v4173_v25 = vrot.slane %v4172_v54, 1 }
0x269b   :  { %v4174_v43 = vadd.f32 %v4173_v25, %v4172_v54 }
0x269d   :  { %v4185_v34 = vsel %vm454_vm3, %v4174_v43, %v4165_v58 }
0x269e   :  { %5822 = vmatmul.mubr.msk.f32.vlgmr.msra.gmra.mxu1 %vm322_vm2, %v4185_v34 }
0x269f   :  { %5832 = vmatpush3.msra.mxu1 %v7438_v22  ;;  %5839 = vmatprep.mubr.msk.f32.mxu1 %vm6326_vm1, %v6325_v15 }
0x26a0   :  { %5833 = vmatprep.subr.mxu1 %v6325_v15 }
0x26a1   :  { %5834 = vmatpush3.msra.mxu1 %v7442_v24 }
0x26a2   :  { %5835 = vmatprep.subr.mxu1 %v6325_v15 }
0x26a3   :  { %5836 = vmatpush3.msra.mxu1 %v7448_v6 }
0x26a4   :  { %5837 = vmatprep.subr.mxu1 %v6325_v15 }
0x26a5   :  { %5838 = vmatpush3.msra.mxu1 %v7452_v17 }
0x26a6   :  { %5840 = vmatmul.mubr.msk.f32.vlgmr.msra.gmra.mxu1 %vm322_vm2, %v7344_v45  ;;  %5853 = vmatprep.subr.mxu1 %v6325_v15 }
0x26a7   :  { %5861 = vmatprep.mubr.msk.f32.mxu1 %vm6326_vm1, %v6325_v15  ;;  %5854 = vmatpush3.msra.mxu1 %v4544_v35 }
0x26a8   :  { %5855 = vmatprep.subr.mxu1 %v6325_v15 }
0x26a9   :  { %5856 = vmatpush3.msra.mxu1 %v4543_v52 }
0x26aa   :  { %5857 = vmatprep.subr.mxu1 %v6325_v15 }
0x26ab   :  { %5858 = vmatpush3.msra.mxu1 %v4542_v49 }
0x26ac   :  { %5859 = vmatprep.subr.mxu1 %v6325_v15 }
0x26ad   :  { %5860 = vmatpush3.msra.mxu1 %v4541_v59 }
0x26ae   :  { %5875 = vmatprep.subr.mxu1 %v6325_v15 }
0x275e   :  { %v4254_v30 = vpop.f32.mrf.mxu1 }
0x275f   :  { %v4328_v44 = vadd.f32 %v4327_v8, %v4254_v30 }
0x2760   :  { %v5823_v26 = vpop.f32.mrf.mxu1 }
0x2766   :  { %v4401_v63 = vpop.f32.mrf.mxu1 }
0x2767   :  { %v4405_v51 = vadd.f32 %v4401_v63, %v4328_v44 }
0x2768   :  { %v5841_v42 = vpop.f32.mrf.mxu1 }
0x2769   :  { %v4406_v2 = vadd.f32 %v4405_v51, %v6772_v57 }
0x276b   :  { %6027 = vtanh.f32 %v4406_v2  ;;  %v5308_v45 = vmul.f32 -1.442695, %v4406_v2 }
0x276d   :  { %6029 = vpow2.f32 %v5308_v45 }
0x2778   :  { %v6028_v1 = vpop.eup %6027 }
0x2779   :  { %4416 = vrot.lane.b32.xlu0 %v6028_v1, %s6329_s25 }
0x277a   :  { %v6030_v46 = vpop.eup %6029 }
0x277b   :  { %v4410_v50 = vadd.f32 1.0, %v6030_v46 }
0x277d   :  { %6031 = vrcp.f32 %v4410_v50 }
0x278a   :  { %v6032_v47 = vpop.eup %6031 }
0x278b   :  { %v4414_v3 = vmul.f32 %v6032_v47, %v7339_v41 }
0x27eb   :  { %v4417_v48 = vpop.permute.xlu0 %4416 }
0x27ec   :  { %v4419_v4 = vmul.f32 %v6032_v47, %v4417_v48 }
0x27ee   :  { %4421 = vrot.lane.b32.xlu0 %v4419_v4, %s6318_s8 }
0x2860   :  { %v4422_v61 = vpop.permute.xlu0 %4421 }
0x2861   :  { %v7466_v60 = vadd.f32 %v4422_v61, %v4414_v3 }
0x2863   :  { %6033 = vtanh.f32 %v7466_v60 }
0x2870   :  { %v6034_v41 = vpop.eup %6033 }
0x2871   :  { %4427 = vrot.lane.b32.xlu1 %v6034_v41, %s6329_s25 }
0x28e3   :  { %v4428_v62 = vpop.permute.xlu1 %4427 }
0x28e4   :  { %v4430_v37 = vmul.f32 %v6032_v47, %v4428_v62 }
0x28e6   :  { %4443 = vrot.lane.b32.xlu0 %v4430_v37, %s6318_s8 }
0x2958   :  { %v7475_v0 = vpop.permute.xlu0 %4443 }
0x2959   :  { %5851 = vmatmul.mubr.msk.f32.vlgmr.msra.gmra.mxu0 %vm322_vm2, %v7475_v0  ;;  %5862 = vmatmul.mubr.msk.f32.vlgmr.msra.gmra.mxu1 %vm322_vm2, %v7475_v0 }
0x295a   :  { %5876 = vmatpush3.msra.mxu1 %v7403_v36  ;;  %5872 = vmatprep.mubr.msk.f32.mxu0 %vm6326_vm1, %v6325_v15 }
0x295b   :  { %5877 = vmatprep.subr.mxu1 %v6325_v15  ;;  %5879 = vmatprep.mubr.msk.f32.mxu1 %vm6326_vm1, %v6325_v15 }
0x295c   :  { %5878 = vmatpush3.msra.mxu1 %v7405_v5 }
0x295d   :  { %5893 = vmatprep.subr.mxu1 %v6325_v15 }
0x2a19   :  { %v4513_v13 = vpop.f32.mrf.mxu0  ;;  %v4618_v16 = vpop.f32.mrf.mxu1 }
0x2a1a   :  { %v4514_v40 = vadd.f32 %v7241_v14, %v4513_v13  ;;  %v4619_v39 = vadd.f32 %v5311_v11, %v4618_v16 }
0x2a1b   :  { %v5852_v10 = vpop.f32.mrf.mxu0  ;;  %v5863_v36 = vpop.f32.mrf.mxu1 }
0x2a1c   :  { %4518 = vst.msk [vmem:[#allocation20 + $0xa] sm:$0x3] %vm1193_vm7, %v4514_v40  ;;  %v4629_v55 = vrot.slane %v4619_v39, %v6657_v12 }
0x2a1e   :  { %v4630_v53 = vcombine.high %v4629_v55, %v4629_v55  ;;  %v4637_v56 = vrot.slane %v4629_v55, %v6657_v12 }
0x2a20   :  { %v4644_v31 = vrot.slane %v4630_v53, %v6657_v12  ;;  %v4648_v5 = vrot.slane %v4637_v56, %v6662_v19 }
0x2a22   :  { %v4656_v54 = vadd.f32 %v4648_v5, %v6667_v27  ;;  %v4655_v25 = vadd.f32 %v4648_v5, %v6669_v28  ;;  %v4652_v14 = vrot.slane %v4644_v31, %v6662_v19 }
0x2a24   :  { %v4660_v58 = vmax.f32 %v4656_v54, 0.0  ;;  %v4659_v43 = vmax.f32 %v4655_v25, 0.0  ;;  %v4657_v34 = vadd.f32 %v4652_v14, %v6677_v33  ;;  %v4658_v8 = vadd.f32 %v4652_v14, %v6674_v32  ;;  %v5313_v32 = vld [vmem:[#allocation2] ss:$0 sm:$0xff] }
0x2a26   :  { %v4664_v30 = vmul.f32 %v6054_v21, %v4660_v58  ;;  %v4663_v26 = vmul.f32 %v6054_v21, %v4659_v43  ;;  %v4661_v44 = vmax.f32 %v4657_v34, 0.0  ;;  %v4662_v27 = vmax.f32 %v4658_v8, 0.0 }
0x2a28   :  { %v4670_v12 = vsel %vm322_vm2, %v4664_v30, 0.0  ;;  %v4667_v63 = vsel %vm322_vm2, %v4663_v26, 0.0  ;;  %v4665_v51 = vmul.f32 %v6054_v21, %v4661_v44  ;;  %v4666_v42 = vmul.f32 %v6054_v21, %v4662_v27 }
0x2a29   :  { %4671 = vadd.xlane.f32.xlu0 %v4670_v12  ;;  %4668 = vadd.xlane.f32.xlu1 %v4667_v63 }
0x2a2a   :  { %v4673_v28 = vsel %vm322_vm2, %v4665_v51, 0.0  ;;  %v4676_v33 = vsel %vm322_vm2, %v4666_v42, 0.0 }
0x2a2d   :  { %4674 = vadd.xlane.f32.xlu0 %v4673_v28 }
0x2a31   :  { %4677 = vadd.xlane.f32.xlu0 %v4676_v33 }
0x2a3a   :  { %4686 = vperm.xlu1 %5926, %v5313_v32  }
0x2ab2   :  { %v4672_v2 = vpop.xlane.xlu0 %4671  ;;  %v4669_v1 = vpop.xlane.xlu1 %4668 }
0x2ab6   :  { %v4687_v45 = vpop.permute.xlu1 %4686  ;;  %v4675_v46 = vpop.xlane.xlu0 %4674 }
0x2ab7   :  { %v4689_v50 = vadd.f32 %v4687_v45, %v4669_v1  ;;  %v4690_v47 = vadd.f32 %v4687_v45, %v4672_v2  ;;  %v4691_v48 = vadd.f32 %v4687_v45, %v4675_v46 }
0x2ab9   :  { %v4700_v3 = vrot.slane %v4689_v50, %v6700_v7  ;;  %v4704_v61 = vrot.slane %v4690_v47, %v6703_v9  ;;  %v4709_v52 = vrot.slane %v4691_v48, %v6700_v7 }
0x2aba   :  { %v4678_v4 = vpop.xlane.xlu0 %4677 }
0x2abb   :  { %v4692_v35 = vadd.f32 %v4687_v45, %v4678_v4  ;;  %v4705_v59 = vsel %vm708_vm5, %v4704_v61, %v4700_v3 }
0x2abd   :  { %v4713_v49 = vrot.slane %v4692_v35, %v6703_v9 }
0x2abf   :  { %v4714_v41 = vsel %vm708_vm5, %v4713_v49, %v4709_v52 }
0x2ac0   :  { %v4715_v62 = vsel %vm454_vm3, %v4714_v41, %v4705_v59 }
0x2ac1   :  { %v4717_v37 = vsel %vm721_vm6, %v4715_v62, -inf }
0x2ac2   :  { %4718 = vmax.xlane.f32.xlu0 %v4717_v37 }
0x2b4b   :  { %v4719_v11 = vpop.xlane.xlu0 %4718 }
0x2b4c   :  { %v4724_v13 = vrot.slane %v4719_v11, %v6662_v19  ;;  %v4728_v16 = vrot.slane %v4719_v11, %v6714_v38 }
0x2b4e   :  { %v4731_v40 = vsub.f32 %v4689_v50, %v4724_v13  ;;  %v4732_v39 = vsub.f32 %v4690_v47, %v4724_v13  ;;  %v4733_v10 = vsub.f32 %v4691_v48, %v4728_v16  ;;  %v4734_v53 = vsub.f32 %v4692_v35, %v4728_v16  ;;  %v4847_v50 = vld [vmem:[#allocation15 + $0x18] sm:$0xff]  ;;  %v4846_v47 = vld [vmem:[#allocation15 + $0x10] sm:$0xff]  ;;  %v4845_v48 = vld [vmem:[#allocation15 + $0x8] sm:$0xff] }
0x2b4f   :  { %5865 = vmatpush3.msra.mxu0 %v4847_v50 }
0x2b50   :  { %v4735_v36 = vmul.f32 1.442695, %v4731_v40  ;;  %v4737_v55 = vmul.f32 1.442695, %v4732_v39  ;;  %v4739_v56 = vmul.f32 1.442695, %v4733_v10  ;;  %5866 = vmatprep.subr.mxu0 %v6325_v15 }
0x2b51   :  { %v4741_v31 = vmul.f32 1.442695, %v4734_v53  ;;  %5867 = vmatpush3.msra.mxu0 %v4846_v47 }
0x2b52   :  { %6035 = vpow2.f32 %v4735_v36  ;;  %5868 = vmatprep.subr.mxu0 %v6325_v15 }
0x2b53   :  { %6037 = vpow2.f32 %v4737_v55  ;;  %5869 = vmatpush3.msra.mxu0 %v4845_v48 }
0x2b54   :  { %6039 = vpow2.f32 %v4739_v56  ;;  %5870 = vmatprep.subr.mxu0 %v6325_v15 }
0x2b55   :  { %6041 = vpow2.f32 %v4741_v31 }
0x2b5f   :  { %v6036_v5 = vpop.eup %6035 }
0x2b60   :  { %v6038_v54 = vpop.eup %6037  ;;  %4748 = vperm.xlu0 %5925, %v6036_v5  }
0x2b61   :  { %4751 = vperm.xlu1 %5926, %v6038_v54   ;;  %v6040_v25 = vpop.eup %6039 }
0x2b62   :  { %v6042_v14 = vpop.eup %6041 }
0x2b65   :  { %4754 = vperm.xlu1 %5926, %v6040_v25  }
0x2b69   :  { %4757 = vperm.xlu1 %5926, %v6042_v14  }
0x2bdb   :  { %v4749_v43 = vpop.permute.xlu0 %4748 }
0x2bdc   :  { %v4752_v58 = vpop.permute.xlu1 %4751  ;;  %v4762_v21 = vrot.slane %v4749_v43, %v6700_v7 }
0x2bdd   :  { %v4766_v8 = vrot.slane %v4752_v58, %v6703_v9 }
0x2bdf   :  { %v4767_v12 = vsel %vm708_vm5, %v4766_v8, %v4762_v21 }
0x2be0   :  { %v4755_v34 = vpop.permute.xlu1 %4754 }
0x2be1   :  { %v4771_v26 = vrot.slane %v4755_v34, %v6700_v7 }
0x2be4   :  { %v4758_v30 = vpop.permute.xlu1 %4757 }
0x2be5   :  { %v4775_v44 = vrot.slane %v4758_v30, %v6703_v9 }
0x2be7   :  { %v4776_v63 = vsel %vm708_vm5, %v4775_v44, %v4771_v26 }
0x2be8   :  { %v4777_v51 = vsel %vm454_vm3, %v4776_v63, %v4767_v12 }
0x2be9   :  { %v4779_v27 = vsel %vm721_vm6, %v4777_v51, 0.0 }
0x2bea   :  { %4780 = vadd.xlane.f32.xlu1 %v4779_v27 }
0x2c73   :  { %v4781_v28 = vpop.xlane.xlu1 %4780 }
0x2c74   :  { %6043 = vrcp.f32 %v4781_v28 }
0x2c81   :  { %v6044_v42 = vpop.eup %6043 }
0x2c82   :  { %v4787_v33 = vrot.slane %v6044_v42, %v6662_v19  ;;  %v4791_v1 = vrot.slane %v6044_v42, %v6714_v38  ;;  %v4844_v19 = vld [vmem:[#allocation15] sm:$0xff] }
0x2c83   :  { %5871 = vmatpush3.msra.mxu0 %v4844_v19  ;;  %v4841_v38 = vld [vmem:[#allocation3 + $0xc] sm:$0x3] }
0x2c84   :  { %v4794_v32 = vmul.f32 %v6036_v5, %v4787_v33  ;;  %v4795_v2 = vmul.f32 %v6038_v54, %v4787_v33  ;;  %v4796_v45 = vmul.f32 %v6040_v25, %v4791_v1  ;;  %v4797_v46 = vmul.f32 %v6042_v14, %v4791_v1  ;;  %5882 = vmatprep.subr.mxu0 %v6325_v15  ;;  %v5098_v1 = vld [vmem:[#allocation18 + $0x10] sm:$0xff] }
0x2c85   :  { %5880 = vmatmul.mubr.msk.f32.vlgmr.msra.gmra.mxu1 %vm927_vm4, %v4841_v38 }
0x2c86   :  { %4800 = vperm.xlu0 %5925, %v4794_v32   ;;  %5901 = vmatprep.mubr.msk.f32.mxu1 %vm6326_vm1, %v6325_v15 }
0x2c8a   :  { %4805 = vperm.xlu0 %5925, %v4795_v2  }
0x2c8e   :  { %4810 = vperm.xlu0 %5925, %v4796_v45   ;;  %v5097_v45 = vld [vmem:[#allocation18 + $0x8] sm:$0xff] }
0x2c92   :  { %4815 = vperm.xlu0 %5925, %v4797_v46   ;;  %v5096_v46 = vld [vmem:[#allocation18] sm:$0xff] }
0x2d01   :  { %v4801_v4 = vpop.permute.xlu0 %4800 }
0x2d02   :  { %v4818_v3 = vmul.f32 %v4801_v4, %v6540_v20  ;;  %v5187_v40 = vrot.slane %v4801_v4, %v6700_v7 }
0x2d04   :  { %v4822_v52 = vsel %vm322_vm2, %v4818_v3, 0.0 }
0x2d05   :  { %v4806_v61 = vpop.permute.xlu0 %4805 }
0x2d06   :  { %v4819_v35 = vmul.f32 %v4806_v61, %v6538_v18  ;;  %v5191_v37 = vrot.slane %v4806_v61, %v6703_v9 }
0x2d08   :  { %v4823_v49 = vsel %vm322_vm2, %v4819_v35, 0.0  ;;  %v5192_v10 = vsel %vm708_vm5, %v5191_v37, %v5187_v40 }
0x2d09   :  { %v4824_v59 = vadd.f32 %v4823_v49, %v4822_v52  ;;  %v4811_v41 = vpop.permute.xlu0 %4810 }
0x2d0a   :  { %v4820_v11 = vmul.f32 %v4811_v41, %v6558_v29  ;;  %v5196_v20 = vrot.slane %v4811_v41, %v6700_v7 }
0x2d0b   :  { %v4825_v62 = vrot.slane %v4824_v59, 4 }
0x2d0c   :  { %v4831_v36 = vsel %vm322_vm2, %v4820_v11, 0.0 }
0x2d0d   :  { %v4826_v13 = vadd.f32 %v4825_v62, %v4824_v59  ;;  %v4816_v16 = vpop.permute.xlu0 %4815 }
0x2d0e   :  { %v4821_v39 = vmul.f32 %v4816_v16, %v6545_v23  ;;  %v5200_v18 = vrot.slane %v4816_v16, %v6703_v9 }
0x2d0f   :  { %v4827_v56 = vrot.slane %v4826_v13, 2 }
0x2d10   :  { %v4832_v55 = vsel %vm322_vm2, %v4821_v39, 0.0  ;;  %v5201_v53 = vsel %vm708_vm5, %v5200_v18, %v5196_v20 }
0x2d11   :  { %v4833_v29 = vadd.f32 %v4832_v55, %v4831_v36  ;;  %v5202_v31 = vsel %vm454_vm3, %v5201_v53, %v5192_v10  ;;  %v4828_v7 = vadd.f32 %v4827_v56, %v4826_v13 }
0x2d12   :  { %5205 = vst.msk [vmem:[#allocation21 + $0xc] sm:$0x3] %vm721_vm6, %v5202_v31 }
0x2d13   :  { %v4834_v5 = vrot.slane %v4833_v29, 4  ;;  %v4829_v25 = vrot.slane %v4828_v7, 1 }
0x2d15   :  { %v4835_v54 = vadd.f32 %v4834_v5, %v4833_v29  ;;  %v4830_v58 = vadd.f32 %v4829_v25, %v4828_v7 }
0x2d17   :  { %v4836_v23 = vrot.slane %v4835_v54, 2 }
0x2d19   :  { %v4837_v9 = vadd.f32 %v4836_v23, %v4835_v54 }
0x2d1b   :  { %v4838_v14 = vrot.slane %v4837_v9, 1 }
0x2d1d   :  { %v4839_v43 = vadd.f32 %v4838_v14, %v4837_v9 }
0x2d1f   :  { %v4850_v34 = vsel %vm454_vm3, %v4839_v43, %v4830_v58 }
0x2d20   :  { %5873 = vmatmul.mubr.msk.f32.vlgmr.msra.gmra.mxu0 %vm322_vm2, %v4850_v34 }
0x2d21   :  { %5883 = vmatpush3.msra.mxu0 %v7438_v22  ;;  %5890 = vmatprep.mubr.msk.f32.mxu0 %vm6326_vm1, %v6325_v15 }
0x2d22   :  { %5884 = vmatprep.subr.mxu0 %v6325_v15 }
0x2d23   :  { %5885 = vmatpush3.msra.mxu0 %v7442_v24 }
0x2d24   :  { %5886 = vmatprep.subr.mxu0 %v6325_v15 }
0x2d25   :  { %5887 = vmatpush3.msra.mxu0 %v7448_v6 }
0x2d26   :  { %5888 = vmatprep.subr.mxu0 %v6325_v15 }
0x2d27   :  { %5889 = vmatpush3.msra.mxu0 %v7452_v17 }
0x2d28   :  { %5891 = vmatmul.mubr.msk.f32.vlgmr.msra.gmra.mxu0 %vm322_vm2, %v7475_v0 }
0x2d45   :  { %v4992_v8 = vpop.f32.mrf.mxu1 }
0x2d47   :  { %v5881_v22 = vpop.f32.mrf.mxu1 }
0x2de0   :  { %v4919_v21 = vpop.f32.mrf.mxu0 }
0x2de1   :  { %v4993_v26 = vadd.f32 %v4992_v8, %v4919_v21 }
0x2de2   :  { %v5874_v30 = vpop.f32.mrf.mxu0 }
0x2de8   :  { %v5066_v44 = vpop.f32.mrf.mxu0 }
0x2de9   :  { %v5070_v12 = vadd.f32 %v5066_v44, %v4993_v26 }
0x2dea   :  { %v5892_v63 = vpop.f32.mrf.mxu0 }
0x2deb   :  { %v5071_v24 = vadd.f32 %v5070_v12, %v6772_v57  ;;  %v5099_v57 = vld [vmem:[#allocation18 + $0x18] sm:$0xff] }
0x2dec   :  { %5894 = vmatpush3.msra.mxu1 %v5099_v57 }
0x2ded   :  { %6045 = vtanh.f32 %v5071_v24  ;;  %v5317_v6 = vmul.f32 -1.442695, %v5071_v24  ;;  %5895 = vmatprep.subr.mxu1 %v6325_v15 }
0x2dee   :  { %5896 = vmatpush3.msra.mxu1 %v5098_v1 }
0x2def   :  { %6047 = vpow2.f32 %v5317_v6  ;;  %5897 = vmatprep.subr.mxu1 %v6325_v15 }
0x2df0   :  { %5898 = vmatpush3.msra.mxu1 %v5097_v45 }
0x2df1   :  { %5899 = vmatprep.subr.mxu1 %v6325_v15 }
0x2df2   :  { %5900 = vmatpush3.msra.mxu1 %v5096_v46 }
0x2dfa   :  { %v6046_v51 = vpop.eup %6045 }
0x2dfb   :  { %5081 = vrot.lane.b32.xlu0 %v6046_v51, %s6329_s25 }
0x2dfc   :  { %v6048_v17 = vpop.eup %6047 }
0x2dfd   :  { %v5075_v27 = vadd.f32 1.0, %v6048_v17 }
0x2dff   :  { %6049 = vrcp.f32 %v5075_v27 }
0x2e0c   :  { %v6050_v0 = vpop.eup %6049 }
0x2e0d   :  { %v5079_v33 = vmul.f32 %v6050_v0, %v7466_v60 }
0x2e6d   :  { %v5082_v28 = vpop.permute.xlu0 %5081 }
0x2e6e   :  { %v5084_v42 = vmul.f32 %v6050_v0, %v5082_v28 }
0x2e70   :  { %5086 = vrot.lane.b32.xlu0 %v5084_v42, %s6318_s8 }
0x2ee2   :  { %v5087_v32 = vpop.permute.xlu0 %5086 }
0x2ee3   :  { %v5089_v2 = vadd.f32 %v5087_v32, %v5079_v33 }
0x2ee5   :  { %6051 = vtanh.f32 %v5089_v2 }
0x2ef2   :  { %v6052_v50 = vpop.eup %6051 }
0x2ef3   :  { %5092 = vrot.lane.b32.xlu0 %v6052_v50, %s6329_s25 }
0x2f65   :  { %v5093_v60 = vpop.permute.xlu0 %5092 }
0x2f66   :  { %v5095_v47 = vmul.f32 %v6050_v0, %v5093_v60 }
0x2f68   :  { %5108 = vrot.lane.b32.xlu0 %v5095_v47, %s6318_s8 }
0x2fda   :  { %v5109_v48 = vpop.permute.xlu0 %5108 }
0x2fdb   :  { %5902 = vmatmul.mubr.msk.f32.vlgmr.msra.gmra.mxu1 %vm322_vm2, %v5109_v48 }
0x2fdc   :  { %6266 = shalt.err (!%p6263_p12)
}
0x2fdd   :  { %5229 = dma.vmem_to_hbm [thread:$0]  %s5224_s4, 224, %s7606_s20, [#allocation22], %s6318_s8, %s6318_s8, %s6319_s21  }
0x2fde   :  { %v5318_v15 = vld [vmem:[%s7604_s18] ss:$0 sm:$0xff]  ;;  %s6331_s23 = smov [#allocation20]  }
0x2fdf   :  { %s5211_s13 = sshll.u32 %s6331_s23, 4  ;;  %s5212_s13 = int_to_ptr.vmem [resolvable:$true] %s5211_s13 }
0x2fe0   :  { %s6275_s2 = scalar_lea.vmem %s5212_s13, 224  ;;  %p6280_p0 = scmp.lt.s32.totalorder %s5212_s13, %s5212_s13 }
0x2fe1   :  { %p6276_p13 = scmp.ne.s32.totalorder %s5212_s13, %s6275_s2  ;;  %p6281_p1 = scmp.lt.s32.totalorder %s6275_s2, %s6275_s2 }
0x2fe3   :  { %p6282_p2 = por %p6281_p1, %p6280_p0 }
0x2fe5   :  { %p6283_p3 = pnand %p6282_p2, %p6276_p13 }
0x309b   :  { %v5178_v19 = vpop.f32.mrf.mxu1 }
0x309c   :  { %v5179_v38 = vadd.f32 %v5318_v15, %v5178_v19 }
0x309d   :  { %v5903_v4 = vpop.f32.mrf.mxu1 }
0x309e   :  { %5183 = vst.msk [vmem:[#allocation20 + $0xc] sm:$0x3] %vm1193_vm7, %v5179_v38 }
0x309f   :  { %6286 = shalt.err (!%p6283_p3)
}
0x30a0   :  { %5217 = dma.vmem_to_hbm [thread:$0]  %s5212_s13, 224, %s7605_s19, [#allocation5], %s6318_s8, %s6318_s8, %s6319_s21  }
0x30a1   :  { %6307 = dma.done.wait [#allocation5], 224  }
0x30a2   :  { %6308 = vsyncadd [#allocation5], 4294967072 }
0x30a3   :  { %6309 = dma.done.wait [#allocation22], 224  }
0x30a4   :  { %6310 = vsyncadd [#allocation22], 4294967072 }
0x30a5   :  { %5236 = vsyncpa [#allocation4], 1 }
0x30a6   :  { %5237 = vsyncpa [#allocation7], 1 }
0x30a7   :  { %5238 = vsyncpa [#allocation10], 1 }
0x30a8   :  { %5239 = vsyncpa [#allocation13], 1 }
0x30a9   :  { %5240 = vsyncpa [#allocation16], 1 }
0x30aa   :  { %5241 = vsyncpa [#allocation19], 1 }
0x30ab   :  { %5242 = vsyncpa [#allocation5], 1 }
0x30ac   :  { %5243 = vsyncpa [#allocation22], 1 }

</bundles_post_ra>
